<compile_context>
chip_gen: v5e
topology: v5e:2x2
jax: 0.10.0
libtpu: 0.0.40
codegen_flags: <defaults>
</compile_context>

<pallas_src>
import functools

import jax
import jax.numpy as jnp
from jax.experimental import pallas as pl

# ------------------------- small RoBERTa-like config -------------------------
HIDDEN = 64
N_HEADS = 4
HEAD_DIM = HIDDEN // N_HEADS
INTERMEDIATE = 128
N_LAYERS = 2
VOCAB = 100
MAX_POS = 64
PAD_IDX = 1           # RoBERTa padding_idx (used as position offset)
NUM_LABELS = 3
NPAD = 128            # lane-dense padded classifier width
LN_EPS = 1e-5
BN_EPS = 1e-5


# ------------------------------- fused kernel --------------------------------
def _fused_forward_kernel(
    emb_ref,      # [B*S, H]  f32  embeddings (pre-LayerNorm)
    maskb_ref,    # [B, S]    f32  additive attention bias (-10000 on padding)
    embln_ref,    # [2, H]    f32  (gamma, beta)
    wqkv_ref,     # [L, H, 3H] bf16
    bqkv_ref,     # [L, 1, 3H] f32
    wo_ref,       # [L, H, H]  bf16
    bo_ref,       # [L, 1, H]  f32
    ln1_ref,      # [L, 2, H]  f32
    wi_ref,       # [L, H, I]  bf16
    bi_ref,       # [L, 1, I]  f32
    wo2_ref,      # [L, I, H]  bf16
    bo2_ref,      # [L, 1, H]  f32
    ln2_ref,      # [L, 2, H]  f32
    bn_ref,       # [2, H]     f32  BatchNorm1d (gamma, beta)
    clsw_ref,     # [H, NPAD]  bf16 (cols >= NUM_LABELS are zero)
    clsb_ref,     # [1, NPAD]  f32
    out_ref,      # [B, NPAD]  f32
    *, batch, seq, n_layers, n_heads, head_dim, use_bn,
):
    def layer_norm(x, gb):
        gamma = gb[0:1, :]
        beta = gb[1:2, :]
        mean = jnp.mean(x, axis=-1, keepdims=True)
        var = jnp.mean((x - mean) ** 2, axis=-1, keepdims=True)
        return (x - mean) * jax.lax.rsqrt(var + LN_EPS) * gamma + beta

    def mm(x_f32, w_bf16, b_f32):
        # bf16 x bf16 -> f32 accumulate (native MXU path).
        return jnp.dot(x_f32.astype(jnp.bfloat16), w_bf16,
                       preferred_element_type=jnp.float32) + b_f32

    scale = jnp.float32(1.0 / (head_dim ** 0.5))

    # Embedding LayerNorm.
    h = layer_norm(emb_ref[...].astype(jnp.float32), embln_ref[...])

    # Transformer layers (static Python loop: everything stays in vregs/VMEM).
    for l in range(n_layers):
        # Fused QKV projection: one [B*S, H] @ [H, 3H] matmul.
        qkv = mm(h, wqkv_ref[l], bqkv_ref[l])               # [B*S, 3H] f32
        q = qkv[:, 0 * HIDDEN:1 * HIDDEN]
        k = qkv[:, 1 * HIDDEN:2 * HIDDEN]
        v = qkv[:, 2 * HIDDEN:3 * HIDDEN]

        # Multi-head attention: heads are static lane-slices, no transposes.
        ctx_rows = []
        for b in range(batch):
            mb = maskb_ref[b:b + 1, :]                      # [1, S]
            qb = q[b * seq:(b + 1) * seq, :]
            kb = k[b * seq:(b + 1) * seq, :]
            vb = v[b * seq:(b + 1) * seq, :]
            head_outs = []
            for hd in range(n_heads):
                lo, hi = hd * head_dim, (hd + 1) * head_dim
                qh, kh, vh = qb[:, lo:hi], kb[:, lo:hi], vb[:, lo:hi]
                # scores: contract head_dim of q and k (no explicit k.T).
                s = jax.lax.dot_general(
                    qh, kh, (((1,), (1,)), ((), ())),
                    preferred_element_type=jnp.float32) * scale + mb
                s = s - jnp.max(s, axis=-1, keepdims=True)
                p = jnp.exp(s)
                p = p / jnp.sum(p, axis=-1, keepdims=True)
                head_outs.append(
                    jnp.dot(p, vh, preferred_element_type=jnp.float32))
            ctx_rows.append(jnp.concatenate(head_outs, axis=-1))   # [S, H]
        ctx = jnp.concatenate(ctx_rows, axis=0)                    # [B*S, H]

        # Output projection + residual + LayerNorm (all fused).
        attn_out = mm(ctx, wo_ref[l], bo_ref[l])
        h = layer_norm(h + attn_out, ln1_ref[l])

        # FFN: H -> I (GELU) -> H, residual + LayerNorm.
        # TODO(synk): HF RoBERTa uses exact erf GELU; tanh approximation here.
        inter = jax.nn.gelu(mm(h, wi_ref[l], bi_ref[l]), approximate=True)
        ffn_out = mm(inter, wo2_ref[l], bo2_ref[l])
        h = layer_norm(h + ffn_out, ln2_ref[l])

    # pooled_output = sequence_output[:, 0, :]
    cls = jnp.concatenate([h[b * seq:b * seq + 1, :] for b in range(batch)],
                          axis=0)                                  # [B, H]

    if use_bn:
        # BatchNorm1d, training-mode batch statistics (biased var, like torch).
        bn = bn_ref[...]
        mean = jnp.mean(cls, axis=0, keepdims=True)
        var = jnp.mean((cls - mean) ** 2, axis=0, keepdims=True)
        cls = (cls - mean) * jax.lax.rsqrt(var + BN_EPS) * bn[0:1, :] + bn[1:2, :]

    # TODO(synk): nn.Dropout(0.3) in torch training mode is stochastic;
    # identity (eval semantics) here.
    logits = mm(cls, clsw_ref[...], clsb_ref[...])                 # [B, NPAD]
    out_ref[...] = logits.astype(out_ref.dtype)


# ------------------------------ kernel wrapper --------------------------------
def _whole_spec(shape):
    n = len(shape)
    return pl.BlockSpec(shape, lambda: (0,) * n)


def roberta_simple_classifier_forward(params, input_ids, attention_mask):
    B, S = input_ids.shape
    mask_i = attention_mask.astype(jnp.int32)

    # RoBERTa embeddings (gathers are plain-JAX glue).
    position_ids = jnp.cumsum(mask_i, axis=1) * mask_i + PAD_IDX
    emb = (params["word_emb"][input_ids]
           + params["pos_emb"][position_ids]
           + params["type_emb"][jnp.zeros_like(input_ids)])
    emb2d = emb.reshape(B * S, HIDDEN).astype(jnp.float32)
    mask_bias = (1.0 - attention_mask.astype(jnp.float32)) * -10000.0   # [B, S]

    kernel = functools.partial(
        _fused_forward_kernel,
        batch=B, seq=S, n_layers=N_LAYERS, n_heads=N_HEADS,
        head_dim=HEAD_DIM,
        use_bn=(B > 1),   # torch module skips BatchNorm1d when batch size == 1
    )

    inputs = (
        emb2d, mask_bias, params["emb_ln"],
        params["wqkv"], params["bqkv"], params["wo"], params["bo"], params["ln1"],
        params["wi"], params["bi"], params["wo2"], params["bo2"], params["ln2"],
        params["bn"], params["cls_w"], params["cls_b"],
    )

    logits_padded = pl.pallas_call(
        kernel,
        out_shape=jax.ShapeDtypeStruct((B, NPAD), jnp.float32),
        in_specs=[_whole_spec(a.shape) for a in inputs],
        out_specs=_whole_spec((B, NPAD)),
    )(*inputs)

    return logits_padded[:, :NUM_LABELS]


# ------------------------------- parameter init -------------------------------
def init_params(key):
    keys = jax.random.split(key, 4 + N_LAYERS)

    def dense(k, shape):
        return 0.02 * jax.random.normal(k, shape, jnp.float32)

    def ln_pair():  # rows: (gamma, beta)
        return jnp.stack([jnp.ones((HIDDEN,), jnp.float32),
                          jnp.zeros((HIDDEN,), jnp.float32)])

    wqkv, wo, wi, wo2 = [], [], [], []
    for l in range(N_LAYERS):
        lk = jax.random.split(keys[4 + l], 6)
        wqkv.append(jnp.concatenate(
            [dense(lk[0], (HIDDEN, HIDDEN)),
             dense(lk[1], (HIDDEN, HIDDEN)),
             dense(lk[2], (HIDDEN, HIDDEN))], axis=1))            # [H, 3H]
        wo.append(dense(lk[3], (HIDDEN, HIDDEN)))
        wi.append(dense(lk[4], (HIDDEN, INTERMEDIATE)))
        wo2.append(dense(lk[5], (INTERMEDIATE, HIDDEN)))

    cls_w = dense(keys[3], (HIDDEN, NUM_LABELS))
    cls_w_pad = jnp.zeros((HIDDEN, NPAD), jnp.float32).at[:, :NUM_LABELS].set(cls_w)
    cls_b_pad = jnp.zeros((1, NPAD), jnp.float32)

    return {
        "word_emb": dense(keys[0], (VOCAB, HIDDEN)),
        "pos_emb": dense(keys[1], (MAX_POS, HIDDEN)),
        "type_emb": dense(keys[2], (2, HIDDEN)),
        "emb_ln": ln_pair(),                                       # [2, H]
        "wqkv": jnp.stack(wqkv).astype(jnp.bfloat16),              # [L, H, 3H]
        "bqkv": jnp.zeros((N_LAYERS, 1, 3 * HIDDEN), jnp.float32),
        "wo": jnp.stack(wo).astype(jnp.bfloat16),                  # [L, H, H]
        "bo": jnp.zeros((N_LAYERS, 1, HIDDEN), jnp.float32),
        "ln1": jnp.stack([ln_pair() for _ in range(N_LAYERS)]),    # [L, 2, H]
        "wi": jnp.stack(wi).astype(jnp.bfloat16),                  # [L, H, I]
        "bi": jnp.zeros((N_LAYERS, 1, INTERMEDIATE), jnp.float32),
        "wo2": jnp.stack(wo2).astype(jnp.bfloat16),                # [L, I, H]
        "bo2": jnp.zeros((N_LAYERS, 1, HIDDEN), jnp.float32),
        "ln2": jnp.stack([ln_pair() for _ in range(N_LAYERS)]),    # [L, 2, H]
        "bn": ln_pair(),                                           # [2, H]
        "cls_w": cls_w_pad.astype(jnp.bfloat16),                   # [H, NPAD]
        "cls_b": cls_b_pad,                                        # [1, NPAD]
    }


# ------------------------------------ main ------------------------------------
if __name__ == "__main__":
    B, S = 2, 8
    root = jax.random.PRNGKey(0)
    k_params, k_ids = jax.random.split(root)

    params = init_params(k_params)
    input_ids = jax.random.randint(k_ids, (B, S), 2, VOCAB, dtype=jnp.int32)
    attention_mask = jnp.ones((B, S), dtype=jnp.int32)

    logits = roberta_simple_classifier_forward(params, input_ids, attention_mask)
    logits = jax.block_until_ready(logits)
    assert logits.shape == (B, NUM_LABELS) and logits.dtype == jnp.float32
    print("KERNEL_OK")
</pallas_src>

<mosaic_0001>
module attributes {stable_mosaic.version = 11 : i64} {
  func.func @_fused_forward_kernel(%arg0: memref<16x64xf32, #tpu.memory_space<vmem>>, %arg1: memref<2x8xf32, #tpu.memory_space<vmem>>, %arg2: memref<2x64xf32, #tpu.memory_space<vmem>>, %arg3: memref<2x64x192xbf16, #tpu.memory_space<vmem>>, %arg4: memref<2x1x192xf32, #tpu.memory_space<vmem>>, %arg5: memref<2x64x64xbf16, #tpu.memory_space<vmem>>, %arg6: memref<2x1x64xf32, #tpu.memory_space<vmem>>, %arg7: memref<2x2x64xf32, #tpu.memory_space<vmem>>, %arg8: memref<2x64x128xbf16, #tpu.memory_space<vmem>>, %arg9: memref<2x1x128xf32, #tpu.memory_space<vmem>>, %arg10: memref<2x128x64xbf16, #tpu.memory_space<vmem>>, %arg11: memref<2x1x64xf32, #tpu.memory_space<vmem>>, %arg12: memref<2x2x64xf32, #tpu.memory_space<vmem>>, %arg13: memref<2x64xf32, #tpu.memory_space<vmem>>, %arg14: memref<64x128xbf16, #tpu.memory_space<vmem>>, %arg15: memref<1x128xf32, #tpu.memory_space<vmem>>, %arg16: memref<2x128xf32, #tpu.memory_space<vmem>>) attributes {dimension_semantics = [], scalar_prefetch = 0 : i64, scratch_operands = 0 : i64, tpu.core_type = #tpu.core_type<tc>} {
    %c0 = arith.constant 0 : index
    %c0_0 = arith.constant 0 : index
    %0 = vector.load %arg0[%c0, %c0_0] : memref<16x64xf32, #tpu.memory_space<vmem>>, vector<16x64xf32>
    %c0_1 = arith.constant 0 : index
    %c0_2 = arith.constant 0 : index
    %1 = vector.load %arg2[%c0_1, %c0_2] : memref<2x64xf32, #tpu.memory_space<vmem>>, vector<2x64xf32>
    %2 = vector.extract_strided_slice %1 {offsets = [0, 0], sizes = [1, 64], strides = [1, 1]} : vector<2x64xf32> to vector<1x64xf32>
    %3 = vector.extract_strided_slice %1 {offsets = [1, 0], sizes = [1, 64], strides = [1, 1]} : vector<2x64xf32> to vector<1x64xf32>
    %cst = arith.constant dense<0.000000e+00> : vector<16xf32>
    %4 = vector.multi_reduction <add>, %0, %cst [1] : vector<16x64xf32> to vector<16xf32>
    %5 = vector.shape_cast %4 : vector<16xf32> to vector<16x1xf32>
    %cst_3 = arith.constant 6.400000e+01 : f32
    %6 = vector.broadcast %cst_3 : f32 to vector<16x1xf32>
    %7 = arith.divf %5, %6 : vector<16x1xf32>
    %8 = vector.broadcast %7 : vector<16x1xf32> to vector<16x64xf32>
    %9 = arith.subf %0, %8 : vector<16x64xf32>
    %10 = arith.mulf %9, %9 : vector<16x64xf32>
    %cst_4 = arith.constant dense<0.000000e+00> : vector<16xf32>
    %11 = vector.multi_reduction <add>, %10, %cst_4 [1] : vector<16x64xf32> to vector<16xf32>
    %12 = vector.shape_cast %11 : vector<16xf32> to vector<16x1xf32>
    %cst_5 = arith.constant 6.400000e+01 : f32
    %13 = vector.broadcast %cst_5 : f32 to vector<16x1xf32>
    %14 = arith.divf %12, %13 : vector<16x1xf32>
    %15 = vector.broadcast %7 : vector<16x1xf32> to vector<16x64xf32>
    %16 = arith.subf %0, %15 : vector<16x64xf32>
    %cst_6 = arith.constant 9.99999974E-6 : f32
    %17 = vector.broadcast %cst_6 : f32 to vector<16x1xf32>
    %18 = arith.addf %14, %17 : vector<16x1xf32>
    %19 = math.rsqrt %18 : vector<16x1xf32>
    %20 = vector.broadcast %19 : vector<16x1xf32> to vector<16x64xf32>
    %21 = arith.mulf %16, %20 : vector<16x64xf32>
    %22 = vector.broadcast %2 : vector<1x64xf32> to vector<16x64xf32>
    %23 = arith.mulf %21, %22 : vector<16x64xf32>
    %24 = vector.broadcast %3 : vector<1x64xf32> to vector<16x64xf32>
    %25 = arith.addf %23, %24 : vector<16x64xf32>
    %c0_7 = arith.constant 0 : index
    %c0_8 = arith.constant 0 : index
    %c0_9 = arith.constant 0 : index
    %26 = vector.load %arg3[%c0_7, %c0_8, %c0_9] : memref<2x64x192xbf16, #tpu.memory_space<vmem>>, vector<1x64x192xbf16>
    %27 = vector.shape_cast %26 : vector<1x64x192xbf16> to vector<64x192xbf16>
    %c0_10 = arith.constant 0 : index
    %c0_11 = arith.constant 0 : index
    %c0_12 = arith.constant 0 : index
    %28 = vector.load %arg4[%c0_10, %c0_11, %c0_12] : memref<2x1x192xf32, #tpu.memory_space<vmem>>, vector<1x1x192xf32>
    %29 = vector.shape_cast %28 : vector<1x1x192xf32> to vector<1x192xf32>
    %30 = arith.truncf %25 : vector<16x64xf32> to vector<16x64xbf16>
    %cst_13 = arith.constant dense<0.000000e+00> : vector<16x192xf32>
    %31 = tpu.matmul %30, %27, %cst_13 {dimension_numbers = #tpu.dot_dimension_numbers<[1], [0], [0], [1], [0, 0, 1, 1], [], []>} : vector<16x64xbf16>, vector<64x192xbf16>, vector<16x192xf32> -> vector<16x192xf32>
    %32 = vector.broadcast %29 : vector<1x192xf32> to vector<16x192xf32>
    %33 = arith.addf %31, %32 : vector<16x192xf32>
    %34 = vector.extract_strided_slice %33 {offsets = [0, 0], sizes = [16, 64], strides = [1, 1]} : vector<16x192xf32> to vector<16x64xf32>
    %35 = vector.extract_strided_slice %33 {offsets = [0, 64], sizes = [16, 64], strides = [1, 1]} : vector<16x192xf32> to vector<16x64xf32>
    %36 = vector.extract_strided_slice %33 {offsets = [0, 128], sizes = [16, 64], strides = [1, 1]} : vector<16x192xf32> to vector<16x64xf32>
    %c0_14 = arith.constant 0 : index
    %c0_15 = arith.constant 0 : index
    %37 = vector.load %arg1[%c0_14, %c0_15] : memref<2x8xf32, #tpu.memory_space<vmem>>, vector<1x8xf32>
    %38 = vector.extract_strided_slice %34 {offsets = [0, 0], sizes = [8, 64], strides = [1, 1]} : vector<16x64xf32> to vector<8x64xf32>
    %39 = vector.extract_strided_slice %35 {offsets = [0, 0], sizes = [8, 64], strides = [1, 1]} : vector<16x64xf32> to vector<8x64xf32>
    %40 = vector.extract_strided_slice %36 {offsets = [0, 0], sizes = [8, 64], strides = [1, 1]} : vector<16x64xf32> to vector<8x64xf32>
    %41 = vector.extract_strided_slice %38 {offsets = [0, 0], sizes = [8, 16], strides = [1, 1]} : vector<8x64xf32> to vector<8x16xf32>
    %42 = vector.extract_strided_slice %39 {offsets = [0, 0], sizes = [8, 16], strides = [1, 1]} : vector<8x64xf32> to vector<8x16xf32>
    %43 = vector.extract_strided_slice %40 {offsets = [0, 0], sizes = [8, 16], strides = [1, 1]} : vector<8x64xf32> to vector<8x16xf32>
    %cst_16 = arith.constant dense<0.000000e+00> : vector<8x8xf32>
    %44 = tpu.matmul %41, %42, %cst_16 {dimension_numbers = #tpu.dot_dimension_numbers<[1], [1], [0], [0], [0, 0, 1, 0], [], []>} : vector<8x16xf32>, vector<8x16xf32>, vector<8x8xf32> -> vector<8x8xf32>
    %cst_17 = arith.constant 2.500000e-01 : f32
    %45 = vector.broadcast %cst_17 : f32 to vector<8x8xf32>
    %46 = arith.mulf %44, %45 : vector<8x8xf32>
    %47 = vector.broadcast %37 : vector<1x8xf32> to vector<8x8xf32>
    %48 = arith.addf %46, %47 : vector<8x8xf32>
    %cst_18 = arith.constant dense<0xFF800000> : vector<8xf32>
    %49 = vector.multi_reduction <maximumf>, %48, %cst_18 [1] : vector<8x8xf32> to vector<8xf32>
    %50 = vector.shape_cast %49 : vector<8xf32> to vector<8x1xf32>
    %51 = vector.broadcast %50 : vector<8x1xf32> to vector<8x8xf32>
    %52 = arith.subf %48, %51 : vector<8x8xf32>
    %53 = math.exp %52 : vector<8x8xf32>
    %cst_19 = arith.constant dense<0.000000e+00> : vector<8xf32>
    %54 = vector.multi_reduction <add>, %53, %cst_19 [1] : vector<8x8xf32> to vector<8xf32>
    %55 = vector.shape_cast %54 : vector<8xf32> to vector<8x1xf32>
    %56 = vector.broadcast %55 : vector<8x1xf32> to vector<8x8xf32>
    %57 = arith.divf %53, %56 : vector<8x8xf32>
    %cst_20 = arith.constant dense<0.000000e+00> : vector<8x16xf32>
    %58 = tpu.matmul %57, %43, %cst_20 {dimension_numbers = #tpu.dot_dimension_numbers<[1], [0], [0], [1], [0, 0, 1, 1], [], []>} : vector<8x8xf32>, vector<8x16xf32>, vector<8x16xf32> -> vector<8x16xf32>
    %59 = vector.extract_strided_slice %38 {offsets = [0, 16], sizes = [8, 16], strides = [1, 1]} : vector<8x64xf32> to vector<8x16xf32>
    %60 = vector.extract_strided_slice %39 {offsets = [0, 16], sizes = [8, 16], strides = [1, 1]} : vector<8x64xf32> to vector<8x16xf32>
    %61 = vector.extract_strided_slice %40 {offsets = [0, 16], sizes = [8, 16], strides = [1, 1]} : vector<8x64xf32> to vector<8x16xf32>
    %cst_21 = arith.constant dense<0.000000e+00> : vector<8x8xf32>
    %62 = tpu.matmul %59, %60, %cst_21 {dimension_numbers = #tpu.dot_dimension_numbers<[1], [1], [0], [0], [0, 0, 1, 0], [], []>} : vector<8x16xf32>, vector<8x16xf32>, vector<8x8xf32> -> vector<8x8xf32>
    %cst_22 = arith.constant 2.500000e-01 : f32
    %63 = vector.broadcast %cst_22 : f32 to vector<8x8xf32>
    %64 = arith.mulf %62, %63 : vector<8x8xf32>
    %65 = vector.broadcast %37 : vector<1x8xf32> to vector<8x8xf32>
    %66 = arith.addf %64, %65 : vector<8x8xf32>
    %cst_23 = arith.constant dense<0xFF800000> : vector<8xf32>
    %67 = vector.multi_reduction <maximumf>, %66, %cst_23 [1] : vector<8x8xf32> to vector<8xf32>
    %68 = vector.shape_cast %67 : vector<8xf32> to vector<8x1xf32>
    %69 = vector.broadcast %68 : vector<8x1xf32> to vector<8x8xf32>
    %70 = arith.subf %66, %69 : vector<8x8xf32>
    %71 = math.exp %70 : vector<8x8xf32>
    %cst_24 = arith.constant dense<0.000000e+00> : vector<8xf32>
    %72 = vector.multi_reduction <add>, %71, %cst_24 [1] : vector<8x8xf32> to vector<8xf32>
    %73 = vector.shape_cast %72 : vector<8xf32> to vector<8x1xf32>
    %74 = vector.broadcast %73 : vector<8x1xf32> to vector<8x8xf32>
    %75 = arith.divf %71, %74 : vector<8x8xf32>
    %cst_25 = arith.constant dense<0.000000e+00> : vector<8x16xf32>
    %76 = tpu.matmul %75, %61, %cst_25 {dimension_numbers = #tpu.dot_dimension_numbers<[1], [0], [0], [1], [0, 0, 1, 1], [], []>} : vector<8x8xf32>, vector<8x16xf32>, vector<8x16xf32> -> vector<8x16xf32>
    %77 = vector.extract_strided_slice %38 {offsets = [0, 32], sizes = [8, 16], strides = [1, 1]} : vector<8x64xf32> to vector<8x16xf32>
    %78 = vector.extract_strided_slice %39 {offsets = [0, 32], sizes = [8, 16], strides = [1, 1]} : vector<8x64xf32> to vector<8x16xf32>
    %79 = vector.extract_strided_slice %40 {offsets = [0, 32], sizes = [8, 16], strides = [1, 1]} : vector<8x64xf32> to vector<8x16xf32>
    %cst_26 = arith.constant dense<0.000000e+00> : vector<8x8xf32>
    %80 = tpu.matmul %77, %78, %cst_26 {dimension_numbers = #tpu.dot_dimension_numbers<[1], [1], [0], [0], [0, 0, 1, 0], [], []>} : vector<8x16xf32>, vector<8x16xf32>, vector<8x8xf32> -> vector<8x8xf32>
    %cst_27 = arith.constant 2.500000e-01 : f32
    %81 = vector.broadcast %cst_27 : f32 to vector<8x8xf32>
    %82 = arith.mulf %80, %81 : vector<8x8xf32>
    %83 = vector.broadcast %37 : vector<1x8xf32> to vector<8x8xf32>
    %84 = arith.addf %82, %83 : vector<8x8xf32>
    %cst_28 = arith.constant dense<0xFF800000> : vector<8xf32>
    %85 = vector.multi_reduction <maximumf>, %84, %cst_28 [1] : vector<8x8xf32> to vector<8xf32>
    %86 = vector.shape_cast %85 : vector<8xf32> to vector<8x1xf32>
    %87 = vector.broadcast %86 : vector<8x1xf32> to vector<8x8xf32>
    %88 = arith.subf %84, %87 : vector<8x8xf32>
    %89 = math.exp %88 : vector<8x8xf32>
    %cst_29 = arith.constant dense<0.000000e+00> : vector<8xf32>
    %90 = vector.multi_reduction <add>, %89, %cst_29 [1] : vector<8x8xf32> to vector<8xf32>
    %91 = vector.shape_cast %90 : vector<8xf32> to vector<8x1xf32>
    %92 = vector.broadcast %91 : vector<8x1xf32> to vector<8x8xf32>
    %93 = arith.divf %89, %92 : vector<8x8xf32>
    %cst_30 = arith.constant dense<0.000000e+00> : vector<8x16xf32>
    %94 = tpu.matmul %93, %79, %cst_30 {dimension_numbers = #tpu.dot_dimension_numbers<[1], [0], [0], [1], [0, 0, 1, 1], [], []>} : vector<8x8xf32>, vector<8x16xf32>, vector<8x16xf32> -> vector<8x16xf32>
    %95 = vector.extract_strided_slice %38 {offsets = [0, 48], sizes = [8, 16], strides = [1, 1]} : vector<8x64xf32> to vector<8x16xf32>
    %96 = vector.extract_strided_slice %39 {offsets = [0, 48], sizes = [8, 16], strides = [1, 1]} : vector<8x64xf32> to vector<8x16xf32>
    %97 = vector.extract_strided_slice %40 {offsets = [0, 48], sizes = [8, 16], strides = [1, 1]} : vector<8x64xf32> to vector<8x16xf32>
    %cst_31 = arith.constant dense<0.000000e+00> : vector<8x8xf32>
    %98 = tpu.matmul %95, %96, %cst_31 {dimension_numbers = #tpu.dot_dimension_numbers<[1], [1], [0], [0], [0, 0, 1, 0], [], []>} : vector<8x16xf32>, vector<8x16xf32>, vector<8x8xf32> -> vector<8x8xf32>
    %cst_32 = arith.constant 2.500000e-01 : f32
    %99 = vector.broadcast %cst_32 : f32 to vector<8x8xf32>
    %100 = arith.mulf %98, %99 : vector<8x8xf32>
    %101 = vector.broadcast %37 : vector<1x8xf32> to vector<8x8xf32>
    %102 = arith.addf %100, %101 : vector<8x8xf32>
    %cst_33 = arith.constant dense<0xFF800000> : vector<8xf32>
    %103 = vector.multi_reduction <maximumf>, %102, %cst_33 [1] : vector<8x8xf32> to vector<8xf32>
    %104 = vector.shape_cast %103 : vector<8xf32> to vector<8x1xf32>
    %105 = vector.broadcast %104 : vector<8x1xf32> to vector<8x8xf32>
    %106 = arith.subf %102, %105 : vector<8x8xf32>
    %107 = math.exp %106 : vector<8x8xf32>
    %cst_34 = arith.constant dense<0.000000e+00> : vector<8xf32>
    %108 = vector.multi_reduction <add>, %107, %cst_34 [1] : vector<8x8xf32> to vector<8xf32>
    %109 = vector.shape_cast %108 : vector<8xf32> to vector<8x1xf32>
    %110 = vector.broadcast %109 : vector<8x1xf32> to vector<8x8xf32>
    %111 = arith.divf %107, %110 : vector<8x8xf32>
    %cst_35 = arith.constant dense<0.000000e+00> : vector<8x16xf32>
    %112 = tpu.matmul %111, %97, %cst_35 {dimension_numbers = #tpu.dot_dimension_numbers<[1], [0], [0], [1], [0, 0, 1, 1], [], []>} : vector<8x8xf32>, vector<8x16xf32>, vector<8x16xf32> -> vector<8x16xf32>
    %113 = tpu.concatenate %58, %76, %94, %112 in 1 : vector<8x16xf32>, vector<8x16xf32>, vector<8x16xf32>, vector<8x16xf32> -> vector<8x64xf32>
    %c1 = arith.constant 1 : index
    %c0_36 = arith.constant 0 : index
    %114 = vector.load %arg1[%c1, %c0_36] : memref<2x8xf32, #tpu.memory_space<vmem>>, vector<1x8xf32>
    %115 = vector.extract_strided_slice %34 {offsets = [8, 0], sizes = [8, 64], strides = [1, 1]} : vector<16x64xf32> to vector<8x64xf32>
    %116 = vector.extract_strided_slice %35 {offsets = [8, 0], sizes = [8, 64], strides = [1, 1]} : vector<16x64xf32> to vector<8x64xf32>
    %117 = vector.extract_strided_slice %36 {offsets = [8, 0], sizes = [8, 64], strides = [1, 1]} : vector<16x64xf32> to vector<8x64xf32>
    %118 = vector.extract_strided_slice %115 {offsets = [0, 0], sizes = [8, 16], strides = [1, 1]} : vector<8x64xf32> to vector<8x16xf32>
    %119 = vector.extract_strided_slice %116 {offsets = [0, 0], sizes = [8, 16], strides = [1, 1]} : vector<8x64xf32> to vector<8x16xf32>
    %120 = vector.extract_strided_slice %117 {offsets = [0, 0], sizes = [8, 16], strides = [1, 1]} : vector<8x64xf32> to vector<8x16xf32>
    %cst_37 = arith.constant dense<0.000000e+00> : vector<8x8xf32>
    %121 = tpu.matmul %118, %119, %cst_37 {dimension_numbers = #tpu.dot_dimension_numbers<[1], [1], [0], [0], [0, 0, 1, 0], [], []>} : vector<8x16xf32>, vector<8x16xf32>, vector<8x8xf32> -> vector<8x8xf32>
    %cst_38 = arith.constant 2.500000e-01 : f32
    %122 = vector.broadcast %cst_38 : f32 to vector<8x8xf32>
    %123 = arith.mulf %121, %122 : vector<8x8xf32>
    %124 = vector.broadcast %114 : vector<1x8xf32> to vector<8x8xf32>
    %125 = arith.addf %123, %124 : vector<8x8xf32>
    %cst_39 = arith.constant dense<0xFF800000> : vector<8xf32>
    %126 = vector.multi_reduction <maximumf>, %125, %cst_39 [1] : vector<8x8xf32> to vector<8xf32>
    %127 = vector.shape_cast %126 : vector<8xf32> to vector<8x1xf32>
    %128 = vector.broadcast %127 : vector<8x1xf32> to vector<8x8xf32>
    %129 = arith.subf %125, %128 : vector<8x8xf32>
    %130 = math.exp %129 : vector<8x8xf32>
    %cst_40 = arith.constant dense<0.000000e+00> : vector<8xf32>
    %131 = vector.multi_reduction <add>, %130, %cst_40 [1] : vector<8x8xf32> to vector<8xf32>
    %132 = vector.shape_cast %131 : vector<8xf32> to vector<8x1xf32>
    %133 = vector.broadcast %132 : vector<8x1xf32> to vector<8x8xf32>
    %134 = arith.divf %130, %133 : vector<8x8xf32>
    %cst_41 = arith.constant dense<0.000000e+00> : vector<8x16xf32>
    %135 = tpu.matmul %134, %120, %cst_41 {dimension_numbers = #tpu.dot_dimension_numbers<[1], [0], [0], [1], [0, 0, 1, 1], [], []>} : vector<8x8xf32>, vector<8x16xf32>, vector<8x16xf32> -> vector<8x16xf32>
    %136 = vector.extract_strided_slice %115 {offsets = [0, 16], sizes = [8, 16], strides = [1, 1]} : vector<8x64xf32> to vector<8x16xf32>
    %137 = vector.extract_strided_slice %116 {offsets = [0, 16], sizes = [8, 16], strides = [1, 1]} : vector<8x64xf32> to vector<8x16xf32>
    %138 = vector.extract_strided_slice %117 {offsets = [0, 16], sizes = [8, 16], strides = [1, 1]} : vector<8x64xf32> to vector<8x16xf32>
    %cst_42 = arith.constant dense<0.000000e+00> : vector<8x8xf32>
    %139 = tpu.matmul %136, %137, %cst_42 {dimension_numbers = #tpu.dot_dimension_numbers<[1], [1], [0], [0], [0, 0, 1, 0], [], []>} : vector<8x16xf32>, vector<8x16xf32>, vector<8x8xf32> -> vector<8x8xf32>
    %cst_43 = arith.constant 2.500000e-01 : f32
    %140 = vector.broadcast %cst_43 : f32 to vector<8x8xf32>
    %141 = arith.mulf %139, %140 : vector<8x8xf32>
    %142 = vector.broadcast %114 : vector<1x8xf32> to vector<8x8xf32>
    %143 = arith.addf %141, %142 : vector<8x8xf32>
    %cst_44 = arith.constant dense<0xFF800000> : vector<8xf32>
    %144 = vector.multi_reduction <maximumf>, %143, %cst_44 [1] : vector<8x8xf32> to vector<8xf32>
    %145 = vector.shape_cast %144 : vector<8xf32> to vector<8x1xf32>
    %146 = vector.broadcast %145 : vector<8x1xf32> to vector<8x8xf32>
    %147 = arith.subf %143, %146 : vector<8x8xf32>
    %148 = math.exp %147 : vector<8x8xf32>
    %cst_45 = arith.constant dense<0.000000e+00> : vector<8xf32>
    %149 = vector.multi_reduction <add>, %148, %cst_45 [1] : vector<8x8xf32> to vector<8xf32>
    %150 = vector.shape_cast %149 : vector<8xf32> to vector<8x1xf32>
    %151 = vector.broadcast %150 : vector<8x1xf32> to vector<8x8xf32>
    %152 = arith.divf %148, %151 : vector<8x8xf32>
    %cst_46 = arith.constant dense<0.000000e+00> : vector<8x16xf32>
    %153 = tpu.matmul %152, %138, %cst_46 {dimension_numbers = #tpu.dot_dimension_numbers<[1], [0], [0], [1], [0, 0, 1, 1], [], []>} : vector<8x8xf32>, vector<8x16xf32>, vector<8x16xf32> -> vector<8x16xf32>
    %154 = vector.extract_strided_slice %115 {offsets = [0, 32], sizes = [8, 16], strides = [1, 1]} : vector<8x64xf32> to vector<8x16xf32>
    %155 = vector.extract_strided_slice %116 {offsets = [0, 32], sizes = [8, 16], strides = [1, 1]} : vector<8x64xf32> to vector<8x16xf32>
    %156 = vector.extract_strided_slice %117 {offsets = [0, 32], sizes = [8, 16], strides = [1, 1]} : vector<8x64xf32> to vector<8x16xf32>
    %cst_47 = arith.constant dense<0.000000e+00> : vector<8x8xf32>
    %157 = tpu.matmul %154, %155, %cst_47 {dimension_numbers = #tpu.dot_dimension_numbers<[1], [1], [0], [0], [0, 0, 1, 0], [], []>} : vector<8x16xf32>, vector<8x16xf32>, vector<8x8xf32> -> vector<8x8xf32>
    %cst_48 = arith.constant 2.500000e-01 : f32
    %158 = vector.broadcast %cst_48 : f32 to vector<8x8xf32>
    %159 = arith.mulf %157, %158 : vector<8x8xf32>
    %160 = vector.broadcast %114 : vector<1x8xf32> to vector<8x8xf32>
    %161 = arith.addf %159, %160 : vector<8x8xf32>
    %cst_49 = arith.constant dense<0xFF800000> : vector<8xf32>
    %162 = vector.multi_reduction <maximumf>, %161, %cst_49 [1] : vector<8x8xf32> to vector<8xf32>
    %163 = vector.shape_cast %162 : vector<8xf32> to vector<8x1xf32>
    %164 = vector.broadcast %163 : vector<8x1xf32> to vector<8x8xf32>
    %165 = arith.subf %161, %164 : vector<8x8xf32>
    %166 = math.exp %165 : vector<8x8xf32>
    %cst_50 = arith.constant dense<0.000000e+00> : vector<8xf32>
    %167 = vector.multi_reduction <add>, %166, %cst_50 [1] : vector<8x8xf32> to vector<8xf32>
    %168 = vector.shape_cast %167 : vector<8xf32> to vector<8x1xf32>
    %169 = vector.broadcast %168 : vector<8x1xf32> to vector<8x8xf32>
    %170 = arith.divf %166, %169 : vector<8x8xf32>
    %cst_51 = arith.constant dense<0.000000e+00> : vector<8x16xf32>
    %171 = tpu.matmul %170, %156, %cst_51 {dimension_numbers = #tpu.dot_dimension_numbers<[1], [0], [0], [1], [0, 0, 1, 1], [], []>} : vector<8x8xf32>, vector<8x16xf32>, vector<8x16xf32> -> vector<8x16xf32>
    %172 = vector.extract_strided_slice %115 {offsets = [0, 48], sizes = [8, 16], strides = [1, 1]} : vector<8x64xf32> to vector<8x16xf32>
    %173 = vector.extract_strided_slice %116 {offsets = [0, 48], sizes = [8, 16], strides = [1, 1]} : vector<8x64xf32> to vector<8x16xf32>
    %174 = vector.extract_strided_slice %117 {offsets = [0, 48], sizes = [8, 16], strides = [1, 1]} : vector<8x64xf32> to vector<8x16xf32>
    %cst_52 = arith.constant dense<0.000000e+00> : vector<8x8xf32>
    %175 = tpu.matmul %172, %173, %cst_52 {dimension_numbers = #tpu.dot_dimension_numbers<[1], [1], [0], [0], [0, 0, 1, 0], [], []>} : vector<8x16xf32>, vector<8x16xf32>, vector<8x8xf32> -> vector<8x8xf32>
    %cst_53 = arith.constant 2.500000e-01 : f32
    %176 = vector.broadcast %cst_53 : f32 to vector<8x8xf32>
    %177 = arith.mulf %175, %176 : vector<8x8xf32>
    %178 = vector.broadcast %114 : vector<1x8xf32> to vector<8x8xf32>
    %179 = arith.addf %177, %178 : vector<8x8xf32>
    %cst_54 = arith.constant dense<0xFF800000> : vector<8xf32>
    %180 = vector.multi_reduction <maximumf>, %179, %cst_54 [1] : vector<8x8xf32> to vector<8xf32>
    %181 = vector.shape_cast %180 : vector<8xf32> to vector<8x1xf32>
    %182 = vector.broadcast %181 : vector<8x1xf32> to vector<8x8xf32>
    %183 = arith.subf %179, %182 : vector<8x8xf32>
    %184 = math.exp %183 : vector<8x8xf32>
    %cst_55 = arith.constant dense<0.000000e+00> : vector<8xf32>
    %185 = vector.multi_reduction <add>, %184, %cst_55 [1] : vector<8x8xf32> to vector<8xf32>
    %186 = vector.shape_cast %185 : vector<8xf32> to vector<8x1xf32>
    %187 = vector.broadcast %186 : vector<8x1xf32> to vector<8x8xf32>
    %188 = arith.divf %184, %187 : vector<8x8xf32>
    %cst_56 = arith.constant dense<0.000000e+00> : vector<8x16xf32>
    %189 = tpu.matmul %188, %174, %cst_56 {dimension_numbers = #tpu.dot_dimension_numbers<[1], [0], [0], [1], [0, 0, 1, 1], [], []>} : vector<8x8xf32>, vector<8x16xf32>, vector<8x16xf32> -> vector<8x16xf32>
    %190 = tpu.concatenate %135, %153, %171, %189 in 1 : vector<8x16xf32>, vector<8x16xf32>, vector<8x16xf32>, vector<8x16xf32> -> vector<8x64xf32>
    %191 = tpu.concatenate %113, %190 in 0 : vector<8x64xf32>, vector<8x64xf32> -> vector<16x64xf32>
    %c0_57 = arith.constant 0 : index
    %c0_58 = arith.constant 0 : index
    %c0_59 = arith.constant 0 : index
    %192 = vector.load %arg5[%c0_57, %c0_58, %c0_59] : memref<2x64x64xbf16, #tpu.memory_space<vmem>>, vector<1x64x64xbf16>
    %193 = vector.shape_cast %192 : vector<1x64x64xbf16> to vector<64x64xbf16>
    %c0_60 = arith.constant 0 : index
    %c0_61 = arith.constant 0 : index
    %c0_62 = arith.constant 0 : index
    %194 = vector.load %arg6[%c0_60, %c0_61, %c0_62] : memref<2x1x64xf32, #tpu.memory_space<vmem>>, vector<1x1x64xf32>
    %195 = vector.shape_cast %194 : vector<1x1x64xf32> to vector<1x64xf32>
    %196 = arith.truncf %191 : vector<16x64xf32> to vector<16x64xbf16>
    %cst_63 = arith.constant dense<0.000000e+00> : vector<16x64xf32>
    %197 = tpu.matmul %196, %193, %cst_63 {dimension_numbers = #tpu.dot_dimension_numbers<[1], [0], [0], [1], [0, 0, 1, 1], [], []>} : vector<16x64xbf16>, vector<64x64xbf16>, vector<16x64xf32> -> vector<16x64xf32>
    %198 = vector.broadcast %195 : vector<1x64xf32> to vector<16x64xf32>
    %199 = arith.addf %197, %198 : vector<16x64xf32>
    %200 = arith.addf %25, %199 : vector<16x64xf32>
    %c0_64 = arith.constant 0 : index
    %c0_65 = arith.constant 0 : index
    %c0_66 = arith.constant 0 : index
    %201 = vector.load %arg7[%c0_64, %c0_65, %c0_66] : memref<2x2x64xf32, #tpu.memory_space<vmem>>, vector<1x2x64xf32>
    %202 = vector.shape_cast %201 : vector<1x2x64xf32> to vector<2x64xf32>
    %203 = vector.extract_strided_slice %202 {offsets = [0, 0], sizes = [1, 64], strides = [1, 1]} : vector<2x64xf32> to vector<1x64xf32>
    %204 = vector.extract_strided_slice %202 {offsets = [1, 0], sizes = [1, 64], strides = [1, 1]} : vector<2x64xf32> to vector<1x64xf32>
    %cst_67 = arith.constant dense<0.000000e+00> : vector<16xf32>
    %205 = vector.multi_reduction <add>, %200, %cst_67 [1] : vector<16x64xf32> to vector<16xf32>
    %206 = vector.shape_cast %205 : vector<16xf32> to vector<16x1xf32>
    %cst_68 = arith.constant 6.400000e+01 : f32
    %207 = vector.broadcast %cst_68 : f32 to vector<16x1xf32>
    %208 = arith.divf %206, %207 : vector<16x1xf32>
    %209 = vector.broadcast %208 : vector<16x1xf32> to vector<16x64xf32>
    %210 = arith.subf %200, %209 : vector<16x64xf32>
    %211 = arith.mulf %210, %210 : vector<16x64xf32>
    %cst_69 = arith.constant dense<0.000000e+00> : vector<16xf32>
    %212 = vector.multi_reduction <add>, %211, %cst_69 [1] : vector<16x64xf32> to vector<16xf32>
    %213 = vector.shape_cast %212 : vector<16xf32> to vector<16x1xf32>
    %cst_70 = arith.constant 6.400000e+01 : f32
    %214 = vector.broadcast %cst_70 : f32 to vector<16x1xf32>
    %215 = arith.divf %213, %214 : vector<16x1xf32>
    %216 = vector.broadcast %208 : vector<16x1xf32> to vector<16x64xf32>
    %217 = arith.subf %200, %216 : vector<16x64xf32>
    %cst_71 = arith.constant 9.99999974E-6 : f32
    %218 = vector.broadcast %cst_71 : f32 to vector<16x1xf32>
    %219 = arith.addf %215, %218 : vector<16x1xf32>
    %220 = math.rsqrt %219 : vector<16x1xf32>
    %221 = vector.broadcast %220 : vector<16x1xf32> to vector<16x64xf32>
    %222 = arith.mulf %217, %221 : vector<16x64xf32>
    %223 = vector.broadcast %203 : vector<1x64xf32> to vector<16x64xf32>
    %224 = arith.mulf %222, %223 : vector<16x64xf32>
    %225 = vector.broadcast %204 : vector<1x64xf32> to vector<16x64xf32>
    %226 = arith.addf %224, %225 : vector<16x64xf32>
    %c0_72 = arith.constant 0 : index
    %c0_73 = arith.constant 0 : index
    %c0_74 = arith.constant 0 : index
    %227 = vector.load %arg8[%c0_72, %c0_73, %c0_74] : memref<2x64x128xbf16, #tpu.memory_space<vmem>>, vector<1x64x128xbf16>
    %228 = vector.shape_cast %227 : vector<1x64x128xbf16> to vector<64x128xbf16>
    %c0_75 = arith.constant 0 : index
    %c0_76 = arith.constant 0 : index
    %c0_77 = arith.constant 0 : index
    %229 = vector.load %arg9[%c0_75, %c0_76, %c0_77] : memref<2x1x128xf32, #tpu.memory_space<vmem>>, vector<1x1x128xf32>
    %230 = vector.shape_cast %229 : vector<1x1x128xf32> to vector<1x128xf32>
    %231 = arith.truncf %226 : vector<16x64xf32> to vector<16x64xbf16>
    %cst_78 = arith.constant dense<0.000000e+00> : vector<16x128xf32>
    %232 = tpu.matmul %231, %228, %cst_78 {dimension_numbers = #tpu.dot_dimension_numbers<[1], [0], [0], [1], [0, 0, 1, 1], [], []>} : vector<16x64xbf16>, vector<64x128xbf16>, vector<16x128xf32> -> vector<16x128xf32>
    %233 = vector.broadcast %230 : vector<1x128xf32> to vector<16x128xf32>
    %234 = arith.addf %232, %233 : vector<16x128xf32>
    %235 = arith.mulf %234, %234 : vector<16x128xf32>
    %236 = arith.mulf %234, %235 : vector<16x128xf32>
    %cst_79 = arith.constant 4.471500e-02 : f32
    %237 = vector.broadcast %cst_79 : f32 to vector<16x128xf32>
    %238 = arith.mulf %237, %236 : vector<16x128xf32>
    %239 = arith.addf %234, %238 : vector<16x128xf32>
    %cst_80 = arith.constant 0.797884583 : f32
    %240 = vector.broadcast %cst_80 : f32 to vector<16x128xf32>
    %241 = arith.mulf %240, %239 : vector<16x128xf32>
    %242 = math.tanh %241 : vector<16x128xf32>
    %cst_81 = arith.constant 1.000000e+00 : f32
    %243 = vector.broadcast %cst_81 : f32 to vector<16x128xf32>
    %244 = arith.addf %243, %242 : vector<16x128xf32>
    %cst_82 = arith.constant 5.000000e-01 : f32
    %245 = vector.broadcast %cst_82 : f32 to vector<16x128xf32>
    %246 = arith.mulf %245, %244 : vector<16x128xf32>
    %247 = arith.mulf %234, %246 : vector<16x128xf32>
    %c0_83 = arith.constant 0 : index
    %c0_84 = arith.constant 0 : index
    %c0_85 = arith.constant 0 : index
    %248 = vector.load %arg10[%c0_83, %c0_84, %c0_85] : memref<2x128x64xbf16, #tpu.memory_space<vmem>>, vector<1x128x64xbf16>
    %249 = vector.shape_cast %248 : vector<1x128x64xbf16> to vector<128x64xbf16>
    %c0_86 = arith.constant 0 : index
    %c0_87 = arith.constant 0 : index
    %c0_88 = arith.constant 0 : index
    %250 = vector.load %arg11[%c0_86, %c0_87, %c0_88] : memref<2x1x64xf32, #tpu.memory_space<vmem>>, vector<1x1x64xf32>
    %251 = vector.shape_cast %250 : vector<1x1x64xf32> to vector<1x64xf32>
    %252 = arith.truncf %247 : vector<16x128xf32> to vector<16x128xbf16>
    %cst_89 = arith.constant dense<0.000000e+00> : vector<16x64xf32>
    %253 = tpu.matmul %252, %249, %cst_89 {dimension_numbers = #tpu.dot_dimension_numbers<[1], [0], [0], [1], [0, 0, 1, 1], [], []>} : vector<16x128xbf16>, vector<128x64xbf16>, vector<16x64xf32> -> vector<16x64xf32>
    %254 = vector.broadcast %251 : vector<1x64xf32> to vector<16x64xf32>
    %255 = arith.addf %253, %254 : vector<16x64xf32>
    %256 = arith.addf %226, %255 : vector<16x64xf32>
    %c0_90 = arith.constant 0 : index
    %c0_91 = arith.constant 0 : index
    %c0_92 = arith.constant 0 : index
    %257 = vector.load %arg12[%c0_90, %c0_91, %c0_92] : memref<2x2x64xf32, #tpu.memory_space<vmem>>, vector<1x2x64xf32>
    %258 = vector.shape_cast %257 : vector<1x2x64xf32> to vector<2x64xf32>
    %259 = vector.extract_strided_slice %258 {offsets = [0, 0], sizes = [1, 64], strides = [1, 1]} : vector<2x64xf32> to vector<1x64xf32>
    %260 = vector.extract_strided_slice %258 {offsets = [1, 0], sizes = [1, 64], strides = [1, 1]} : vector<2x64xf32> to vector<1x64xf32>
    %cst_93 = arith.constant dense<0.000000e+00> : vector<16xf32>
    %261 = vector.multi_reduction <add>, %256, %cst_93 [1] : vector<16x64xf32> to vector<16xf32>
    %262 = vector.shape_cast %261 : vector<16xf32> to vector<16x1xf32>
    %cst_94 = arith.constant 6.400000e+01 : f32
    %263 = vector.broadcast %cst_94 : f32 to vector<16x1xf32>
    %264 = arith.divf %262, %263 : vector<16x1xf32>
    %265 = vector.broadcast %264 : vector<16x1xf32> to vector<16x64xf32>
    %266 = arith.subf %256, %265 : vector<16x64xf32>
    %267 = arith.mulf %266, %266 : vector<16x64xf32>
    %cst_95 = arith.constant dense<0.000000e+00> : vector<16xf32>
    %268 = vector.multi_reduction <add>, %267, %cst_95 [1] : vector<16x64xf32> to vector<16xf32>
    %269 = vector.shape_cast %268 : vector<16xf32> to vector<16x1xf32>
    %cst_96 = arith.constant 6.400000e+01 : f32
    %270 = vector.broadcast %cst_96 : f32 to vector<16x1xf32>
    %271 = arith.divf %269, %270 : vector<16x1xf32>
    %272 = vector.broadcast %264 : vector<16x1xf32> to vector<16x64xf32>
    %273 = arith.subf %256, %272 : vector<16x64xf32>
    %cst_97 = arith.constant 9.99999974E-6 : f32
    %274 = vector.broadcast %cst_97 : f32 to vector<16x1xf32>
    %275 = arith.addf %271, %274 : vector<16x1xf32>
    %276 = math.rsqrt %275 : vector<16x1xf32>
    %277 = vector.broadcast %276 : vector<16x1xf32> to vector<16x64xf32>
    %278 = arith.mulf %273, %277 : vector<16x64xf32>
    %279 = vector.broadcast %259 : vector<1x64xf32> to vector<16x64xf32>
    %280 = arith.mulf %278, %279 : vector<16x64xf32>
    %281 = vector.broadcast %260 : vector<1x64xf32> to vector<16x64xf32>
    %282 = arith.addf %280, %281 : vector<16x64xf32>
    %c1_98 = arith.constant 1 : index
    %c0_99 = arith.constant 0 : index
    %c0_100 = arith.constant 0 : index
    %283 = vector.load %arg3[%c1_98, %c0_99, %c0_100] : memref<2x64x192xbf16, #tpu.memory_space<vmem>>, vector<1x64x192xbf16>
    %284 = vector.shape_cast %283 : vector<1x64x192xbf16> to vector<64x192xbf16>
    %c1_101 = arith.constant 1 : index
    %c0_102 = arith.constant 0 : index
    %c0_103 = arith.constant 0 : index
    %285 = vector.load %arg4[%c1_101, %c0_102, %c0_103] : memref<2x1x192xf32, #tpu.memory_space<vmem>>, vector<1x1x192xf32>
    %286 = vector.shape_cast %285 : vector<1x1x192xf32> to vector<1x192xf32>
    %287 = arith.truncf %282 : vector<16x64xf32> to vector<16x64xbf16>
    %cst_104 = arith.constant dense<0.000000e+00> : vector<16x192xf32>
    %288 = tpu.matmul %287, %284, %cst_104 {dimension_numbers = #tpu.dot_dimension_numbers<[1], [0], [0], [1], [0, 0, 1, 1], [], []>} : vector<16x64xbf16>, vector<64x192xbf16>, vector<16x192xf32> -> vector<16x192xf32>
    %289 = vector.broadcast %286 : vector<1x192xf32> to vector<16x192xf32>
    %290 = arith.addf %288, %289 : vector<16x192xf32>
    %291 = vector.extract_strided_slice %290 {offsets = [0, 0], sizes = [16, 64], strides = [1, 1]} : vector<16x192xf32> to vector<16x64xf32>
    %292 = vector.extract_strided_slice %290 {offsets = [0, 64], sizes = [16, 64], strides = [1, 1]} : vector<16x192xf32> to vector<16x64xf32>
    %293 = vector.extract_strided_slice %290 {offsets = [0, 128], sizes = [16, 64], strides = [1, 1]} : vector<16x192xf32> to vector<16x64xf32>
    %c0_105 = arith.constant 0 : index
    %c0_106 = arith.constant 0 : index
    %294 = vector.load %arg1[%c0_105, %c0_106] : memref<2x8xf32, #tpu.memory_space<vmem>>, vector<1x8xf32>
    %295 = vector.extract_strided_slice %291 {offsets = [0, 0], sizes = [8, 64], strides = [1, 1]} : vector<16x64xf32> to vector<8x64xf32>
    %296 = vector.extract_strided_slice %292 {offsets = [0, 0], sizes = [8, 64], strides = [1, 1]} : vector<16x64xf32> to vector<8x64xf32>
    %297 = vector.extract_strided_slice %293 {offsets = [0, 0], sizes = [8, 64], strides = [1, 1]} : vector<16x64xf32> to vector<8x64xf32>
    %298 = vector.extract_strided_slice %295 {offsets = [0, 0], sizes = [8, 16], strides = [1, 1]} : vector<8x64xf32> to vector<8x16xf32>
    %299 = vector.extract_strided_slice %296 {offsets = [0, 0], sizes = [8, 16], strides = [1, 1]} : vector<8x64xf32> to vector<8x16xf32>
    %300 = vector.extract_strided_slice %297 {offsets = [0, 0], sizes = [8, 16], strides = [1, 1]} : vector<8x64xf32> to vector<8x16xf32>
    %cst_107 = arith.constant dense<0.000000e+00> : vector<8x8xf32>
    %301 = tpu.matmul %298, %299, %cst_107 {dimension_numbers = #tpu.dot_dimension_numbers<[1], [1], [0], [0], [0, 0, 1, 0], [], []>} : vector<8x16xf32>, vector<8x16xf32>, vector<8x8xf32> -> vector<8x8xf32>
    %cst_108 = arith.constant 2.500000e-01 : f32
    %302 = vector.broadcast %cst_108 : f32 to vector<8x8xf32>
    %303 = arith.mulf %301, %302 : vector<8x8xf32>
    %304 = vector.broadcast %294 : vector<1x8xf32> to vector<8x8xf32>
    %305 = arith.addf %303, %304 : vector<8x8xf32>
    %cst_109 = arith.constant dense<0xFF800000> : vector<8xf32>
    %306 = vector.multi_reduction <maximumf>, %305, %cst_109 [1] : vector<8x8xf32> to vector<8xf32>
    %307 = vector.shape_cast %306 : vector<8xf32> to vector<8x1xf32>
    %308 = vector.broadcast %307 : vector<8x1xf32> to vector<8x8xf32>
    %309 = arith.subf %305, %308 : vector<8x8xf32>
    %310 = math.exp %309 : vector<8x8xf32>
    %cst_110 = arith.constant dense<0.000000e+00> : vector<8xf32>
    %311 = vector.multi_reduction <add>, %310, %cst_110 [1] : vector<8x8xf32> to vector<8xf32>
    %312 = vector.shape_cast %311 : vector<8xf32> to vector<8x1xf32>
    %313 = vector.broadcast %312 : vector<8x1xf32> to vector<8x8xf32>
    %314 = arith.divf %310, %313 : vector<8x8xf32>
    %cst_111 = arith.constant dense<0.000000e+00> : vector<8x16xf32>
    %315 = tpu.matmul %314, %300, %cst_111 {dimension_numbers = #tpu.dot_dimension_numbers<[1], [0], [0], [1], [0, 0, 1, 1], [], []>} : vector<8x8xf32>, vector<8x16xf32>, vector<8x16xf32> -> vector<8x16xf32>
    %316 = vector.extract_strided_slice %295 {offsets = [0, 16], sizes = [8, 16], strides = [1, 1]} : vector<8x64xf32> to vector<8x16xf32>
    %317 = vector.extract_strided_slice %296 {offsets = [0, 16], sizes = [8, 16], strides = [1, 1]} : vector<8x64xf32> to vector<8x16xf32>
    %318 = vector.extract_strided_slice %297 {offsets = [0, 16], sizes = [8, 16], strides = [1, 1]} : vector<8x64xf32> to vector<8x16xf32>
    %cst_112 = arith.constant dense<0.000000e+00> : vector<8x8xf32>
    %319 = tpu.matmul %316, %317, %cst_112 {dimension_numbers = #tpu.dot_dimension_numbers<[1], [1], [0], [0], [0, 0, 1, 0], [], []>} : vector<8x16xf32>, vector<8x16xf32>, vector<8x8xf32> -> vector<8x8xf32>
    %cst_113 = arith.constant 2.500000e-01 : f32
    %320 = vector.broadcast %cst_113 : f32 to vector<8x8xf32>
    %321 = arith.mulf %319, %320 : vector<8x8xf32>
    %322 = vector.broadcast %294 : vector<1x8xf32> to vector<8x8xf32>
    %323 = arith.addf %321, %322 : vector<8x8xf32>
    %cst_114 = arith.constant dense<0xFF800000> : vector<8xf32>
    %324 = vector.multi_reduction <maximumf>, %323, %cst_114 [1] : vector<8x8xf32> to vector<8xf32>
    %325 = vector.shape_cast %324 : vector<8xf32> to vector<8x1xf32>
    %326 = vector.broadcast %325 : vector<8x1xf32> to vector<8x8xf32>
    %327 = arith.subf %323, %326 : vector<8x8xf32>
    %328 = math.exp %327 : vector<8x8xf32>
    %cst_115 = arith.constant dense<0.000000e+00> : vector<8xf32>
    %329 = vector.multi_reduction <add>, %328, %cst_115 [1] : vector<8x8xf32> to vector<8xf32>
    %330 = vector.shape_cast %329 : vector<8xf32> to vector<8x1xf32>
    %331 = vector.broadcast %330 : vector<8x1xf32> to vector<8x8xf32>
    %332 = arith.divf %328, %331 : vector<8x8xf32>
    %cst_116 = arith.constant dense<0.000000e+00> : vector<8x16xf32>
    %333 = tpu.matmul %332, %318, %cst_116 {dimension_numbers = #tpu.dot_dimension_numbers<[1], [0], [0], [1], [0, 0, 1, 1], [], []>} : vector<8x8xf32>, vector<8x16xf32>, vector<8x16xf32> -> vector<8x16xf32>
    %334 = vector.extract_strided_slice %295 {offsets = [0, 32], sizes = [8, 16], strides = [1, 1]} : vector<8x64xf32> to vector<8x16xf32>
    %335 = vector.extract_strided_slice %296 {offsets = [0, 32], sizes = [8, 16], strides = [1, 1]} : vector<8x64xf32> to vector<8x16xf32>
    %336 = vector.extract_strided_slice %297 {offsets = [0, 32], sizes = [8, 16], strides = [1, 1]} : vector<8x64xf32> to vector<8x16xf32>
    %cst_117 = arith.constant dense<0.000000e+00> : vector<8x8xf32>
    %337 = tpu.matmul %334, %335, %cst_117 {dimension_numbers = #tpu.dot_dimension_numbers<[1], [1], [0], [0], [0, 0, 1, 0], [], []>} : vector<8x16xf32>, vector<8x16xf32>, vector<8x8xf32> -> vector<8x8xf32>
    %cst_118 = arith.constant 2.500000e-01 : f32
    %338 = vector.broadcast %cst_118 : f32 to vector<8x8xf32>
    %339 = arith.mulf %337, %338 : vector<8x8xf32>
    %340 = vector.broadcast %294 : vector<1x8xf32> to vector<8x8xf32>
    %341 = arith.addf %339, %340 : vector<8x8xf32>
    %cst_119 = arith.constant dense<0xFF800000> : vector<8xf32>
    %342 = vector.multi_reduction <maximumf>, %341, %cst_119 [1] : vector<8x8xf32> to vector<8xf32>
    %343 = vector.shape_cast %342 : vector<8xf32> to vector<8x1xf32>
    %344 = vector.broadcast %343 : vector<8x1xf32> to vector<8x8xf32>
    %345 = arith.subf %341, %344 : vector<8x8xf32>
    %346 = math.exp %345 : vector<8x8xf32>
    %cst_120 = arith.constant dense<0.000000e+00> : vector<8xf32>
    %347 = vector.multi_reduction <add>, %346, %cst_120 [1] : vector<8x8xf32> to vector<8xf32>
    %348 = vector.shape_cast %347 : vector<8xf32> to vector<8x1xf32>
    %349 = vector.broadcast %348 : vector<8x1xf32> to vector<8x8xf32>
    %350 = arith.divf %346, %349 : vector<8x8xf32>
    %cst_121 = arith.constant dense<0.000000e+00> : vector<8x16xf32>
    %351 = tpu.matmul %350, %336, %cst_121 {dimension_numbers = #tpu.dot_dimension_numbers<[1], [0], [0], [1], [0, 0, 1, 1], [], []>} : vector<8x8xf32>, vector<8x16xf32>, vector<8x16xf32> -> vector<8x16xf32>
    %352 = vector.extract_strided_slice %295 {offsets = [0, 48], sizes = [8, 16], strides = [1, 1]} : vector<8x64xf32> to vector<8x16xf32>
    %353 = vector.extract_strided_slice %296 {offsets = [0, 48], sizes = [8, 16], strides = [1, 1]} : vector<8x64xf32> to vector<8x16xf32>
    %354 = vector.extract_strided_slice %297 {offsets = [0, 48], sizes = [8, 16], strides = [1, 1]} : vector<8x64xf32> to vector<8x16xf32>
    %cst_122 = arith.constant dense<0.000000e+00> : vector<8x8xf32>
    %355 = tpu.matmul %352, %353, %cst_122 {dimension_numbers = #tpu.dot_dimension_numbers<[1], [1], [0], [0], [0, 0, 1, 0], [], []>} : vector<8x16xf32>, vector<8x16xf32>, vector<8x8xf32> -> vector<8x8xf32>
    %cst_123 = arith.constant 2.500000e-01 : f32
    %356 = vector.broadcast %cst_123 : f32 to vector<8x8xf32>
    %357 = arith.mulf %355, %356 : vector<8x8xf32>
    %358 = vector.broadcast %294 : vector<1x8xf32> to vector<8x8xf32>
    %359 = arith.addf %357, %358 : vector<8x8xf32>
    %cst_124 = arith.constant dense<0xFF800000> : vector<8xf32>
    %360 = vector.multi_reduction <maximumf>, %359, %cst_124 [1] : vector<8x8xf32> to vector<8xf32>
    %361 = vector.shape_cast %360 : vector<8xf32> to vector<8x1xf32>
    %362 = vector.broadcast %361 : vector<8x1xf32> to vector<8x8xf32>
    %363 = arith.subf %359, %362 : vector<8x8xf32>
    %364 = math.exp %363 : vector<8x8xf32>
    %cst_125 = arith.constant dense<0.000000e+00> : vector<8xf32>
    %365 = vector.multi_reduction <add>, %364, %cst_125 [1] : vector<8x8xf32> to vector<8xf32>
    %366 = vector.shape_cast %365 : vector<8xf32> to vector<8x1xf32>
    %367 = vector.broadcast %366 : vector<8x1xf32> to vector<8x8xf32>
    %368 = arith.divf %364, %367 : vector<8x8xf32>
    %cst_126 = arith.constant dense<0.000000e+00> : vector<8x16xf32>
    %369 = tpu.matmul %368, %354, %cst_126 {dimension_numbers = #tpu.dot_dimension_numbers<[1], [0], [0], [1], [0, 0, 1, 1], [], []>} : vector<8x8xf32>, vector<8x16xf32>, vector<8x16xf32> -> vector<8x16xf32>
    %370 = tpu.concatenate %315, %333, %351, %369 in 1 : vector<8x16xf32>, vector<8x16xf32>, vector<8x16xf32>, vector<8x16xf32> -> vector<8x64xf32>
    %c1_127 = arith.constant 1 : index
    %c0_128 = arith.constant 0 : index
    %371 = vector.load %arg1[%c1_127, %c0_128] : memref<2x8xf32, #tpu.memory_space<vmem>>, vector<1x8xf32>
    %372 = vector.extract_strided_slice %291 {offsets = [8, 0], sizes = [8, 64], strides = [1, 1]} : vector<16x64xf32> to vector<8x64xf32>
    %373 = vector.extract_strided_slice %292 {offsets = [8, 0], sizes = [8, 64], strides = [1, 1]} : vector<16x64xf32> to vector<8x64xf32>
    %374 = vector.extract_strided_slice %293 {offsets = [8, 0], sizes = [8, 64], strides = [1, 1]} : vector<16x64xf32> to vector<8x64xf32>
    %375 = vector.extract_strided_slice %372 {offsets = [0, 0], sizes = [8, 16], strides = [1, 1]} : vector<8x64xf32> to vector<8x16xf32>
    %376 = vector.extract_strided_slice %373 {offsets = [0, 0], sizes = [8, 16], strides = [1, 1]} : vector<8x64xf32> to vector<8x16xf32>
    %377 = vector.extract_strided_slice %374 {offsets = [0, 0], sizes = [8, 16], strides = [1, 1]} : vector<8x64xf32> to vector<8x16xf32>
    %cst_129 = arith.constant dense<0.000000e+00> : vector<8x8xf32>
    %378 = tpu.matmul %375, %376, %cst_129 {dimension_numbers = #tpu.dot_dimension_numbers<[1], [1], [0], [0], [0, 0, 1, 0], [], []>} : vector<8x16xf32>, vector<8x16xf32>, vector<8x8xf32> -> vector<8x8xf32>
    %cst_130 = arith.constant 2.500000e-01 : f32
    %379 = vector.broadcast %cst_130 : f32 to vector<8x8xf32>
    %380 = arith.mulf %378, %379 : vector<8x8xf32>
    %381 = vector.broadcast %371 : vector<1x8xf32> to vector<8x8xf32>
    %382 = arith.addf %380, %381 : vector<8x8xf32>
    %cst_131 = arith.constant dense<0xFF800000> : vector<8xf32>
    %383 = vector.multi_reduction <maximumf>, %382, %cst_131 [1] : vector<8x8xf32> to vector<8xf32>
    %384 = vector.shape_cast %383 : vector<8xf32> to vector<8x1xf32>
    %385 = vector.broadcast %384 : vector<8x1xf32> to vector<8x8xf32>
    %386 = arith.subf %382, %385 : vector<8x8xf32>
    %387 = math.exp %386 : vector<8x8xf32>
    %cst_132 = arith.constant dense<0.000000e+00> : vector<8xf32>
    %388 = vector.multi_reduction <add>, %387, %cst_132 [1] : vector<8x8xf32> to vector<8xf32>
    %389 = vector.shape_cast %388 : vector<8xf32> to vector<8x1xf32>
    %390 = vector.broadcast %389 : vector<8x1xf32> to vector<8x8xf32>
    %391 = arith.divf %387, %390 : vector<8x8xf32>
    %cst_133 = arith.constant dense<0.000000e+00> : vector<8x16xf32>
    %392 = tpu.matmul %391, %377, %cst_133 {dimension_numbers = #tpu.dot_dimension_numbers<[1], [0], [0], [1], [0, 0, 1, 1], [], []>} : vector<8x8xf32>, vector<8x16xf32>, vector<8x16xf32> -> vector<8x16xf32>
    %393 = vector.extract_strided_slice %372 {offsets = [0, 16], sizes = [8, 16], strides = [1, 1]} : vector<8x64xf32> to vector<8x16xf32>
    %394 = vector.extract_strided_slice %373 {offsets = [0, 16], sizes = [8, 16], strides = [1, 1]} : vector<8x64xf32> to vector<8x16xf32>
    %395 = vector.extract_strided_slice %374 {offsets = [0, 16], sizes = [8, 16], strides = [1, 1]} : vector<8x64xf32> to vector<8x16xf32>
    %cst_134 = arith.constant dense<0.000000e+00> : vector<8x8xf32>
    %396 = tpu.matmul %393, %394, %cst_134 {dimension_numbers = #tpu.dot_dimension_numbers<[1], [1], [0], [0], [0, 0, 1, 0], [], []>} : vector<8x16xf32>, vector<8x16xf32>, vector<8x8xf32> -> vector<8x8xf32>
    %cst_135 = arith.constant 2.500000e-01 : f32
    %397 = vector.broadcast %cst_135 : f32 to vector<8x8xf32>
    %398 = arith.mulf %396, %397 : vector<8x8xf32>
    %399 = vector.broadcast %371 : vector<1x8xf32> to vector<8x8xf32>
    %400 = arith.addf %398, %399 : vector<8x8xf32>
    %cst_136 = arith.constant dense<0xFF800000> : vector<8xf32>
    %401 = vector.multi_reduction <maximumf>, %400, %cst_136 [1] : vector<8x8xf32> to vector<8xf32>
    %402 = vector.shape_cast %401 : vector<8xf32> to vector<8x1xf32>
    %403 = vector.broadcast %402 : vector<8x1xf32> to vector<8x8xf32>
    %404 = arith.subf %400, %403 : vector<8x8xf32>
    %405 = math.exp %404 : vector<8x8xf32>
    %cst_137 = arith.constant dense<0.000000e+00> : vector<8xf32>
    %406 = vector.multi_reduction <add>, %405, %cst_137 [1] : vector<8x8xf32> to vector<8xf32>
    %407 = vector.shape_cast %406 : vector<8xf32> to vector<8x1xf32>
    %408 = vector.broadcast %407 : vector<8x1xf32> to vector<8x8xf32>
    %409 = arith.divf %405, %408 : vector<8x8xf32>
    %cst_138 = arith.constant dense<0.000000e+00> : vector<8x16xf32>
    %410 = tpu.matmul %409, %395, %cst_138 {dimension_numbers = #tpu.dot_dimension_numbers<[1], [0], [0], [1], [0, 0, 1, 1], [], []>} : vector<8x8xf32>, vector<8x16xf32>, vector<8x16xf32> -> vector<8x16xf32>
    %411 = vector.extract_strided_slice %372 {offsets = [0, 32], sizes = [8, 16], strides = [1, 1]} : vector<8x64xf32> to vector<8x16xf32>
    %412 = vector.extract_strided_slice %373 {offsets = [0, 32], sizes = [8, 16], strides = [1, 1]} : vector<8x64xf32> to vector<8x16xf32>
    %413 = vector.extract_strided_slice %374 {offsets = [0, 32], sizes = [8, 16], strides = [1, 1]} : vector<8x64xf32> to vector<8x16xf32>
    %cst_139 = arith.constant dense<0.000000e+00> : vector<8x8xf32>
    %414 = tpu.matmul %411, %412, %cst_139 {dimension_numbers = #tpu.dot_dimension_numbers<[1], [1], [0], [0], [0, 0, 1, 0], [], []>} : vector<8x16xf32>, vector<8x16xf32>, vector<8x8xf32> -> vector<8x8xf32>
    %cst_140 = arith.constant 2.500000e-01 : f32
    %415 = vector.broadcast %cst_140 : f32 to vector<8x8xf32>
    %416 = arith.mulf %414, %415 : vector<8x8xf32>
    %417 = vector.broadcast %371 : vector<1x8xf32> to vector<8x8xf32>
    %418 = arith.addf %416, %417 : vector<8x8xf32>
    %cst_141 = arith.constant dense<0xFF800000> : vector<8xf32>
    %419 = vector.multi_reduction <maximumf>, %418, %cst_141 [1] : vector<8x8xf32> to vector<8xf32>
    %420 = vector.shape_cast %419 : vector<8xf32> to vector<8x1xf32>
    %421 = vector.broadcast %420 : vector<8x1xf32> to vector<8x8xf32>
    %422 = arith.subf %418, %421 : vector<8x8xf32>
    %423 = math.exp %422 : vector<8x8xf32>
    %cst_142 = arith.constant dense<0.000000e+00> : vector<8xf32>
    %424 = vector.multi_reduction <add>, %423, %cst_142 [1] : vector<8x8xf32> to vector<8xf32>
    %425 = vector.shape_cast %424 : vector<8xf32> to vector<8x1xf32>
    %426 = vector.broadcast %425 : vector<8x1xf32> to vector<8x8xf32>
    %427 = arith.divf %423, %426 : vector<8x8xf32>
    %cst_143 = arith.constant dense<0.000000e+00> : vector<8x16xf32>
    %428 = tpu.matmul %427, %413, %cst_143 {dimension_numbers = #tpu.dot_dimension_numbers<[1], [0], [0], [1], [0, 0, 1, 1], [], []>} : vector<8x8xf32>, vector<8x16xf32>, vector<8x16xf32> -> vector<8x16xf32>
    %429 = vector.extract_strided_slice %372 {offsets = [0, 48], sizes = [8, 16], strides = [1, 1]} : vector<8x64xf32> to vector<8x16xf32>
    %430 = vector.extract_strided_slice %373 {offsets = [0, 48], sizes = [8, 16], strides = [1, 1]} : vector<8x64xf32> to vector<8x16xf32>
    %431 = vector.extract_strided_slice %374 {offsets = [0, 48], sizes = [8, 16], strides = [1, 1]} : vector<8x64xf32> to vector<8x16xf32>
    %cst_144 = arith.constant dense<0.000000e+00> : vector<8x8xf32>
    %432 = tpu.matmul %429, %430, %cst_144 {dimension_numbers = #tpu.dot_dimension_numbers<[1], [1], [0], [0], [0, 0, 1, 0], [], []>} : vector<8x16xf32>, vector<8x16xf32>, vector<8x8xf32> -> vector<8x8xf32>
    %cst_145 = arith.constant 2.500000e-01 : f32
    %433 = vector.broadcast %cst_145 : f32 to vector<8x8xf32>
    %434 = arith.mulf %432, %433 : vector<8x8xf32>
    %435 = vector.broadcast %371 : vector<1x8xf32> to vector<8x8xf32>
    %436 = arith.addf %434, %435 : vector<8x8xf32>
    %cst_146 = arith.constant dense<0xFF800000> : vector<8xf32>
    %437 = vector.multi_reduction <maximumf>, %436, %cst_146 [1] : vector<8x8xf32> to vector<8xf32>
    %438 = vector.shape_cast %437 : vector<8xf32> to vector<8x1xf32>
    %439 = vector.broadcast %438 : vector<8x1xf32> to vector<8x8xf32>
    %440 = arith.subf %436, %439 : vector<8x8xf32>
    %441 = math.exp %440 : vector<8x8xf32>
    %cst_147 = arith.constant dense<0.000000e+00> : vector<8xf32>
    %442 = vector.multi_reduction <add>, %441, %cst_147 [1] : vector<8x8xf32> to vector<8xf32>
    %443 = vector.shape_cast %442 : vector<8xf32> to vector<8x1xf32>
    %444 = vector.broadcast %443 : vector<8x1xf32> to vector<8x8xf32>
    %445 = arith.divf %441, %444 : vector<8x8xf32>
    %cst_148 = arith.constant dense<0.000000e+00> : vector<8x16xf32>
    %446 = tpu.matmul %445, %431, %cst_148 {dimension_numbers = #tpu.dot_dimension_numbers<[1], [0], [0], [1], [0, 0, 1, 1], [], []>} : vector<8x8xf32>, vector<8x16xf32>, vector<8x16xf32> -> vector<8x16xf32>
    %447 = tpu.concatenate %392, %410, %428, %446 in 1 : vector<8x16xf32>, vector<8x16xf32>, vector<8x16xf32>, vector<8x16xf32> -> vector<8x64xf32>
    %448 = tpu.concatenate %370, %447 in 0 : vector<8x64xf32>, vector<8x64xf32> -> vector<16x64xf32>
    %c1_149 = arith.constant 1 : index
    %c0_150 = arith.constant 0 : index
    %c0_151 = arith.constant 0 : index
    %449 = vector.load %arg5[%c1_149, %c0_150, %c0_151] : memref<2x64x64xbf16, #tpu.memory_space<vmem>>, vector<1x64x64xbf16>
    %450 = vector.shape_cast %449 : vector<1x64x64xbf16> to vector<64x64xbf16>
    %c1_152 = arith.constant 1 : index
    %c0_153 = arith.constant 0 : index
    %c0_154 = arith.constant 0 : index
    %451 = vector.load %arg6[%c1_152, %c0_153, %c0_154] : memref<2x1x64xf32, #tpu.memory_space<vmem>>, vector<1x1x64xf32>
    %452 = vector.shape_cast %451 : vector<1x1x64xf32> to vector<1x64xf32>
    %453 = arith.truncf %448 : vector<16x64xf32> to vector<16x64xbf16>
    %cst_155 = arith.constant dense<0.000000e+00> : vector<16x64xf32>
    %454 = tpu.matmul %453, %450, %cst_155 {dimension_numbers = #tpu.dot_dimension_numbers<[1], [0], [0], [1], [0, 0, 1, 1], [], []>} : vector<16x64xbf16>, vector<64x64xbf16>, vector<16x64xf32> -> vector<16x64xf32>
    %455 = vector.broadcast %452 : vector<1x64xf32> to vector<16x64xf32>
    %456 = arith.addf %454, %455 : vector<16x64xf32>
    %457 = arith.addf %282, %456 : vector<16x64xf32>
    %c1_156 = arith.constant 1 : index
    %c0_157 = arith.constant 0 : index
    %c0_158 = arith.constant 0 : index
    %458 = vector.load %arg7[%c1_156, %c0_157, %c0_158] : memref<2x2x64xf32, #tpu.memory_space<vmem>>, vector<1x2x64xf32>
    %459 = vector.shape_cast %458 : vector<1x2x64xf32> to vector<2x64xf32>
    %460 = vector.extract_strided_slice %459 {offsets = [0, 0], sizes = [1, 64], strides = [1, 1]} : vector<2x64xf32> to vector<1x64xf32>
    %461 = vector.extract_strided_slice %459 {offsets = [1, 0], sizes = [1, 64], strides = [1, 1]} : vector<2x64xf32> to vector<1x64xf32>
    %cst_159 = arith.constant dense<0.000000e+00> : vector<16xf32>
    %462 = vector.multi_reduction <add>, %457, %cst_159 [1] : vector<16x64xf32> to vector<16xf32>
    %463 = vector.shape_cast %462 : vector<16xf32> to vector<16x1xf32>
    %cst_160 = arith.constant 6.400000e+01 : f32
    %464 = vector.broadcast %cst_160 : f32 to vector<16x1xf32>
    %465 = arith.divf %463, %464 : vector<16x1xf32>
    %466 = vector.broadcast %465 : vector<16x1xf32> to vector<16x64xf32>
    %467 = arith.subf %457, %466 : vector<16x64xf32>
    %468 = arith.mulf %467, %467 : vector<16x64xf32>
    %cst_161 = arith.constant dense<0.000000e+00> : vector<16xf32>
    %469 = vector.multi_reduction <add>, %468, %cst_161 [1] : vector<16x64xf32> to vector<16xf32>
    %470 = vector.shape_cast %469 : vector<16xf32> to vector<16x1xf32>
    %cst_162 = arith.constant 6.400000e+01 : f32
    %471 = vector.broadcast %cst_162 : f32 to vector<16x1xf32>
    %472 = arith.divf %470, %471 : vector<16x1xf32>
    %473 = vector.broadcast %465 : vector<16x1xf32> to vector<16x64xf32>
    %474 = arith.subf %457, %473 : vector<16x64xf32>
    %cst_163 = arith.constant 9.99999974E-6 : f32
    %475 = vector.broadcast %cst_163 : f32 to vector<16x1xf32>
    %476 = arith.addf %472, %475 : vector<16x1xf32>
    %477 = math.rsqrt %476 : vector<16x1xf32>
    %478 = vector.broadcast %477 : vector<16x1xf32> to vector<16x64xf32>
    %479 = arith.mulf %474, %478 : vector<16x64xf32>
    %480 = vector.broadcast %460 : vector<1x64xf32> to vector<16x64xf32>
    %481 = arith.mulf %479, %480 : vector<16x64xf32>
    %482 = vector.broadcast %461 : vector<1x64xf32> to vector<16x64xf32>
    %483 = arith.addf %481, %482 : vector<16x64xf32>
    %c1_164 = arith.constant 1 : index
    %c0_165 = arith.constant 0 : index
    %c0_166 = arith.constant 0 : index
    %484 = vector.load %arg8[%c1_164, %c0_165, %c0_166] : memref<2x64x128xbf16, #tpu.memory_space<vmem>>, vector<1x64x128xbf16>
    %485 = vector.shape_cast %484 : vector<1x64x128xbf16> to vector<64x128xbf16>
    %c1_167 = arith.constant 1 : index
    %c0_168 = arith.constant 0 : index
    %c0_169 = arith.constant 0 : index
    %486 = vector.load %arg9[%c1_167, %c0_168, %c0_169] : memref<2x1x128xf32, #tpu.memory_space<vmem>>, vector<1x1x128xf32>
    %487 = vector.shape_cast %486 : vector<1x1x128xf32> to vector<1x128xf32>
    %488 = arith.truncf %483 : vector<16x64xf32> to vector<16x64xbf16>
    %cst_170 = arith.constant dense<0.000000e+00> : vector<16x128xf32>
    %489 = tpu.matmul %488, %485, %cst_170 {dimension_numbers = #tpu.dot_dimension_numbers<[1], [0], [0], [1], [0, 0, 1, 1], [], []>} : vector<16x64xbf16>, vector<64x128xbf16>, vector<16x128xf32> -> vector<16x128xf32>
    %490 = vector.broadcast %487 : vector<1x128xf32> to vector<16x128xf32>
    %491 = arith.addf %489, %490 : vector<16x128xf32>
    %492 = arith.mulf %491, %491 : vector<16x128xf32>
    %493 = arith.mulf %491, %492 : vector<16x128xf32>
    %cst_171 = arith.constant 4.471500e-02 : f32
    %494 = vector.broadcast %cst_171 : f32 to vector<16x128xf32>
    %495 = arith.mulf %494, %493 : vector<16x128xf32>
    %496 = arith.addf %491, %495 : vector<16x128xf32>
    %cst_172 = arith.constant 0.797884583 : f32
    %497 = vector.broadcast %cst_172 : f32 to vector<16x128xf32>
    %498 = arith.mulf %497, %496 : vector<16x128xf32>
    %499 = math.tanh %498 : vector<16x128xf32>
    %cst_173 = arith.constant 1.000000e+00 : f32
    %500 = vector.broadcast %cst_173 : f32 to vector<16x128xf32>
    %501 = arith.addf %500, %499 : vector<16x128xf32>
    %cst_174 = arith.constant 5.000000e-01 : f32
    %502 = vector.broadcast %cst_174 : f32 to vector<16x128xf32>
    %503 = arith.mulf %502, %501 : vector<16x128xf32>
    %504 = arith.mulf %491, %503 : vector<16x128xf32>
    %c1_175 = arith.constant 1 : index
    %c0_176 = arith.constant 0 : index
    %c0_177 = arith.constant 0 : index
    %505 = vector.load %arg10[%c1_175, %c0_176, %c0_177] : memref<2x128x64xbf16, #tpu.memory_space<vmem>>, vector<1x128x64xbf16>
    %506 = vector.shape_cast %505 : vector<1x128x64xbf16> to vector<128x64xbf16>
    %c1_178 = arith.constant 1 : index
    %c0_179 = arith.constant 0 : index
    %c0_180 = arith.constant 0 : index
    %507 = vector.load %arg11[%c1_178, %c0_179, %c0_180] : memref<2x1x64xf32, #tpu.memory_space<vmem>>, vector<1x1x64xf32>
    %508 = vector.shape_cast %507 : vector<1x1x64xf32> to vector<1x64xf32>
    %509 = arith.truncf %504 : vector<16x128xf32> to vector<16x128xbf16>
    %cst_181 = arith.constant dense<0.000000e+00> : vector<16x64xf32>
    %510 = tpu.matmul %509, %506, %cst_181 {dimension_numbers = #tpu.dot_dimension_numbers<[1], [0], [0], [1], [0, 0, 1, 1], [], []>} : vector<16x128xbf16>, vector<128x64xbf16>, vector<16x64xf32> -> vector<16x64xf32>
    %511 = vector.broadcast %508 : vector<1x64xf32> to vector<16x64xf32>
    %512 = arith.addf %510, %511 : vector<16x64xf32>
    %513 = arith.addf %483, %512 : vector<16x64xf32>
    %c1_182 = arith.constant 1 : index
    %c0_183 = arith.constant 0 : index
    %c0_184 = arith.constant 0 : index
    %514 = vector.load %arg12[%c1_182, %c0_183, %c0_184] : memref<2x2x64xf32, #tpu.memory_space<vmem>>, vector<1x2x64xf32>
    %515 = vector.shape_cast %514 : vector<1x2x64xf32> to vector<2x64xf32>
    %516 = vector.extract_strided_slice %515 {offsets = [0, 0], sizes = [1, 64], strides = [1, 1]} : vector<2x64xf32> to vector<1x64xf32>
    %517 = vector.extract_strided_slice %515 {offsets = [1, 0], sizes = [1, 64], strides = [1, 1]} : vector<2x64xf32> to vector<1x64xf32>
    %cst_185 = arith.constant dense<0.000000e+00> : vector<16xf32>
    %518 = vector.multi_reduction <add>, %513, %cst_185 [1] : vector<16x64xf32> to vector<16xf32>
    %519 = vector.shape_cast %518 : vector<16xf32> to vector<16x1xf32>
    %cst_186 = arith.constant 6.400000e+01 : f32
    %520 = vector.broadcast %cst_186 : f32 to vector<16x1xf32>
    %521 = arith.divf %519, %520 : vector<16x1xf32>
    %522 = vector.broadcast %521 : vector<16x1xf32> to vector<16x64xf32>
    %523 = arith.subf %513, %522 : vector<16x64xf32>
    %524 = arith.mulf %523, %523 : vector<16x64xf32>
    %cst_187 = arith.constant dense<0.000000e+00> : vector<16xf32>
    %525 = vector.multi_reduction <add>, %524, %cst_187 [1] : vector<16x64xf32> to vector<16xf32>
    %526 = vector.shape_cast %525 : vector<16xf32> to vector<16x1xf32>
    %cst_188 = arith.constant 6.400000e+01 : f32
    %527 = vector.broadcast %cst_188 : f32 to vector<16x1xf32>
    %528 = arith.divf %526, %527 : vector<16x1xf32>
    %529 = vector.broadcast %521 : vector<16x1xf32> to vector<16x64xf32>
    %530 = arith.subf %513, %529 : vector<16x64xf32>
    %cst_189 = arith.constant 9.99999974E-6 : f32
    %531 = vector.broadcast %cst_189 : f32 to vector<16x1xf32>
    %532 = arith.addf %528, %531 : vector<16x1xf32>
    %533 = math.rsqrt %532 : vector<16x1xf32>
    %534 = vector.broadcast %533 : vector<16x1xf32> to vector<16x64xf32>
    %535 = arith.mulf %530, %534 : vector<16x64xf32>
    %536 = vector.broadcast %516 : vector<1x64xf32> to vector<16x64xf32>
    %537 = arith.mulf %535, %536 : vector<16x64xf32>
    %538 = vector.broadcast %517 : vector<1x64xf32> to vector<16x64xf32>
    %539 = arith.addf %537, %538 : vector<16x64xf32>
    %540 = vector.extract_strided_slice %539 {offsets = [0, 0], sizes = [1, 64], strides = [1, 1]} : vector<16x64xf32> to vector<1x64xf32>
    %541 = vector.extract_strided_slice %539 {offsets = [8, 0], sizes = [1, 64], strides = [1, 1]} : vector<16x64xf32> to vector<1x64xf32>
    %542 = tpu.concatenate %540, %541 in 0 : vector<1x64xf32>, vector<1x64xf32> -> vector<2x64xf32>
    %c0_190 = arith.constant 0 : index
    %c0_191 = arith.constant 0 : index
    %543 = vector.load %arg13[%c0_190, %c0_191] : memref<2x64xf32, #tpu.memory_space<vmem>>, vector<2x64xf32>
    %cst_192 = arith.constant dense<0.000000e+00> : vector<64xf32>
    %544 = vector.multi_reduction <add>, %542, %cst_192 [0] : vector<2x64xf32> to vector<64xf32>
    %545 = vector.shape_cast %544 : vector<64xf32> to vector<1x64xf32>
    %cst_193 = arith.constant 2.000000e+00 : f32
    %546 = vector.broadcast %cst_193 : f32 to vector<1x64xf32>
    %547 = arith.divf %545, %546 : vector<1x64xf32>
    %548 = vector.broadcast %547 : vector<1x64xf32> to vector<2x64xf32>
    %549 = arith.subf %542, %548 : vector<2x64xf32>
    %550 = arith.mulf %549, %549 : vector<2x64xf32>
    %cst_194 = arith.constant dense<0.000000e+00> : vector<64xf32>
    %551 = vector.multi_reduction <add>, %550, %cst_194 [0] : vector<2x64xf32> to vector<64xf32>
    %552 = vector.shape_cast %551 : vector<64xf32> to vector<1x64xf32>
    %cst_195 = arith.constant 2.000000e+00 : f32
    %553 = vector.broadcast %cst_195 : f32 to vector<1x64xf32>
    %554 = arith.divf %552, %553 : vector<1x64xf32>
    %555 = vector.broadcast %547 : vector<1x64xf32> to vector<2x64xf32>
    %556 = arith.subf %542, %555 : vector<2x64xf32>
    %cst_196 = arith.constant 9.99999974E-6 : f32
    %557 = vector.broadcast %cst_196 : f32 to vector<1x64xf32>
    %558 = arith.addf %554, %557 : vector<1x64xf32>
    %559 = math.rsqrt %558 : vector<1x64xf32>
    %560 = vector.broadcast %559 : vector<1x64xf32> to vector<2x64xf32>
    %561 = arith.mulf %556, %560 : vector<2x64xf32>
    %562 = vector.extract_strided_slice %543 {offsets = [0, 0], sizes = [1, 64], strides = [1, 1]} : vector<2x64xf32> to vector<1x64xf32>
    %563 = vector.broadcast %562 : vector<1x64xf32> to vector<2x64xf32>
    %564 = arith.mulf %561, %563 : vector<2x64xf32>
    %565 = vector.extract_strided_slice %543 {offsets = [1, 0], sizes = [1, 64], strides = [1, 1]} : vector<2x64xf32> to vector<1x64xf32>
    %566 = vector.broadcast %565 : vector<1x64xf32> to vector<2x64xf32>
    %567 = arith.addf %564, %566 : vector<2x64xf32>
    %c0_197 = arith.constant 0 : index
    %c0_198 = arith.constant 0 : index
    %568 = vector.load %arg14[%c0_197, %c0_198] : memref<64x128xbf16, #tpu.memory_space<vmem>>, vector<64x128xbf16>
    %c0_199 = arith.constant 0 : index
    %c0_200 = arith.constant 0 : index
    %569 = vector.load %arg15[%c0_199, %c0_200] : memref<1x128xf32, #tpu.memory_space<vmem>>, vector<1x128xf32>
    %570 = arith.truncf %567 : vector<2x64xf32> to vector<2x64xbf16>
    %cst_201 = arith.constant dense<0.000000e+00> : vector<2x128xf32>
    %571 = tpu.matmul %570, %568, %cst_201 {dimension_numbers = #tpu.dot_dimension_numbers<[1], [0], [0], [1], [0, 0, 1, 1], [], []>} : vector<2x64xbf16>, vector<64x128xbf16>, vector<2x128xf32> -> vector<2x128xf32>
    %572 = vector.broadcast %569 : vector<1x128xf32> to vector<2x128xf32>
    %573 = arith.addf %571, %572 : vector<2x128xf32>
    %c0_202 = arith.constant 0 : index
    %c0_203 = arith.constant 0 : index
    %574 = vector.load %arg16[%c0_202, %c0_203] : memref<2x128xf32, #tpu.memory_space<vmem>>, vector<2x128xf32>
    tpu.vector_store %arg16[%c0_202, %c0_203], %573 {strides = array<i32>} : memref<2x128xf32, #tpu.memory_space<vmem>>, vector<2x128xf32>,
    return
  }
}

</mosaic_0001>

<bundles_post_ra>
// kernel: tpu_custom_call.1
= control target key start
LH: loop header
LB: loop body
LE: loop exit
PB: predicated region body
PF: predicated region fallthrough
CT: control target
= control target key end

     0   :  { %s3964_s0 = inlined_call_operand.hbm [shape: f32[16,64], index: 0, kind: input, shape index: {}]   ;;  %s3965_s1 = inlined_call_operand.hbm [shape: f32[2,8], index: 1, kind: input, shape index: {}]   ;;  %s3966_s2 = inlined_call_operand.hbm [shape: f32[2,64], index: 2, kind: input, shape index: {}]   ;;  %s3967_s3 = inlined_call_operand.vmem [shape: bf16[2,64,192], index: 3, kind: input, shape index: {}]   ;;  %s3968_s4 = inlined_call_operand.hbm [shape: f32[2,1,192], index: 4, kind: input, shape index: {}]   ;;  %s3969_s5 = inlined_call_operand.vmem [shape: bf16[2,64,64], index: 5, kind: input, shape index: {}]   ;;  %s3970_s6 = inlined_call_operand.hbm [shape: f32[2,1,64], index: 6, kind: input, shape index: {}]   ;;  %s3971_s7 = inlined_call_operand.vmem [shape: f32[2,2,64], index: 7, kind: input, shape index: {}]   ;;  %s3972_s8 = inlined_call_operand.hbm [shape: bf16[2,64,128], index: 8, kind: input, shape index: {}]   ;;  %s3973_s9 = inlined_call_operand.hbm [shape: f32[2,1,128], index: 9, kind: input, shape index: {}]   ;;  %s3974_s10 = inlined_call_operand.vmem [shape: bf16[2,128,64], index: 10, kind: input, shape index: {}]   ;;  %s3975_s11 = inlined_call_operand.hbm [shape: f32[2,1,64], index: 11, kind: input, shape index: {}]   ;;  %s3976_s12 = inlined_call_operand.vmem [shape: f32[2,2,64], index: 12, kind: input, shape index: {}]   ;;  %s3977_s13 = inlined_call_operand.vmem [shape: f32[2,64], index: 13, kind: input, shape index: {}]   ;;  %s3978_s14 = inlined_call_operand.hbm [shape: bf16[64,128], index: 14, kind: input, shape index: {}]   ;;  %s3979_s15 = inlined_call_operand.vmem [shape: f32[1,128], index: 15, kind: input, shape index: {}]   ;;  %s3980_s16 = inlined_call_operand.hbm [shape: f32[2,128], index: 16, kind: output, shape index: {}]  }
   0x1   :  { %3985 = sst [smem:[#allocation24_spill]] %s3964_s0 }
   0x2   :  { %21 = vsyncpa [#allocation3], 0 }
   0x3   :  { %22 = vsyncpa [#allocation6], 0 }
   0x4   :  { %23 = vsyncpa [#allocation9], 0 }
   0x5   :  { %24 = vsyncpa [#allocation12], 0 }
   0x6   :  { %25 = vsyncpa [#allocation15], 0  ;;  %s45_s23 = sshll.u32 %s3965_s1, 4  ;;  %s46_s23 = int_to_ptr.hbm [resolvable:$true] %s45_s23 }
   0x7   :  { %26 = vsyncpa [#allocation4], 0  ;;  %s3289_s24 = smov [#allocation5]   ;;  %s68_s28 = sshll.u32 %s3968_s4, 4  ;;  %s69_s28 = int_to_ptr.hbm [resolvable:$true] %s68_s28 }
   0x8   :  { %s47_s25 = sshll.u32 %s3289_s24, 4  ;;  %s3290_s29 = smov [#allocation8]   ;;  %s48_s25 = int_to_ptr.vmem [resolvable:$true] %s47_s25 }
   0x9   :  { %50 = dma.hbm_to_vmem [thread:$0]  %s46_s23, 32, %s48_s25, [#allocation6]  }
   0xa   :  { %s70_s30 = sshll.u32 %s3290_s29, 4  ;;  %s3981_s0 = smov 32   ;;  %s71_s30 = int_to_ptr.vmem [resolvable:$true] %s70_s30 }
   0xb   :  { %s3292_s17 = smov 2   ;;  %s98_s19 = sshll.u32 %s3972_s8, 4  ;;  %s99_s19 = int_to_ptr.hbm [resolvable:$true] %s98_s19 }
   0xc   :  { %76 = dma.hbm_to_vmem [thread:$0]  %s69_s28, 64, %s71_s30, [#allocation9], %s3981_s0, %s3981_s0, %s3292_s17  }
   0xd   :  { %s3293_s20 = smov [#allocation11]   ;;  %s3983_s22 = smov 64  }
   0xe   :  { %s100_s21 = sshll.u32 %s3293_s20, 4  ;;  %s3295_s4 = smov 4   ;;  %s101_s21 = int_to_ptr.vmem [resolvable:$true] %s100_s21 }
   0xf   :  { %106 = dma.hbm_to_vmem [thread:$0]  %s99_s19, 1024, %s101_s21, [#allocation12], %s3983_s22, %s3983_s22, %s3295_s4  }
  0x10   :  { %s126_s25 = sshll.u32 %s3975_s11, 4  ;;  %s3296_s26 = smov [#allocation14]   ;;  %s127_s25 = int_to_ptr.hbm [resolvable:$true] %s126_s25 }
  0x11   :  { %s128_s27 = sshll.u32 %s3296_s26, 4  ;;  %s3986_s8 = sld [smem:[#allocation24_spill]]  ;;  %s129_s27 = int_to_ptr.vmem [resolvable:$true] %s128_s27 }
  0x12   :  { %s3297_s17 = smov 16   ;;  %s3298_s1 = smov 1  }
  0x13   :  { %134 = dma.hbm_to_vmem [thread:$0]  %s127_s25, 32, %s129_s27, [#allocation15], %s3297_s17, %s3297_s17, %s3298_s1  }
  0x14   :  { %s3299_s18 = smov [#allocation2]   ;;  %s56_s21 = sshll.u32 %s3966_s2, 4  ;;  %s57_s21 = int_to_ptr.hbm [resolvable:$true] %s56_s21 }
  0x15   :  { %s33_s19 = sshll.u32 %s3299_s18, 4  ;;  %s3300_s23 = smov 128   ;;  %s34_s19 = int_to_ptr.vmem [resolvable:$true] %s33_s19 }
  0x16   :  { %s3301_s24 = smov 8   ;;  %s3302_s26 = smov [#allocation7]  }
  0x17   :  { %s31_s30 = sshll.u32 %s3986_s8, 4  ;;  %s58_s28 = sshll.u32 %s3302_s26, 4  ;;  %s32_s30 = int_to_ptr.hbm [resolvable:$true] %s31_s30  ;;  %s59_s28 = int_to_ptr.vmem [resolvable:$true] %s58_s28 }
  0x18   :  { %39 = dma.hbm_to_vmem [thread:$0]  %s32_s30, 256, %s34_s19, [#allocation3], %s3300_s23, %s3300_s23, %s3301_s24  }
  0x19   :  { %s83_s0 = sshll.u32 %s3970_s6, 4  ;;  %s111_s18 = sshll.u32 %s3973_s9, 4  ;;  %s84_s0 = int_to_ptr.hbm [resolvable:$true] %s83_s0  ;;  %s112_s18 = int_to_ptr.hbm [resolvable:$true] %s111_s18 }
  0x1a   :  { %61 = dma.hbm_to_vmem [thread:$0]  %s57_s21, 32, %s59_s28, [#allocation6]  }
  0x1b   :  { %s3303_s22 = smov [#allocation10]   ;;  %s3304_s2 = smov [#allocation13]  }
  0x1c   :  { %s85_s20 = sshll.u32 %s3303_s22, 4  ;;  %s113_s30 = sshll.u32 %s3304_s2, 4  ;;  %s86_s20 = int_to_ptr.vmem [resolvable:$true] %s85_s20  ;;  %s114_s30 = int_to_ptr.vmem [resolvable:$true] %s113_s30 }
  0x1d   :  { %91 = dma.hbm_to_vmem [thread:$0]  %s84_s0, 32, %s86_s20, [#allocation9], %s3297_s17, %s3297_s17, %s3298_s1  }
  0x1e   :  { %s143_s6 = sshll.u32 %s3978_s14, 4  ;;  %s3305_s9 = smov [#allocation16]   ;;  %s144_s6 = int_to_ptr.hbm [resolvable:$true] %s143_s6 }
  0x1f   :  { %119 = dma.hbm_to_vmem [thread:$0]  %s112_s18, 32, %s114_s30, [#allocation12], %s3297_s17, %s3297_s17, %s3298_s1  }
  0x20   :  { %s145_s22 = sshll.u32 %s3305_s9, 4  ;;  %s3987_s21 = smov 64   ;;  %s146_s22 = int_to_ptr.vmem [resolvable:$true] %s145_s22 }
  0x21   :  { %151 = dma.hbm_to_vmem [thread:$0]  %s144_s6, 512, %s146_s22, [#allocation15], %s3987_s21, %s3987_s21, %s3295_s4  }
  0x22   :  { %3277 = dma.done.wait [#allocation3], 256  }
  0x23   :  { %3278 = vsyncadd [#allocation3], 4294967040 }
  0x24   :  { %3279 = dma.done.wait [#allocation6], 64  }
  0x25   :  { %3280 = vsyncadd [#allocation6], 4294967232 }
  0x26   :  { %3281 = dma.done.wait [#allocation9], 96  }
  0x27   :  { %3282 = vsyncadd [#allocation9], 4294967200 }
  0x28   :  { %3283 = dma.done.wait [#allocation12], 1056  }
  0x29   :  { %3284 = vsyncadd [#allocation12], 4294966240 }
  0x2a   :  { %3285 = dma.done.wait [#allocation15], 544  }
  0x2b   :  { %3286 = vsyncadd [#allocation15], 4294966752  ;;  %vm194_vm0 = vcmask 523264   ;;  %v191_v0 = vld [vmem:[#allocation2] sm:$0xff]  ;;  %v192_v2 = vld [vmem:[#allocation2 + $0x8] sm:$0xff]  ;;  %v3306_v4 = vmov 64.0  }
  0x2c   :  { %v195_v1 = vsel %vm194_vm0, %v191_v0, 0.0  ;;  %v198_v3 = vsel %vm194_vm0, %v192_v2, 0.0  ;;  %2937 = vrcp.f32 %v3306_v4  ;;  %v2549_v21 = vld [vmem:[%s3967_s3 + $0x30] sm:$0xf]  ;;  %v2829_v22 = vld [vmem:[%s3967_s3 + $0x34] sm:$0xf0] }
  0x2d   :  { %196 = vadd.xlane.f32.xlu0 %v195_v1  ;;  %v2828_v23 = vld [vmem:[%s3967_s3 + $0x34] sm:$0xf]  ;;  %v2550_v24 = vor.u32 %v2829_v22, %v2549_v21  ;;  %v2551_v25 = vld [vmem:[%s3967_s3 + $0x38] sm:$0xf0]  ;;  %v2541_v27 = vld [vmem:[%s3967_s3 + $0x20] sm:$0xf] }
  0x2e   :  { %v2554_v26 = vor.u32 %v2828_v23, %v2551_v25  ;;  %v2827_v28 = vld [vmem:[%s3967_s3 + $0x24] sm:$0xf0]  ;;  %v2826_v29 = vld [vmem:[%s3967_s3 + $0x24] sm:$0xf]  ;;  %v2543_v31 = vld [vmem:[%s3967_s3 + $0x28] sm:$0xf0] }
  0x2f   :  { %314 = vmatpush.bf16.msra.mxu0 %v2550_v24  ;;  %v2542_v30 = vor.u32 %v2827_v28, %v2541_v27  ;;  %v2546_v32 = vor.u32 %v2826_v29, %v2543_v31  ;;  %v2533_v33 = vld [vmem:[%s3967_s3 + $0x10] sm:$0xf]  ;;  %v2825_v34 = vld [vmem:[%s3967_s3 + $0x14] sm:$0xf0]  ;;  %v2824_v35 = vld [vmem:[%s3967_s3 + $0x14] sm:$0xf] }
  0x30   :  { %328 = vmatpush.bf16.msra.mxu1 %v2554_v26  ;;  %v2534_v36 = vor.u32 %v2825_v34, %v2533_v33  ;;  %v2535_v37 = vld [vmem:[%s3967_s3 + $0x18] sm:$0xf0]  ;;  %v2525_v39 = vld [vmem:[%s3967_s3] sm:$0xf]  ;;  %v2823_v40 = vld [vmem:[%s3967_s3 + $0x4] sm:$0xf0] }
  0x31   :  { %v2538_v38 = vor.u32 %v2824_v35, %v2535_v37  ;;  %v2822_v41 = vld [vmem:[%s3967_s3 + $0x4] sm:$0xf]  ;;  %v2526_v43 = vor.u32 %v2823_v40, %v2525_v39  ;;  %v2527_v44 = vld [vmem:[%s3967_s3 + $0x8] sm:$0xf0]  ;;  %v193_v62 = vld [vmem:[#allocation7] sm:$0x3] }
  0x32   :  { %v2938_v5 = vpop.eup %2937  ;;  %v2530_v46 = vor.u32 %v2822_v41, %v2527_v44  ;;  %v246_v1 = vperm.slane %v193_v62, 0  ;;  %s3307_s27 = smov 96   ;;  %s3308_s18 = smov 112   ;;  %vm342_vm8 = vcmask 130048   ;;  %v2928_v37 = vld [vmem:[#allocation5] ss:$0 sm:$0xff] }
  0x33   :  { %v202_v6 = vmul.f32 64.0, %v2938_v5  ;;  %vm206_vm1 = vweird.f32 %v2938_v5  ;;  %315 = vmatpush.bf16.msra.mxu0 %v2542_v30  ;;  %s3309_s20 = smov 48   ;;  %s3988_s2 = smov 32   ;;  %vm370_vm9 = vcmask 64512  }
  0x34   :  { %329 = vmatpush.bf16.msra.mxu1 %v2546_v32  ;;  %s3310_s30 = smov 80   ;;  %s2509_s28 = sshll.u32 %s3980_s16, 4  ;;  %s2510_s28 = int_to_ptr.hbm [resolvable:$true] %s2509_s28 }
  0x35   :  { %199 = vadd.xlane.f32.xlu0 %v198_v3  ;;  %v203_v7 = vsub.f32 1.0, %v202_v6  ;;  %v249_v6 = vperm.slane %v193_v62, 1 }
  0x37   :  { %v204_v8 = vmul.f32 %v2938_v5, %v203_v7  ;;  %316 = vmatpush.bf16.msra.mxu0 %v2534_v36 }
  0x38   :  { %330 = vmatpush.bf16.msra.mxu1 %v2538_v38 }
  0x39   :  { %v205_v9 = vadd.f32 %v2938_v5, %v204_v8 }
  0x3b   :  { %v3444_v10 = vsel %vm206_vm1, %v2938_v5, %v205_v9  ;;  %317 = vmatpush.bf16.msra.mxu0 %v2526_v43 }
  0x3c   :  { %331 = vmatpush.bf16.msra.mxu1 %v2530_v46 }
  0xa0   :  { %v197_v11 = vpop.xlane.xlu0 %196 }
  0xa1   :  { %v208_v12 = vmul.f32 %v3444_v10, %v197_v11 }
  0xa3   :  { %v3447_v13 = vsub.f32 %v191_v0, %v208_v12  ;;  %v260_v12 = vld [vmem:[#allocation8] sm:$0x3] }
  0xa5   :  { %v212_v14 = vmul.f32 %v3447_v13, %v3447_v13 }
  0xa7   :  { %v214_v15 = vsel %vm194_vm0, %v212_v14, 0.0  ;;  %v264_v14 = vperm.slane %v260_v12, 1 }
  0xa8   :  { %215 = vadd.xlane.f32.xlu1 %v214_v15  ;;  %v200_v16 = vpop.xlane.xlu0 %199 }
  0xa9   :  { %v209_v17 = vmul.f32 %v3444_v10, %v200_v16 }
  0xab   :  { %v3453_v18 = vsub.f32 %v192_v2, %v209_v17 }
  0xad   :  { %v213_v19 = vmul.f32 %v3453_v18, %v3453_v18 }
  0xaf   :  { %v217_v20 = vsel %vm194_vm0, %v213_v19, 0.0 }
  0xb0   :  { %218 = vadd.xlane.f32.xlu1 %v217_v20 }
 0x11b   :  { %v216_v42 = vpop.xlane.xlu1 %215 }
 0x11c   :  { %v220_v45 = vmul.f32 %v216_v42, %v3444_v10 }
 0x11e   :  { %v222_v47 = vadd.f32 1e-05, %v220_v45 }
 0x120   :  { %2939 = vrsqrt.f32 %v222_v47  ;;  %vm230_vm3 = vweird.f32 %v222_v47 }
 0x123   :  { %v219_v48 = vpop.xlane.xlu1 %218 }
 0x124   :  { %v221_v49 = vmul.f32 %v219_v48, %v3444_v10 }
 0x126   :  { %v2940_v50 = vpop.eup %2939  ;;  %v223_v51 = vadd.f32 1e-05, %v221_v49  ;;  %v2929_v49 = vld [vmem:[#allocation5 + $0x1] ss:$0 sm:$0xff] }
 0x127   :  { %v225_v52 = vmul.f32 %v2940_v50, %v222_v47  ;;  %vm231_vm2 = vweird.f32 %v2940_v50 }
 0x128   :  { %2941 = vrsqrt.f32 %v223_v51  ;;  %vm232_vm4 = vmor %vm230_vm3, %vm231_vm2  ;;  %vm240_vm6 = vweird.f32 %v223_v51 }
 0x129   :  { %v226_v53 = vmul.f32 %v2940_v50, %v225_v52 }
 0x12b   :  { %v227_v54 = vmul.f32 0.5, %v226_v53 }
 0x12d   :  { %v228_v55 = vsub.f32 1.5, %v227_v54 }
 0x12e   :  { %v2942_v56 = vpop.eup %2941 }
 0x12f   :  { %v229_v57 = vmul.f32 %v2940_v50, %v228_v55  ;;  %v235_v58 = vmul.f32 %v2942_v56, %v223_v51  ;;  %vm241_vm5 = vweird.f32 %v2942_v56 }
 0x130   :  { %vm242_vm7 = vmor %vm240_vm6, %vm241_vm5 }
 0x131   :  { %v236_v59 = vmul.f32 %v2942_v56, %v235_v58  ;;  %v233_v60 = vsel %vm232_vm4, %v2940_v50, %v229_v57 }
 0x132   :  { %v244_v0 = vmul.f32 %v233_v60, %v3447_v13  ;;  %v263_v13 = vperm.slane %v260_v12, 0 }
 0x133   :  { %v237_v61 = vmul.f32 0.5, %v236_v59 }
 0x134   :  { %v247_v5 = vmul.f32 %v246_v1, %v244_v0 }
 0x135   :  { %v238_v63 = vsub.f32 1.5, %v237_v61 }
 0x136   :  { %v3510_v8 = vadd.f32 %v249_v6, %v247_v5 }
 0x137   :  { %v239_v2 = vmul.f32 %v2942_v56, %v238_v63 }
 0x139   :  { %v243_v3 = vsel %vm242_vm7, %v2942_v56, %v239_v2 }
 0x13a   :  { %v245_v4 = vmul.f32 %v243_v3, %v3453_v18 }
 0x13c   :  { %v248_v7 = vmul.f32 %v246_v1, %v245_v4 }
 0x13e   :  { %v3512_v9 = vadd.f32 %v249_v6, %v248_v7 }
 0x140   :  { %v261_v11 = vpack.c.bf16 %v3512_v9, %v3510_v8 }
 0x142   :  { %2555 = vmatmul.msk.bf16.vlgmr.msra.gmra.mxu0 %vm194_vm0, %v261_v11  ;;  %2556 = vmatmul.msk.bf16.vlgmr.msra.gmra.mxu1 %vm194_vm0, %v261_v11 }
 0x1bf   :  { %v319_v15 = vpop.f32.mrf.mxu0  ;;  %v333_v16 = vpop.f32.mrf.mxu1 }
 0x1c0   :  { %v320_v17 = vadd.f32 %v319_v15, %v263_v13  ;;  %v3518_v18 = vadd.f32 %v333_v16, %v264_v14 }
 0x1c2   :  { %413 = vmatpush.msrb.mxu1 %v3518_v18  ;;  %499 = vrot.lane.b32.xlu1 %v320_v17, %s3307_s27 }
 0x1c3   :  { %418 = vrot.lane.b32.xlu0 %v320_v17, %s3308_s18  ;;  %420 = vrot.lane.b32.xlu2 %v320_v17, %s3309_s20 }
 0x1c7   :  { %v321_v19 = vpop.f32.mrf.mxu0  ;;  %v335_v20 = vpop.f32.mrf.mxu1 }
 0x1c8   :  { %v322_v21 = vadd.f32 %v321_v19, %v263_v13  ;;  %v3524_v22 = vadd.f32 %v335_v20, %v264_v14 }
 0x1ca   :  { %749 = vmatpush.msra.mxu1 %v3524_v22  ;;  %917 = vrot.lane.b32.xlu1 %v322_v21, %s3297_s17 }
 0x1cb   :  { %756 = vrot.lane.b32.xlu0 %v322_v21, %s3309_s20  ;;  %501 = vrot.lane.b32.xlu2 %v320_v17, %s3988_s2 }
 0x1d2   :  { %837 = vrot.lane.b32.xlu1 %v322_v21, %s3988_s2 }
 0x1d3   :  { %678 = vrot.lane.b32.xlu0 %v322_v21, %s3987_s21  ;;  %581 = vrot.lane.b32.xlu2 %v320_v17, %s3297_s17 }
 0x1db   :  { %835 = vrot.lane.b32.xlu0 %v322_v21, %s3307_s27  ;;  %579 = vrot.lane.b32.xlu2 %v320_v17, %s3310_s30 }
 0x1e3   :  { %340 = vrot.lane.b32.xlu2 %v320_v17, %s3987_s21 }
 0x1eb   :  { %754 = vrot.lane.b32.xlu2 %v322_v21, %s3308_s18 }
 0x1f3   :  { %915 = vrot.lane.b32.xlu2 %v322_v21, %s3310_s30 }
 0x21d   :  { %v421_v23 = vpop.permute.xlu2 %420 }
 0x21e   :  { %2560 = vmatpush.xpose.msk.msrb.mxu0 %vm342_vm8, %v421_v23 }
 0x225   :  { %v502_v24 = vpop.permute.xlu2 %501 }
 0x226   :  { %2563 = vmatpush.xpose.msk.msra.mxu3 %vm342_vm8, %v502_v24 }
 0x22d   :  { %v582_v25 = vpop.permute.xlu2 %581 }
 0x22e   :  { %2566 = vmatpush.xpose.msk.msrb.mxu3 %vm342_vm8, %v582_v25 }
 0x234   :  { %v500_v26 = vpop.permute.xlu1 %499 }
 0x235   :  { %v419_v27 = vpop.permute.xlu0 %418  ;;  %v580_v28 = vpop.permute.xlu2 %579  ;;  %2564 = vmatmul.msk.f32.vlgmr.msra.gmra.mxu3 %vm342_vm8, %v500_v26 }
 0x236   :  { %2561 = vmatmul.msk.f32.vlgmr.msrb.gmra.mxu0 %vm342_vm8, %v419_v27 }
 0x23c   :  { %v918_v29 = vpop.permute.xlu1 %917 }
 0x23d   :  { %v757_v30 = vpop.permute.xlu0 %756  ;;  %v341_v31 = vpop.permute.xlu2 %340  ;;  %2567 = vmatmul.msk.f32.vlgmr.msrb.gmra.mxu3 %vm342_vm8, %v580_v28 }
 0x23e   :  { %2557 = vmatpush.xpose.msk.msra.mxu2 %vm342_vm8, %v341_v31  ;;  %2572 = vmatpush.xpose.msk.msra.mxu3 %vm342_vm8, %v757_v30 }
 0x241   :  { %2558 = vmatmul.msk.f32.vlgmr.msra.gmra.mxu2 %vm342_vm8, %v320_v17 }
 0x242   :  { %2578 = vmatpush.xpose.msk.msrb.mxu3 %vm342_vm8, %v918_v29 }
 0x244   :  { %v838_v32 = vpop.permute.xlu1 %837 }
 0x245   :  { %v679_v33 = vpop.permute.xlu0 %678  ;;  %v755_v34 = vpop.permute.xlu2 %754 }
 0x246   :  { %2569 = vmatpush.xpose.msk.msra.mxu0 %vm342_vm8, %v679_v33  ;;  %2573 = vmatmul.msk.f32.vlgmr.msra.gmra.mxu3 %vm342_vm8, %v755_v34 }
 0x249   :  { %2570 = vmatmul.msk.f32.vlgmr.msra.gmra.mxu0 %vm342_vm8, %v322_v21 }
 0x24a   :  { %2575 = vmatpush.xpose.msk.msrb.mxu0 %vm342_vm8, %v838_v32 }
 0x24d   :  { %v916_v35 = vpop.permute.xlu2 %915  ;;  %v836_v36 = vpop.permute.xlu0 %835 }
 0x24e   :  { %2579 = vmatmul.msk.f32.vlgmr.msrb.gmra.mxu3 %vm342_vm8, %v916_v35 }
 0x251   :  { %2576 = vmatmul.msk.f32.vlgmr.msrb.gmra.mxu0 %vm342_vm8, %v836_v36 }
 0x2b3   :  { %v443_v38 = vpop.f32.mrf.mxu0 }
 0x2b4   :  { %v446_v39 = vmul.f32 0.25, %v443_v38 }
 0x2b6   :  { %v447_v40 = vadd.f32 %v2928_v37, %v446_v39 }
 0x2b8   :  { %v448_v41 = vsel %vm370_vm9, %v447_v40, -inf  ;;  %v524_v42 = vpop.f32.mrf.mxu3 }
 0x2b9   :  { %449 = vmax.xlane.f32.xlu2 %v448_v41  ;;  %v527_v43 = vmul.f32 0.25, %v524_v42 }
 0x2bb   :  { %v528_v44 = vadd.f32 %v2928_v37, %v527_v43 }
 0x2bd   :  { %v529_v45 = vsel %vm370_vm9, %v528_v44, -inf }
 0x2be   :  { %530 = vmax.xlane.f32.xlu1 %v529_v45 }
 0x2c0   :  { %v604_v46 = vpop.f32.mrf.mxu3 }
 0x2c1   :  { %v607_v56 = vmul.f32 0.25, %v604_v46 }
 0x2c3   :  { %v608_v60 = vadd.f32 %v2928_v37, %v607_v56 }
 0x2c4   :  { %v364_v47 = vpop.f32.mrf.mxu2 }
 0x2c5   :  { %v367_v48 = vmul.f32 0.25, %v364_v47  ;;  %v609_v2 = vsel %vm370_vm9, %v608_v60, -inf }
 0x2c6   :  { %v701_v50 = vpop.f32.mrf.mxu0 }
 0x2c7   :  { %v704_v51 = vmul.f32 0.25, %v701_v50  ;;  %v369_v52 = vadd.f32 %v2928_v37, %v367_v48 }
 0x2c9   :  { %v779_v53 = vpop.f32.mrf.mxu3  ;;  %v371_v54 = vsel %vm370_vm9, %v369_v52, -inf  ;;  %v706_v55 = vadd.f32 %v2929_v49, %v704_v51 }
 0x2ca   :  { %372 = vmax.xlane.f32.xlu2 %v371_v54  ;;  %v782_v0 = vmul.f32 0.25, %v779_v53 }
 0x2cb   :  { %v707_v57 = vsel %vm370_vm9, %v706_v55, -inf }
 0x2cc   :  { %708 = vmax.xlane.f32.xlu0 %v707_v57  ;;  %v783_v5 = vadd.f32 %v2929_v49, %v782_v0 }
 0x2ce   :  { %v860_v58 = vpop.f32.mrf.mxu0  ;;  %v784_v6 = vsel %vm370_vm9, %v783_v5, -inf }
 0x2cf   :  { %v863_v59 = vmul.f32 0.25, %v860_v58 }
 0x2d1   :  { %v940_v61 = vpop.f32.mrf.mxu3  ;;  %v864_v62 = vadd.f32 %v2929_v49, %v863_v59 }
 0x2d2   :  { %v943_v63 = vmul.f32 0.25, %v940_v61 }
 0x2d3   :  { %v865_v1 = vsel %vm370_vm9, %v864_v62, -inf }
 0x2d4   :  { %866 = vmax.xlane.f32.xlu1 %v865_v1  ;;  %610 = vmax.xlane.f32.xlu0 %v609_v2  ;;  %v944_v3 = vadd.f32 %v2929_v49, %v943_v63 }
 0x2d6   :  { %v945_v4 = vsel %vm370_vm9, %v944_v3, -inf }
 0x2d7   :  { %946 = vmax.xlane.f32.xlu2 %v945_v4 }
 0x2dc   :  { %785 = vmax.xlane.f32.xlu1 %v784_v6 }
 0x2f5   :  { %633 = vrot.lane.b32.xlu1 %v3518_v18, %s3310_s30 }
 0x32c   :  { %v450_v7 = vpop.xlane.xlu2 %449 }
 0x32d   :  { %v451_v11 = vsub.f32 %v447_v40, %v450_v7 }
 0x32f   :  { %v452_v12 = vmul.f32 1.442695, %v451_v11 }
 0x331   :  { %2943 = vpow2.f32 %v452_v12  ;;  %v531_v13 = vpop.xlane.xlu1 %530 }
 0x332   :  { %v532_v14 = vsub.f32 %v528_v44, %v531_v13 }
 0x334   :  { %v533_v15 = vmul.f32 1.442695, %v532_v14 }
 0x336   :  { %2945 = vpow2.f32 %v533_v15 }
 0x337   :  { %v3564_v16 = vpop.eup %2943 }
 0x338   :  { %v454_v17 = vsel %vm370_vm9, %v3564_v16, 0.0 }
 0x339   :  { %455 = vadd.xlane.f32.xlu0 %v454_v17 }
 0x33c   :  { %v3568_v19 = vpop.eup %2945 }
 0x33d   :  { %v373_v20 = vpop.xlane.xlu2 %372  ;;  %v535_v21 = vsel %vm370_vm9, %v3568_v19, 0.0 }
 0x33e   :  { %v374_v23 = vsub.f32 %v369_v52, %v373_v20  ;;  %536 = vadd.xlane.f32.xlu2 %v535_v21 }
 0x33f   :  { %v709_v24 = vpop.xlane.xlu0 %708 }
 0x340   :  { %v375_v25 = vmul.f32 1.442695, %v374_v23  ;;  %v710_v26 = vsub.f32 %v706_v55, %v709_v24 }
 0x342   :  { %2947 = vpow2.f32 %v375_v25  ;;  %v711_v27 = vmul.f32 1.442695, %v710_v26 }
 0x344   :  { %2949 = vpow2.f32 %v711_v27 }
 0x347   :  { %v611_v28 = vpop.xlane.xlu0 %610  ;;  %v867_v41 = vpop.xlane.xlu1 %866 }
 0x348   :  { %v3572_v29 = vpop.eup %2947  ;;  %v612_v30 = vsub.f32 %v608_v60, %v611_v28  ;;  %v868_v43 = vsub.f32 %v864_v62, %v867_v41 }
 0x349   :  { %v377_v31 = vsel %vm370_vm9, %v3572_v29, 0.0 }
 0x34a   :  { %v3576_v32 = vpop.eup %2949  ;;  %v613_v33 = vmul.f32 1.442695, %v612_v30  ;;  %378 = vadd.xlane.f32.xlu2 %v377_v31  ;;  %v947_v37 = vpop.xlane.xlu2 %946  ;;  %v869_v44 = vmul.f32 1.442695, %v868_v43 }
 0x34b   :  { %v713_v34 = vsel %vm370_vm9, %v3576_v32, 0.0  ;;  %v948_v38 = vsub.f32 %v944_v3, %v947_v37 }
 0x34c   :  { %714 = vadd.xlane.f32.xlu1 %v713_v34  ;;  %2951 = vpow2.f32 %v613_v33 }
 0x34d   :  { %473 = vrot.lane.b32.xlu0 %v3518_v18, %s3308_s18  ;;  %v949_v39 = vmul.f32 1.442695, %v948_v38 }
 0x34f   :  { %2953 = vpow2.f32 %v949_v39  ;;  %v786_v45 = vpop.xlane.xlu1 %785 }
 0x350   :  { %2955 = vpow2.f32 %v869_v44  ;;  %v787_v46 = vsub.f32 %v783_v5, %v786_v45 }
 0x352   :  { %v3582_v35 = vpop.eup %2951 }
 0x353   :  { %v615_v36 = vsel %vm370_vm9, %v3582_v35, 0.0 }
 0x354   :  { %616 = vadd.xlane.f32.xlu1 %v615_v36 }
 0x355   :  { %v3590_v40 = vpop.eup %2953 }
 0x356   :  { %v951_v42 = vsel %vm370_vm9, %v3590_v40, 0.0  ;;  %v3594_v47 = vpop.eup %2955 }
 0x357   :  { %v871_v48 = vsel %vm370_vm9, %v3594_v47, 0.0 }
 0x362   :  { %553 = vrot.lane.b32.xlu2 %v3518_v18, %s3307_s27  ;;  %v788_v18 = vmul.f32 1.442695, %v787_v46 }
 0x364   :  { %2957 = vpow2.f32 %v788_v18 }
 0x367   :  { %v634_v56 = vpop.permute.xlu1 %633 }
 0x36a   :  { %v3600_v49 = vpop.eup %2957 }
 0x36b   :  { %v790_v50 = vsel %vm370_vm9, %v3600_v49, 0.0 }
 0x36d   :  { %809 = vrot.lane.b32.xlu1 %v3524_v22, %s3308_s18 }
 0x377   :  { %952 = vadd.xlane.f32.xlu0 %v951_v42 }
 0x38b   :  { %872 = vadd.xlane.f32.xlu2 %v871_v48  ;;  %889 = vrot.lane.b32.xlu0 %v3524_v22, %s3307_s27 }
 0x397   :  { %791 = vadd.xlane.f32.xlu1 %v790_v50 }
 0x3ac   :  { %v456_v51 = vpop.xlane.xlu0 %455 }
 0x3ad   :  { %2959 = vrcp.f32 %v456_v51  ;;  %v468_v57 = vand.u32 2147483648, %v456_v51  ;;  %v466_v60 = vand.u32 2147483647, %v456_v51  ;;  %vm462_vm11 = vweird.f32 %v456_v51 }
 0x3af   :  { %v469_v63 = vor.u32 1.1754944e-38, %v468_v57  ;;  %vm467_vm13 = vcmp.eq.f32.partialorder %v466_v60, 8.507059e+37 }
 0x3b0   :  { %969 = vrot.lane.b32.xlu1 %v3524_v22, %s3310_s30 }
 0x3b1   :  { %v537_v52 = vpop.xlane.xlu2 %536 }
 0x3b2   :  { %2961 = vrcp.f32 %v537_v52  ;;  %v549_v4 = vand.u32 2147483648, %v537_v52  ;;  %vm543_vm15 = vweird.f32 %v537_v52  ;;  %v547_v6 = vand.u32 2147483647, %v537_v52 }
 0x3b3   :  { %v2960_v53 = vpop.eup %2959 }
 0x3b4   :  { %v458_v54 = vmul.f32 %v2960_v53, %v456_v51  ;;  %vm463_vm10 = vweird.f32 %v2960_v53  ;;  %v550_v14 = vor.u32 1.1754944e-38, %v549_v4  ;;  %vm548_vm2 = vcmp.eq.f32.partialorder %v547_v6, 8.507059e+37 }
 0x3b5   :  { %vm464_vm12 = vmor %vm462_vm11, %vm463_vm10 }
 0x3b6   :  { %v459_v55 = vsub.f32 1.0, %v458_v54 }
 0x3b8   :  { %v2962_v58 = vpop.eup %2961  ;;  %v460_v59 = vmul.f32 %v2960_v53, %v459_v55 }
 0x3b9   :  { %v539_v61 = vmul.f32 %v2962_v58, %v537_v52  ;;  %vm544_vm14 = vweird.f32 %v2962_v58 }
 0x3ba   :  { %v461_v62 = vadd.f32 %v2960_v53, %v460_v59  ;;  %vm545_vm1 = vmor %vm543_vm15, %vm544_vm14 }
 0x3bb   :  { %v540_v0 = vsub.f32 1.0, %v539_v61 }
 0x3bc   :  { %v465_v1 = vsel %vm464_vm12, %v2960_v53, %v461_v62 }
 0x3bd   :  { %v541_v22 = vmul.f32 %v2962_v58, %v540_v0  ;;  %v379_v2 = vpop.xlane.xlu2 %378  ;;  %v470_v3 = vsel %vm467_vm13, %v469_v63, %v465_v1 }
 0x3be   :  { %2963 = vrcp.f32 %v379_v2  ;;  %v471_v12 = vmul.f32 %v3564_v16, %v470_v3  ;;  %v389_v16 = vand.u32 2147483647, %v379_v2  ;;  %v391_v27 = vand.u32 2147483648, %v379_v2 }
 0x3bf   :  { %v542_v5 = vadd.f32 %v2962_v58, %v541_v22  ;;  %v715_v7 = vpop.xlane.xlu1 %714  ;;  %v474_v11 = vpop.permute.xlu0 %473  ;;  %vm385_vm4 = vweird.f32 %v379_v2 }
 0x3c0   :  { %2965 = vrcp.f32 %v715_v7  ;;  %494 = vmatpush.msrb.mxu2 %v474_v11  ;;  %v392_v36 = vor.u32 1.1754944e-38, %v391_v27  ;;  %vm390_vm6 = vcmp.eq.f32.partialorder %v389_v16, 8.507059e+37  ;;  %v727_v39 = vand.u32 2147483648, %v715_v7 }
 0x3c1   :  { %v546_v13 = vsel %vm545_vm1, %v2962_v58, %v542_v5  ;;  %2562 = vmatmul.msk.f32.vlgmr.msrb.gmra.mxu2 %vm370_vm9, %v471_v12  ;;  %vm721_vm10 = vweird.f32 %v715_v7  ;;  %v725_v42 = vand.u32 2147483647, %v715_v7 }
 0x3c2   :  { %v551_v17 = vsel %vm548_vm2, %v550_v14, %v546_v13  ;;  %v728_v46 = vor.u32 1.1754944e-38, %v727_v39 }
 0x3c3   :  { %v552_v26 = vmul.f32 %v3568_v19, %v551_v17  ;;  %vm726_vm12 = vcmp.eq.f32.partialorder %v725_v42, 8.507059e+37 }
 0x3c4   :  { %v2964_v15 = vpop.eup %2963 }
 0x3c5   :  { %v381_v20 = vmul.f32 %v2964_v15, %v379_v2  ;;  %v554_v21 = vpop.permute.xlu2 %553  ;;  %vm386_vm3 = vweird.f32 %v2964_v15 }
 0x3c6   :  { %v2966_v23 = vpop.eup %2965  ;;  %574 = vmatpush.msra.mxu2 %v554_v21  ;;  %vm387_vm5 = vmor %vm385_vm4, %vm386_vm3 }
 0x3c7   :  { %v382_v24 = vsub.f32 1.0, %v381_v20  ;;  %v717_v25 = vmul.f32 %v2966_v23, %v715_v7  ;;  %v617_v28 = vpop.xlane.xlu1 %616  ;;  %vm722_vm7 = vweird.f32 %v2966_v23 }
 0x3c8   :  { %654 = vmatpush.msrb.mxu2 %v634_v56  ;;  %2967 = vrcp.f32 %v617_v28  ;;  %vm723_vm11 = vmor %vm721_vm10, %vm722_vm7  ;;  %v629_v48 = vand.u32 2147483648, %v617_v28  ;;  %v627_v52 = vand.u32 2147483647, %v617_v28  ;;  %vm623_vm14 = vweird.f32 %v617_v28 }
 0x3c9   :  { %v383_v30 = vmul.f32 %v2964_v15, %v382_v24  ;;  %v718_v31 = vsub.f32 1.0, %v717_v25  ;;  %2565 = vmatmul.msk.f32.vlgmr.msra.gmra.mxu2 %vm370_vm9, %v552_v26 }
 0x3ca   :  { %v630_v54 = vor.u32 1.1754944e-38, %v629_v48  ;;  %vm628_vm1 = vcmp.eq.f32.partialorder %v627_v52, 8.507059e+37  ;;  %v2832_v48 = vld [vmem:[%s3969_s5 + $0x10] sm:$0xff] }
 0x3cb   :  { %v384_v33 = vadd.f32 %v2964_v15, %v383_v30  ;;  %v719_v34 = vmul.f32 %v2966_v23, %v718_v31 }
 0x3cd   :  { %v720_v37 = vadd.f32 %v2966_v23, %v719_v34  ;;  %v388_v38 = vsel %vm387_vm5, %v2964_v15, %v384_v33 }
 0x3ce   :  { %v393_v19 = vsel %vm390_vm6, %v392_v36, %v388_v38  ;;  %v2968_v41 = vpop.eup %2967 }
 0x3cf   :  { %v394_v43 = vmul.f32 %v3572_v29, %v393_v19  ;;  %v619_v44 = vmul.f32 %v2968_v41, %v617_v28  ;;  %v724_v45 = vsel %vm723_vm11, %v2966_v23, %v720_v37  ;;  %vm624_vm13 = vweird.f32 %v2968_v41 }
 0x3d0   :  { %v729_v50 = vsel %vm726_vm12, %v728_v46, %v724_v45  ;;  %vm625_vm15 = vmor %vm623_vm14, %vm624_vm13 }
 0x3d1   :  { %2559 = vmatmul.msk.f32.vlgmr.msrb.gmra.mxu1 %vm370_vm9, %v394_v43  ;;  %v620_v18 = vsub.f32 1.0, %v619_v44  ;;  %v730_v55 = vmul.f32 %v3576_v32, %v729_v50  ;;  %v2831_v50 = vld [vmem:[%s3969_s5 + $0x8] sm:$0xff] }
 0x3d3   :  { %v621_v51 = vmul.f32 %v2968_v41, %v620_v18 }
 0x3d5   :  { %v622_v53 = vadd.f32 %v2968_v41, %v621_v51  ;;  %v2830_v51 = vld [vmem:[%s3969_s5] sm:$0xff] }
 0x3d7   :  { %v626_v29 = vsel %vm625_vm15, %v2968_v41, %v622_v53 }
 0x3d8   :  { %v631_v56 = vsel %vm628_vm1, %v630_v54, %v626_v29  ;;  %vm672_vm1 = vcmask 261120  }
 0x3d9   :  { %2571 = vmatmul.msk.f32.vlgmr.msra.gmra.mxu1 %vm370_vm9, %v730_v55  ;;  %v632_v57 = vmul.f32 %v3582_v35, %v631_v56 }
 0x3db   :  { %2568 = vmatmul.msk.f32.vlgmr.msrb.gmra.mxu2 %vm370_vm9, %v632_v57 }
 0x3df   :  { %v810_v58 = vpop.permute.xlu1 %809 }
 0x3e0   :  { %830 = vmatpush.msra.mxu2 %v810_v58 }
 0x3ea   :  { %v953_v59 = vpop.xlane.xlu0 %952 }
 0x3eb   :  { %vm959_vm13 = vweird.f32 %v953_v59  ;;  %v963_v28 = vand.u32 2147483647, %v953_v59 }
 0x3ed   :  { %vm964_vm15 = vcmp.eq.f32.partialorder %v963_v28, 8.507059e+37  ;;  %v2834_v28 = vld [vmem:[#allocation11] sm:$0xff] }
 0x3fd   :  { %v890_v60 = vpop.permute.xlu0 %889 }
 0x3fe   :  { %910 = vmatpush.msrb.mxu1 %v890_v60  ;;  %v873_v61 = vpop.xlane.xlu2 %872 }
 0x3ff   :  { %2969 = vrcp.f32 %v873_v61  ;;  %v885_v0 = vand.u32 2147483648, %v873_v61  ;;  %v883_v22 = vand.u32 2147483647, %v873_v61  ;;  %vm879_vm3 = vweird.f32 %v873_v61 }
 0x400   :  { %2971 = vrcp.f32 %v953_v59 }
 0x401   :  { %v886_v4 = vor.u32 1.1754944e-38, %v885_v0  ;;  %vm884_vm5 = vcmp.eq.f32.partialorder %v883_v22, 8.507059e+37  ;;  %v2930_v22 = vld [vmem:[#allocation10] ss:$0 sm:$0xff] }
 0x405   :  { %v2970_v62 = vpop.eup %2969 }
 0x406   :  { %v875_v63 = vmul.f32 %v2970_v62, %v873_v61  ;;  %vm880_vm2 = vweird.f32 %v2970_v62  ;;  %v2972_v3 = vpop.eup %2971 }
 0x407   :  { %vm881_vm4 = vmor %vm879_vm3, %vm880_vm2  ;;  %v955_v6 = vmul.f32 %v2972_v3, %v953_v59  ;;  %vm960_vm11 = vweird.f32 %v2972_v3  ;;  %vm674_vm2 = vcmask 392192  }
 0x408   :  { %v876_v32 = vsub.f32 1.0, %v875_v63  ;;  %vm961_vm14 = vmor %vm959_vm13, %vm960_vm11 }
 0x409   :  { %v956_v13 = vsub.f32 1.0, %v955_v6 }
 0x40a   :  { %v877_v1 = vmul.f32 %v2970_v62, %v876_v32  ;;  %v792_v2 = vpop.xlane.xlu1 %791 }
 0x40b   :  { %2973 = vrcp.f32 %v792_v2  ;;  %v804_v17 = vand.u32 2147483648, %v792_v2  ;;  %v957_v20 = vmul.f32 %v2972_v3, %v956_v13  ;;  %v802_v23 = vand.u32 2147483647, %v792_v2 }
 0x40c   :  { %v878_v35 = vadd.f32 %v2970_v62, %v877_v1  ;;  %vm798_vm7 = vweird.f32 %v792_v2 }
 0x40d   :  { %v805_v25 = vor.u32 1.1754944e-38, %v804_v17  ;;  %v958_v26 = vadd.f32 %v2972_v3, %v957_v20  ;;  %vm803_vm12 = vcmp.eq.f32.partialorder %v802_v23, 8.507059e+37 }
 0x40e   :  { %v882_v5 = vsel %vm881_vm4, %v2970_v62, %v878_v35 }
 0x40f   :  { %v887_v7 = vsel %vm884_vm5, %v886_v4, %v882_v5  ;;  %v962_v31 = vsel %vm961_vm14, %v2972_v3, %v958_v26  ;;  %v2835_v26 = vld [vmem:[#allocation11 + $0x8] sm:$0xff] }
 0x410   :  { %v888_v11 = vmul.f32 %v3594_v47, %v887_v7  ;;  %v965_v47 = vand.u32 2147483648, %v953_v59 }
 0x411   :  { %v2974_v12 = vpop.eup %2973 }
 0x412   :  { %2577 = vmatmul.msk.f32.vlgmr.msrb.gmra.mxu1 %vm370_vm9, %v888_v11  ;;  %v794_v14 = vmul.f32 %v2974_v12, %v792_v2  ;;  %vm799_vm6 = vweird.f32 %v2974_v12  ;;  %v966_v33 = vor.u32 1.1754944e-38, %v965_v47 }
 0x413   :  { %vm800_vm10 = vmor %vm798_vm7, %vm799_vm6 }
 0x414   :  { %v795_v15 = vsub.f32 1.0, %v794_v14  ;;  %v967_v34 = vsel %vm964_vm15, %v966_v33, %v962_v31 }
 0x415   :  { %v968_v37 = vmul.f32 %v3590_v40, %v967_v34  ;;  %v2833_v40 = vld [vmem:[%s3969_s5 + $0x18] sm:$0xff] }
 0x416   :  { %v796_v21 = vmul.f32 %v2974_v12, %v795_v15  ;;  %1054 = vmatpush.bf16.msra.mxu0 %v2833_v40 }
 0x418   :  { %v797_v24 = vadd.f32 %v2974_v12, %v796_v21 }
 0x41a   :  { %v801_v16 = vsel %vm800_vm10, %v2974_v12, %v797_v24  ;;  %1055 = vmatpush.bf16.msra.mxu0 %v2832_v48 }
 0x41b   :  { %v806_v27 = vsel %vm803_vm12, %v805_v25, %v801_v16  ;;  %v2836_v25 = vld [vmem:[#allocation11 + $0x10] sm:$0xff] }
 0x41c   :  { %v807_v30 = vmul.f32 %v3600_v49, %v806_v27 }
 0x41e   :  { %2574 = vmatmul.msk.f32.vlgmr.msra.gmra.mxu2 %vm370_vm9, %v807_v30  ;;  %1056 = vmatpush.bf16.msra.mxu0 %v2831_v50 }
 0x422   :  { %v970_v36 = vpop.permute.xlu1 %969  ;;  %1057 = vmatpush.bf16.msra.mxu0 %v2830_v51 }
 0x423   :  { %990 = vmatpush.msrb.mxu2 %v970_v36 }
 0x426   :  { %2580 = vmatmul.msk.f32.vlgmr.msrb.gmra.mxu2 %vm370_vm9, %v968_v37 }
 0x444   :  { %v496_v38 = vpop.f32.mrf.mxu2 }
 0x44c   :  { %v576_v39 = vpop.f32.mrf.mxu2 }
 0x44e   :  { %v415_v19 = vpop.f32.mrf.mxu1 }
 0x456   :  { %v751_v42 = vpop.f32.mrf.mxu1 }
 0x45e   :  { %v656_v41 = vpop.f32.mrf.mxu2 }
 0x48f   :  { %v912_v44 = vpop.f32.mrf.mxu1 }
 0x490   :  { %v2903_v46 = vpack.i.bf16 %v912_v44, %v576_v39 }
 0x4a1   :  { %v832_v43 = vpop.f32.mrf.mxu2 }
 0x4a2   :  { %v2898_v49 = vpack.i.bf16 %v832_v43, %v496_v38 }
 0x4a4   :  { %2899 = vrot.lane.b32.xlu1 %v2898_v49, %s3297_s17  ;;  %v1066_v49 = vld [vmem:[%s3971_s7] sm:$0x3] }
 0x4a5   :  { %v1114_v51 = vperm.slane %v1066_v49, 1 }
 0x4a9   :  { %v992_v45 = vpop.f32.mrf.mxu2 }
 0x4aa   :  { %v2908_v18 = vpack.i.bf16 %v992_v45, %v656_v41 }
 0x4ac   :  { %2909 = vrot.lane.b32.xlu2 %v2908_v18, %s3309_s20  ;;  %2904 = vrot.lane.b32.xlu1 %v2903_v46, %s3988_s2  ;;  %v1111_v18 = vperm.slane %v1066_v49, 0 }
 0x506   :  { %v2910_v55 = vpop.permute.xlu2 %2909 }
 0x507   :  { %v2912_v58 = vunpack.i.h.bf16 %v2910_v55  ;;  %v2911_v59 = vunpack.i.l.bf16 %v2910_v55 }
 0x516   :  { %v2900_v52 = vpop.permute.xlu1 %2899 }
 0x517   :  { %v2902_v53 = vunpack.i.h.bf16 %v2900_v52  ;;  %v2901_v54 = vunpack.i.l.bf16 %v2900_v52 }
 0x519   :  { %v1007_v60 = vsel %vm342_vm8, %v751_v42, %v2902_v53  ;;  %v671_v61 = vsel %vm342_vm8, %v415_v19, %v2901_v54 }
 0x51e   :  { %v2905_v29 = vpop.permute.xlu1 %2904 }
 0x51f   :  { %v2907_v56 = vunpack.i.h.bf16 %v2905_v29  ;;  %v2906_v57 = vunpack.i.l.bf16 %v2905_v29 }
 0x521   :  { %v1008_v62 = vsel %vm672_vm1, %v1007_v60, %v2907_v56  ;;  %v673_v63 = vsel %vm672_vm1, %v671_v61, %v2906_v57  ;;  %v2845_v57 = vld [vmem:[%s3974_s10 + $0x38] sm:$0xff]  ;;  %v2842_v60 = vld [vmem:[%s3974_s10 + $0x20] sm:$0xff] }
 0x522   :  { %v675_v32 = vsel %vm674_vm2, %v673_v63, %v2911_v59  ;;  %v1009_v0 = vsel %vm674_vm2, %v1008_v62, %v2912_v58  ;;  %1258 = vmatpush.bf16.msra.mxu3 %v2845_v57  ;;  %v2844_v58 = vld [vmem:[%s3974_s10 + $0x30] sm:$0xff]  ;;  %v2843_v59 = vld [vmem:[%s3974_s10 + $0x28] sm:$0xff]  ;;  %v2841_v61 = vld [vmem:[%s3974_s10 + $0x18] sm:$0xff] }
 0x523   :  { %v1019_v1 = vpack.c.bf16 %v1009_v0, %v675_v32  ;;  %v2840_v62 = vld [vmem:[%s3974_s10 + $0x10] sm:$0xff]  ;;  %v2839_v63 = vld [vmem:[%s3974_s10 + $0x8] sm:$0xff]  ;;  %v2931_v32 = vld [vmem:[#allocation13] ss:$0 sm:$0xff] }
 0x524   :  { %v2665_v57 = vld [vmem:[%s3967_s3 + $0x50] sm:$0xf] }
 0x525   :  { %2597 = vmatmul.msk.bf16.vlgmr.msra.gmra.mxu0 %vm194_vm0, %v1019_v1  ;;  %v2838_v1 = vld [vmem:[%s3974_s10] sm:$0xff] }
 0x526   :  { %1259 = vmatpush.bf16.msra.mxu3 %v2844_v58  ;;  %v2849_v58 = vld [vmem:[%s3967_s3 + $0x54] sm:$0xf0] }
 0x52a   :  { %1260 = vmatpush.bf16.msra.mxu3 %v2843_v59  ;;  %v2848_v59 = vld [vmem:[%s3967_s3 + $0x54] sm:$0xf] }
 0x52e   :  { %1261 = vmatpush.bf16.msra.mxu3 %v2842_v60  ;;  %v2666_v60 = vor.u32 %v2849_v58, %v2665_v57 }
 0x532   :  { %1262 = vmatpush.bf16.msra.mxu3 %v2841_v61  ;;  %v2667_v61 = vld [vmem:[%s3967_s3 + $0x58] sm:$0xf0] }
 0x536   :  { %1263 = vmatpush.bf16.msra.mxu3 %v2840_v62 }
 0x53a   :  { %1264 = vmatpush.bf16.msra.mxu3 %v2839_v63  ;;  %v2670_v63 = vor.u32 %v2848_v59, %v2667_v61  ;;  %v3035_v61 = vld [vmem:[#allocation5] ss:$0 sm:$0xff] }
 0x53e   :  { %1265 = vmatpush.bf16.msra.mxu3 %v2838_v1  ;;  %v2847_v1 = vld [vmem:[%s3967_s3 + $0x44] sm:$0xf0] }
 0x5a2   :  { %v1059_v2 = vpop.f32.mrf.mxu0 }
 0x5a3   :  { %v1060_v3 = vadd.f32 %v2930_v22, %v1059_v2 }
 0x5a5   :  { %v1064_v35 = vadd.f32 %v1060_v3, %v3510_v8 }
 0x5a7   :  { %v1067_v4 = vsel %vm194_vm0, %v1064_v35, 0.0 }
 0x5a8   :  { %1068 = vadd.xlane.f32.xlu1 %v1067_v4 }
 0x5aa   :  { %v1061_v5 = vpop.f32.mrf.mxu0 }
 0x5ab   :  { %v1062_v6 = vadd.f32 %v2930_v22, %v1061_v5 }
 0x5ad   :  { %v1065_v7 = vadd.f32 %v1062_v6, %v3512_v9  ;;  %v2837_v9 = vld [vmem:[#allocation11 + $0x18] sm:$0xff] }
 0x5ae   :  { %1161 = vmatpush.bf16.msra.mxu1 %v2837_v9 }
 0x5af   :  { %v1070_v11 = vsel %vm194_vm0, %v1065_v7, 0.0 }
 0x5b0   :  { %1071 = vadd.xlane.f32.xlu0 %v1070_v11 }
 0x5b2   :  { %1162 = vmatpush.bf16.msra.mxu1 %v2836_v25 }
 0x5b6   :  { %1163 = vmatpush.bf16.msra.mxu1 %v2835_v26 }
 0x5ba   :  { %1164 = vmatpush.bf16.msra.mxu1 %v2834_v28 }
 0x61b   :  { %v1069_v12 = vpop.xlane.xlu1 %1068 }
 0x61c   :  { %v1073_v13 = vmul.f32 %v1069_v12, %v3444_v10 }
 0x61e   :  { %v1075_v14 = vsub.f32 %v1064_v35, %v1073_v13 }
 0x620   :  { %v1077_v15 = vmul.f32 %v1075_v14, %v1075_v14 }
 0x622   :  { %v1079_v17 = vsel %vm194_vm0, %v1077_v15, 0.0 }
 0x623   :  { %v1072_v20 = vpop.xlane.xlu0 %1071  ;;  %1080 = vadd.xlane.f32.xlu2 %v1079_v17 }
 0x624   :  { %v1074_v8 = vmul.f32 %v1072_v20, %v3444_v10 }
 0x626   :  { %v1076_v21 = vsub.f32 %v1065_v7, %v1074_v8 }
 0x628   :  { %v1078_v23 = vmul.f32 %v1076_v21, %v1076_v21 }
 0x62a   :  { %v1082_v24 = vsel %vm194_vm0, %v1078_v23, 0.0 }
 0x62b   :  { %1083 = vadd.xlane.f32.xlu1 %v1082_v24 }
 0x696   :  { %v1081_v16 = vpop.xlane.xlu2 %1080 }
 0x697   :  { %v1085_v47 = vmul.f32 %v1081_v16, %v3444_v10  ;;  %v2932_v16 = vld [vmem:[#allocation14] ss:$0 sm:$0xff] }
 0x699   :  { %v1087_v27 = vadd.f32 1e-05, %v1085_v47 }
 0x69b   :  { %2975 = vrsqrt.f32 %v1087_v27  ;;  %vm1095_vm4 = vweird.f32 %v1087_v27 }
 0x69e   :  { %v1084_v30 = vpop.xlane.xlu1 %1083 }
 0x69f   :  { %v1086_v31 = vmul.f32 %v1084_v30, %v3444_v10 }
 0x6a1   :  { %v2976_v33 = vpop.eup %2975  ;;  %v1088_v34 = vadd.f32 1e-05, %v1086_v31 }
 0x6a2   :  { %v1090_v36 = vmul.f32 %v2976_v33, %v1087_v27  ;;  %vm1096_vm3 = vweird.f32 %v2976_v33 }
 0x6a3   :  { %2977 = vrsqrt.f32 %v1088_v34  ;;  %vm1097_vm5 = vmor %vm1095_vm4, %vm1096_vm3  ;;  %vm1105_vm7 = vweird.f32 %v1088_v34 }
 0x6a4   :  { %v1091_v37 = vmul.f32 %v2976_v33, %v1090_v36 }
 0x6a6   :  { %v1092_v38 = vmul.f32 0.5, %v1091_v37 }
 0x6a8   :  { %v1093_v39 = vsub.f32 1.5, %v1092_v38 }
 0x6a9   :  { %v2978_v19 = vpop.eup %2977 }
 0x6aa   :  { %v1094_v41 = vmul.f32 %v2976_v33, %v1093_v39  ;;  %v1100_v42 = vmul.f32 %v2978_v19, %v1088_v34  ;;  %vm1106_vm6 = vweird.f32 %v2978_v19 }
 0x6ab   :  { %vm1107_vm10 = vmor %vm1105_vm7, %vm1106_vm6 }
 0x6ac   :  { %v1101_v43 = vmul.f32 %v2978_v19, %v1100_v42  ;;  %v1098_v44 = vsel %vm1097_vm5, %v2976_v33, %v1094_v41 }
 0x6ad   :  { %v1109_v40 = vmul.f32 %v1098_v44, %v1075_v14 }
 0x6ae   :  { %v1102_v45 = vmul.f32 0.5, %v1101_v43 }
 0x6af   :  { %v1112_v52 = vmul.f32 %v1111_v18, %v1109_v40  ;;  %v2852_v40 = vld [vmem:[%s3967_s3 + $0x74] sm:$0xf] }
 0x6b0   :  { %v1103_v46 = vsub.f32 1.5, %v1102_v45 }
 0x6b1   :  { %v1115_v55 = vadd.f32 %v1114_v51, %v1112_v52  ;;  %v2673_v52 = vld [vmem:[%s3967_s3 + $0x60] sm:$0xf] }
 0x6b2   :  { %v1104_v48 = vmul.f32 %v2978_v19, %v1103_v46  ;;  %v2681_v46 = vld [vmem:[%s3967_s3 + $0x70] sm:$0xf] }
 0x6b4   :  { %v1108_v50 = vsel %vm1107_vm10, %v2978_v19, %v1104_v48 }
 0x6b5   :  { %v1110_v53 = vmul.f32 %v1108_v50, %v1076_v21  ;;  %v2683_v50 = vld [vmem:[%s3967_s3 + $0x78] sm:$0xf0] }
 0x6b7   :  { %v1113_v54 = vmul.f32 %v1111_v18, %v1110_v53  ;;  %v2853_v18 = vld [vmem:[%s3967_s3 + $0x74] sm:$0xf0]  ;;  %v2851_v53 = vld [vmem:[%s3967_s3 + $0x64] sm:$0xf0] }
 0x6b8   :  { %v2682_v48 = vor.u32 %v2853_v18, %v2681_v46 }
 0x6b9   :  { %v1116_v29 = vadd.f32 %v1114_v51, %v1113_v54  ;;  %v2686_v51 = vor.u32 %v2852_v40, %v2683_v50  ;;  %v2850_v54 = vld [vmem:[%s3967_s3 + $0x64] sm:$0xf] }
 0x6ba   :  { %1389 = vmatpush.bf16.msra.mxu2 %v2682_v48 }
 0x6bb   :  { %v1126_v56 = vpack.c.bf16 %v1116_v29, %v1115_v55  ;;  %1403 = vmatpush.bf16.msrb.mxu0 %v2686_v51 }
 0x6bd   :  { %2614 = vmatmul.msk.bf16.vlgmr.msra.gmra.mxu1 %vm194_vm0, %v1126_v56 }
 0x73a   :  { %v1166_v0 = vpop.f32.mrf.mxu1 }
 0x73b   :  { %v1167_v22 = vadd.f32 %v2931_v32, %v1166_v0  ;;  %v2657_v0 = vld [vmem:[%s3967_s3 + $0x40] sm:$0xf] }
 0x73d   :  { %v1171_v2 = vmul.f32 %v1167_v22, %v1167_v22 }
 0x73f   :  { %v1173_v3 = vmul.f32 %v1171_v2, %v1167_v22 }
 0x741   :  { %v1175_v35 = vmul.f32 0.044715, %v1173_v3  ;;  %v2658_v3 = vor.u32 %v2847_v1, %v2657_v0 }
 0x742   :  { %v1168_v4 = vpop.f32.mrf.mxu1 }
 0x743   :  { %v1177_v5 = vadd.f32 %v1175_v35, %v1167_v22  ;;  %v1169_v6 = vadd.f32 %v2931_v32, %v1168_v4  ;;  %v2659_v35 = vld [vmem:[%s3967_s3 + $0x48] sm:$0xf0] }
 0x745   :  { %v1179_v7 = vmul.f32 0.7978846, %v1177_v5  ;;  %v1172_v11 = vmul.f32 %v1169_v6, %v1169_v6 }
 0x747   :  { %v1174_v12 = vmul.f32 %v1172_v11, %v1169_v6  ;;  %2979 = vtanh.f32 %v1179_v7 }
 0x749   :  { %v1176_v13 = vmul.f32 0.044715, %v1174_v12 }
 0x74b   :  { %v1178_v14 = vadd.f32 %v1176_v13, %v1169_v6 }
 0x74d   :  { %v1180_v15 = vmul.f32 0.7978846, %v1178_v14  ;;  %v2980_v17 = vpop.eup %2979 }
 0x74e   :  { %v1183_v20 = vadd.f32 1.0, %v2980_v17 }
 0x74f   :  { %2981 = vtanh.f32 %v1180_v15 }
 0x750   :  { %v1185_v21 = vmul.f32 0.5, %v1183_v20 }
 0x752   :  { %v1187_v9 = vmul.f32 %v1185_v21, %v1167_v22  ;;  %v2846_v22 = vld [vmem:[%s3967_s3 + $0x44] sm:$0xf] }
 0x753   :  { %v2662_v4 = vor.u32 %v2846_v22, %v2659_v35 }
 0x755   :  { %v2982_v8 = vpop.eup %2981 }
 0x756   :  { %v1184_v23 = vadd.f32 1.0, %v2982_v8 }
 0x758   :  { %v1186_v24 = vmul.f32 0.5, %v1184_v23  ;;  %v1274_v23 = vld [vmem:[%s3976_s12] sm:$0x3] }
 0x75a   :  { %v1188_v25 = vmul.f32 %v1186_v24, %v1169_v6 }
 0x75c   :  { %v1206_v26 = vpack.c.bf16 %v1188_v25, %v1187_v9 }
 0x75e   :  { %1266 = vmatmul.bf16.vlgmr.msra.gmra.mxu3 %v1206_v26  ;;  %v1319_v26 = vperm.slane %v1274_v23, 0 }
 0x7e1   :  { %v1267_v47 = vpop.f32.mrf.mxu3 }
 0x7e2   :  { %v1268_v27 = vadd.f32 %v2932_v16, %v1267_v47 }
 0x7e4   :  { %v1272_v28 = vadd.f32 %v1268_v27, %v1115_v55  ;;  %v2674_v55 = vor.u32 %v2851_v53, %v2673_v52 }
 0x7e6   :  { %v1275_v30 = vsel %vm194_vm0, %v1272_v28, 0.0  ;;  %1390 = vmatpush.bf16.msra.mxu2 %v2674_v55 }
 0x7e7   :  { %1276 = vadd.xlane.f32.xlu0 %v1275_v30 }
 0x7e9   :  { %v1269_v31 = vpop.f32.mrf.mxu3 }
 0x7ea   :  { %v1270_v33 = vadd.f32 %v2932_v16, %v1269_v31  ;;  %1391 = vmatpush.bf16.msra.mxu2 %v2666_v60 }
 0x7ec   :  { %v1273_v34 = vadd.f32 %v1270_v33, %v1116_v29  ;;  %v2675_v29 = vld [vmem:[%s3967_s3 + $0x68] sm:$0xf0] }
 0x7ed   :  { %v2678_v56 = vor.u32 %v2850_v54, %v2675_v29 }
 0x7ee   :  { %v1278_v36 = vsel %vm194_vm0, %v1273_v34, 0.0  ;;  %1392 = vmatpush.bf16.msra.mxu2 %v2658_v3 }
 0x7ef   :  { %1279 = vadd.xlane.f32.xlu1 %v1278_v36  ;;  %1404 = vmatpush.bf16.msrb.mxu0 %v2678_v56 }
 0x7f3   :  { %1405 = vmatpush.bf16.msrb.mxu0 %v2670_v63 }
 0x7f7   :  { %1406 = vmatpush.bf16.msrb.mxu0 %v2662_v4 }
 0x85a   :  { %v1277_v37 = vpop.xlane.xlu0 %1276 }
 0x85b   :  { %v1281_v38 = vmul.f32 %v1277_v37, %v3444_v10 }
 0x85d   :  { %v3685_v39 = vsub.f32 %v1272_v28, %v1281_v38  ;;  %v1322_v28 = vperm.slane %v1274_v23, 1  ;;  %v3759_v38 = vld [vmem:[#allocation8 + $0x2] sm:$0x3] }
 0x85f   :  { %v1285_v19 = vmul.f32 %v3685_v39, %v3685_v39 }
 0x861   :  { %v1287_v41 = vsel %vm194_vm0, %v1285_v19, 0.0 }
 0x862   :  { %v1280_v42 = vpop.xlane.xlu1 %1279  ;;  %1288 = vadd.xlane.f32.xlu0 %v1287_v41 }
 0x863   :  { %v1282_v43 = vmul.f32 %v1280_v42, %v3444_v10  ;;  %v1338_v42 = vperm.slane %v3759_v38, 0 }
 0x865   :  { %v3691_v49 = vsub.f32 %v1273_v34, %v1282_v43 }
 0x867   :  { %v1286_v44 = vmul.f32 %v3691_v49, %v3691_v49 }
 0x869   :  { %v1290_v45 = vsel %vm194_vm0, %v1286_v44, 0.0 }
 0x86a   :  { %1291 = vadd.xlane.f32.xlu1 %v1290_v45 }
 0x8d5   :  { %v1289_v62 = vpop.xlane.xlu0 %1288 }
 0x8d6   :  { %v1293_v32 = vmul.f32 %v1289_v62, %v3444_v10 }
 0x8d8   :  { %v1295_v2 = vadd.f32 1e-05, %v1293_v32 }
 0x8da   :  { %2983 = vrsqrt.f32 %v1295_v2  ;;  %vm1303_vm12 = vweird.f32 %v1295_v2 }
 0x8dd   :  { %v1292_v5 = vpop.xlane.xlu1 %1291 }
 0x8de   :  { %v1294_v6 = vmul.f32 %v1292_v5, %v3444_v10 }
 0x8e0   :  { %v2984_v7 = vpop.eup %2983  ;;  %v1296_v11 = vadd.f32 1e-05, %v1294_v6 }
 0x8e1   :  { %v1298_v12 = vmul.f32 %v2984_v7, %v1295_v2  ;;  %vm1304_vm11 = vweird.f32 %v2984_v7 }
 0x8e2   :  { %2985 = vrsqrt.f32 %v1296_v11  ;;  %vm1305_vm13 = vmor %vm1303_vm12, %vm1304_vm11  ;;  %vm1313_vm15 = vweird.f32 %v1296_v11 }
 0x8e3   :  { %v1299_v13 = vmul.f32 %v2984_v7, %v1298_v12 }
 0x8e5   :  { %v1300_v14 = vmul.f32 0.5, %v1299_v13 }
 0x8e7   :  { %v1301_v15 = vsub.f32 1.5, %v1300_v14  ;;  %v3036_v14 = vld [vmem:[#allocation5 + $0x1] ss:$0 sm:$0xff] }
 0x8e8   :  { %v2986_v17 = vpop.eup %2985 }
 0x8e9   :  { %v1302_v20 = vmul.f32 %v2984_v7, %v1301_v15  ;;  %v1308_v8 = vmul.f32 %v2986_v17, %v1296_v11  ;;  %vm1314_vm14 = vweird.f32 %v2986_v17 }
 0x8ea   :  { %vm1315_vm3 = vmor %vm1313_vm15, %vm1314_vm14 }
 0x8eb   :  { %v1309_v21 = vmul.f32 %v2986_v17, %v1308_v8  ;;  %v1306_v24 = vsel %vm1305_vm13, %v2984_v7, %v1302_v20 }
 0x8ec   :  { %v1317_v16 = vmul.f32 %v1306_v24, %v3685_v39  ;;  %v1339_v39 = vperm.slane %v3759_v38, 1 }
 0x8ed   :  { %v1310_v9 = vmul.f32 0.5, %v1309_v21 }
 0x8ee   :  { %v1320_v30 = vmul.f32 %v1319_v26, %v1317_v16 }
 0x8ef   :  { %v1311_v25 = vsub.f32 1.5, %v1310_v9 }
 0x8f0   :  { %v3751_v34 = vadd.f32 %v1322_v28, %v1320_v30 }
 0x8f1   :  { %v1312_v47 = vmul.f32 %v2986_v17, %v1311_v25 }
 0x8f3   :  { %v1316_v27 = vsel %vm1315_vm3, %v2986_v17, %v1312_v47 }
 0x8f4   :  { %v1318_v31 = vmul.f32 %v1316_v27, %v3691_v49 }
 0x8f6   :  { %v1321_v33 = vmul.f32 %v1319_v26, %v1318_v31 }
 0x8f8   :  { %v3753_v36 = vadd.f32 %v1322_v28, %v1321_v33 }
 0x8fa   :  { %v1336_v37 = vpack.c.bf16 %v3753_v36, %v3751_v34 }
 0x8fc   :  { %2687 = vmatmul.msk.bf16.vlgmr.msra.gmra.mxu2 %vm194_vm0, %v1336_v37  ;;  %2688 = vmatmul.msk.bf16.vlgmr.msrb.gmra.mxu0 %vm194_vm0, %v1336_v37 }
 0x979   :  { %v1408_v19 = vpop.f32.mrf.mxu0 }
 0x97a   :  { %v3764_v41 = vadd.f32 %v1408_v19, %v1339_v39 }
 0x97c   :  { %1484 = vmatpush.msrb.mxu2 %v3764_v41 }
 0x97f   :  { %v1394_v43 = vpop.f32.mrf.mxu2 }
 0x980   :  { %v1395_v49 = vadd.f32 %v1394_v43, %v1338_v42 }
 0x981   :  { %v3800_v4 = vpop.f32.mrf.mxu0 }
 0x982   :  { %1652 = vrot.lane.b32.xlu1 %v1395_v49, %s3297_s17  ;;  %1491 = vrot.lane.b32.xlu2 %v1395_v49, %s3309_s20 }
 0x983   :  { %1414 = vrot.lane.b32.xlu0 %v1395_v49, %s3987_s21 }
 0x987   :  { %v1396_v44 = vpop.f32.mrf.mxu2 }
 0x988   :  { %v1397_v45 = vadd.f32 %v1396_v44, %v1338_v42 }
 0x98a   :  { %1572 = vrot.lane.b32.xlu1 %v1395_v49, %s3988_s2  ;;  %1650 = vrot.lane.b32.xlu2 %v1395_v49, %s3310_s30 }
 0x98b   :  { %1489 = vrot.lane.b32.xlu0 %v1395_v49, %s3308_s18 }
 0x992   :  { %1984 = vrot.lane.b32.xlu1 %v1397_v45, %s3297_s17  ;;  %1821 = vrot.lane.b32.xlu2 %v1397_v45, %s3308_s18 }
 0x993   :  { %1823 = vrot.lane.b32.xlu0 %v1397_v45, %s3309_s20 }
 0x99a   :  { %1904 = vrot.lane.b32.xlu1 %v1397_v45, %s3988_s2  ;;  %1746 = vrot.lane.b32.xlu2 %v1397_v45, %s3987_s21 }
 0x99b   :  { %1570 = vrot.lane.b32.xlu0 %v1395_v49, %s3307_s27 }
 0x9a2   :  { %1902 = vrot.lane.b32.xlu2 %v1397_v45, %s3307_s27 }
 0x9a3   :  { %1982 = vrot.lane.b32.xlu0 %v1397_v45, %s3310_s30 }
 0x9dc   :  { %v1492_v46 = vpop.permute.xlu2 %1491 }
 0x9e4   :  { %v1651_v18 = vpop.permute.xlu2 %1650 }
 0x9ec   :  { %v1822_v40 = vpop.permute.xlu2 %1821 }
 0x9f4   :  { %v1653_v48 = vpop.permute.xlu1 %1652  ;;  %v1747_v52 = vpop.permute.xlu2 %1746 }
 0x9f5   :  { %v1415_v50 = vpop.permute.xlu0 %1414  ;;  %2698 = vmatpush.xpose.msk.msrb.mxu3 %vm342_vm8, %v1653_v48 }
 0x9f6   :  { %2689 = vmatpush.xpose.msk.msrb.mxu1 %vm342_vm8, %v1415_v50 }
 0x9f8   :  { %2699 = vmatmul.msk.f32.vlgmr.msrb.gmra.mxu3 %vm342_vm8, %v1651_v18 }
 0x9f9   :  { %2690 = vmatmul.msk.f32.vlgmr.msrb.gmra.mxu1 %vm342_vm8, %v1395_v49 }
 0x9fa   :  { %2692 = vmatpush.xpose.msk.msra.mxu1 %vm342_vm8, %v1492_v46 }
 0x9fc   :  { %v1573_v51 = vpop.permute.xlu1 %1572  ;;  %v1903_v58 = vpop.permute.xlu2 %1902 }
 0x9fd   :  { %v1490_v53 = vpop.permute.xlu0 %1489  ;;  %2695 = vmatpush.xpose.msk.msra.mxu0 %vm342_vm8, %v1573_v51 }
 0xa01   :  { %2701 = vmatpush.xpose.msk.msrb.mxu0 %vm342_vm8, %v1747_v52  ;;  %2693 = vmatmul.msk.f32.vlgmr.msra.gmra.mxu1 %vm342_vm8, %v1490_v53 }
 0xa04   :  { %v1985_v54 = vpop.permute.xlu1 %1984 }
 0xa05   :  { %v1824_v55 = vpop.permute.xlu0 %1823 }
 0xa06   :  { %2704 = vmatpush.xpose.msk.msra.mxu3 %vm342_vm8, %v1824_v55 }
 0xa09   :  { %2705 = vmatmul.msk.f32.vlgmr.msra.gmra.mxu3 %vm342_vm8, %v1822_v40 }
 0xa0a   :  { %2710 = vmatpush.xpose.msk.msrb.mxu3 %vm342_vm8, %v1985_v54 }
 0xa0c   :  { %v1905_v29 = vpop.permute.xlu1 %1904 }
 0xa0d   :  { %v1571_v56 = vpop.permute.xlu0 %1570 }
 0xa0e   :  { %2696 = vmatmul.msk.f32.vlgmr.msra.gmra.mxu0 %vm342_vm8, %v1571_v56 }
 0xa0f   :  { %2707 = vmatpush.xpose.msk.msra.mxu0 %vm342_vm8, %v1905_v29 }
 0xa15   :  { %v1983_v57 = vpop.permute.xlu0 %1982 }
 0xa16   :  { %2702 = vmatmul.msk.f32.vlgmr.msrb.gmra.mxu0 %vm342_vm8, %v1397_v45  ;;  %2711 = vmatmul.msk.f32.vlgmr.msrb.gmra.mxu3 %vm342_vm8, %v1983_v57 }
 0xa1e   :  { %2708 = vmatmul.msk.f32.vlgmr.msra.gmra.mxu0 %vm342_vm8, %v1903_v58 }
 0xa76   :  { %v1437_v59 = vpop.f32.mrf.mxu1 }
 0xa77   :  { %v1440_v60 = vmul.f32 0.25, %v1437_v59 }
 0xa79   :  { %v1441_v62 = vadd.f32 %v3035_v61, %v1440_v60 }
 0xa7b   :  { %v1675_v63 = vpop.f32.mrf.mxu3  ;;  %v1442_v32 = vsel %vm370_vm9, %v1441_v62, -inf }
 0xa7c   :  { %v1678_v0 = vmul.f32 0.25, %v1675_v63  ;;  %1443 = vmax.xlane.f32.xlu0 %v1442_v32 }
 0xa7e   :  { %v1514_v1 = vpop.f32.mrf.mxu1  ;;  %v1679_v22 = vadd.f32 %v3035_v61, %v1678_v0 }
 0xa7f   :  { %v1517_v2 = vmul.f32 0.25, %v1514_v1 }
 0xa80   :  { %v1680_v3 = vsel %vm370_vm9, %v1679_v22, -inf }
 0xa81   :  { %1681 = vmax.xlane.f32.xlu2 %v1680_v3  ;;  %v1518_v35 = vadd.f32 %v3035_v61, %v1517_v2 }
 0xa83   :  { %v1519_v5 = vsel %vm370_vm9, %v1518_v35, -inf }
 0xa84   :  { %1520 = vmax.xlane.f32.xlu1 %v1519_v5 }
 0xa8b   :  { %v1595_v6 = vpop.f32.mrf.mxu0 }
 0xa8c   :  { %v1598_v7 = vmul.f32 0.25, %v1595_v6  ;;  %v1846_v11 = vpop.f32.mrf.mxu3 }
 0xa8d   :  { %v1849_v12 = vmul.f32 0.25, %v1846_v11 }
 0xa8e   :  { %v1599_v13 = vadd.f32 %v3035_v61, %v1598_v7 }
 0xa8f   :  { %v1850_v15 = vadd.f32 %v3036_v14, %v1849_v12 }
 0xa90   :  { %v1600_v17 = vsel %vm370_vm9, %v1599_v13, -inf }
 0xa91   :  { %1601 = vmax.xlane.f32.xlu0 %v1600_v17  ;;  %v1851_v20 = vsel %vm370_vm9, %v1850_v15, -inf }
 0xa92   :  { %1852 = vmax.xlane.f32.xlu1 %v1851_v20 }
 0xa93   :  { %v1769_v8 = vpop.f32.mrf.mxu0 }
 0xa94   :  { %v1772_v21 = vmul.f32 0.25, %v1769_v8 }
 0xa96   :  { %v1773_v23 = vadd.f32 %v3036_v14, %v1772_v21 }
 0xa98   :  { %v1774_v24 = vsel %vm370_vm9, %v1773_v23, -inf }
 0xa99   :  { %1775 = vmax.xlane.f32.xlu2 %v1774_v24  ;;  %v2007_v9 = vpop.f32.mrf.mxu3 }
 0xa9a   :  { %v2010_v25 = vmul.f32 0.25, %v2007_v9 }
 0xa9b   :  { %v1927_v26 = vpop.f32.mrf.mxu0 }
 0xa9c   :  { %v1930_v16 = vmul.f32 0.25, %v1927_v26  ;;  %v2011_v47 = vadd.f32 %v3036_v14, %v2010_v25 }
 0xa9e   :  { %v2012_v27 = vsel %vm370_vm9, %v2011_v47, -inf  ;;  %v1931_v28 = vadd.f32 %v3036_v14, %v1930_v16 }
 0xa9f   :  { %2013 = vmax.xlane.f32.xlu0 %v2012_v27 }
 0xaa0   :  { %v1932_v30 = vsel %vm370_vm9, %v1931_v28, -inf }
 0xaa1   :  { %1933 = vmax.xlane.f32.xlu1 %v1932_v30 }
 0xab1   :  { %1704 = vrot.lane.b32.xlu2 %v3764_v41, %s3310_s30 }
 0xaba   :  { %1544 = vrot.lane.b32.xlu1 %v3764_v41, %s3308_s18 }
 0xaef   :  { %v1444_v31 = vpop.xlane.xlu0 %1443 }
 0xaf0   :  { %v1445_v33 = vsub.f32 %v1441_v62, %v1444_v31 }
 0xaf2   :  { %v1446_v37 = vmul.f32 1.442695, %v1445_v33 }
 0xaf4   :  { %2987 = vpow2.f32 %v1446_v37  ;;  %v1682_v19 = vpop.xlane.xlu2 %1681 }
 0xaf5   :  { %v1683_v42 = vsub.f32 %v1679_v22, %v1682_v19 }
 0xaf7   :  { %v1684_v43 = vmul.f32 1.442695, %v1683_v42  ;;  %v1521_v49 = vpop.xlane.xlu1 %1520 }
 0xaf8   :  { %v1522_v44 = vsub.f32 %v1518_v35, %v1521_v49  ;;  %v3837_v35 = vadd.f32 %v3800_v4, %v1339_v39 }
 0xaf9   :  { %2989 = vpow2.f32 %v1684_v43 }
 0xafa   :  { %v3812_v45 = vpop.eup %2987  ;;  %v1523_v46 = vmul.f32 1.442695, %v1522_v44 }
 0xafb   :  { %v1448_v18 = vsel %vm370_vm9, %v3812_v45, 0.0 }
 0xafc   :  { %2991 = vpow2.f32 %v1523_v46  ;;  %1449 = vadd.xlane.f32.xlu2 %v1448_v18 }
 0xaff   :  { %v3816_v40 = vpop.eup %2989 }
 0xb00   :  { %v1686_v48 = vsel %vm370_vm9, %v3816_v40, 0.0 }
 0xb01   :  { %1687 = vadd.xlane.f32.xlu1 %v1686_v48 }
 0xb02   :  { %v3820_v50 = vpop.eup %2991 }
 0xb03   :  { %v1525_v51 = vsel %vm370_vm9, %v3820_v50, 0.0 }
 0xb04   :  { %1526 = vadd.xlane.f32.xlu0 %v1525_v51  ;;  %v1602_v52 = vpop.xlane.xlu0 %1601 }
 0xb05   :  { %v1603_v53 = vsub.f32 %v1599_v13, %v1602_v52  ;;  %v1853_v54 = vpop.xlane.xlu1 %1852 }
 0xb06   :  { %v1854_v55 = vsub.f32 %v1850_v15, %v1853_v54 }
 0xb07   :  { %v1604_v29 = vmul.f32 1.442695, %v1603_v53 }
 0xb08   :  { %v1855_v56 = vmul.f32 1.442695, %v1854_v55 }
 0xb09   :  { %2993 = vpow2.f32 %v1604_v29 }
 0xb0a   :  { %2995 = vpow2.f32 %v1855_v56 }
 0xb0c   :  { %v1776_v57 = vpop.xlane.xlu2 %1775 }
 0xb0d   :  { %v1777_v58 = vsub.f32 %v1773_v23, %v1776_v57 }
 0xb0f   :  { %v3824_v59 = vpop.eup %2993  ;;  %v1778_v60 = vmul.f32 1.442695, %v1777_v58 }
 0xb10   :  { %v3826_v61 = vpop.eup %2995  ;;  %v1606_v62 = vsel %vm370_vm9, %v3824_v59, 0.0 }
 0xb11   :  { %2997 = vpow2.f32 %v1778_v60  ;;  %1607 = vadd.xlane.f32.xlu2 %v1606_v62  ;;  %v1857_v63 = vsel %vm370_vm9, %v3826_v61, 0.0 }
 0xb12   :  { %1858 = vadd.xlane.f32.xlu0 %v1857_v63  ;;  %v2014_v32 = vpop.xlane.xlu0 %2013 }
 0xb13   :  { %v2015_v2 = vsub.f32 %v2011_v47, %v2014_v32 }
 0xb14   :  { %v1934_v0 = vpop.xlane.xlu1 %1933  ;;  %v1705_v12 = vpop.permute.xlu2 %1704 }
 0xb15   :  { %v1935_v1 = vsub.f32 %v1931_v28, %v1934_v0  ;;  %v2016_v6 = vmul.f32 1.442695, %v2015_v2 }
 0xb17   :  { %v3832_v22 = vpop.eup %2997  ;;  %v1936_v3 = vmul.f32 1.442695, %v1935_v1 }
 0xb18   :  { %v1780_v5 = vsel %vm370_vm9, %v3832_v22, 0.0 }
 0xb19   :  { %2999 = vpow2.f32 %v1936_v3  ;;  %1781 = vadd.xlane.f32.xlu2 %v1780_v5 }
 0xb1a   :  { %1876 = vrot.lane.b32.xlu1 %v3837_v35, %s3308_s18  ;;  %3001 = vpow2.f32 %v2016_v6 }
 0xb1f   :  { %v3843_v7 = vpop.eup %2999 }
 0xb20   :  { %v1938_v11 = vsel %vm370_vm9, %v3843_v7, 0.0  ;;  %v3849_v38 = vpop.eup %3001 }
 0xb21   :  { %1939 = vadd.xlane.f32.xlu0 %v1938_v11  ;;  %v2018_v39 = vsel %vm370_vm9, %v3849_v38, 0.0 }
 0xb22   :  { %2036 = vrot.lane.b32.xlu1 %v3837_v35, %s3310_s30 }
 0xb29   :  { %2019 = vadd.xlane.f32.xlu0 %v2018_v39 }
 0xb2c   :  { %v1545_v4 = vpop.permute.xlu1 %1544 }
 0xb2d   :  { %1565 = vmatpush.msra.mxu2 %v1545_v4 }
 0xb31   :  { %1956 = vrot.lane.b32.xlu2 %v3837_v35, %s3307_s27 }
 0xb3d   :  { %1624 = vrot.lane.b32.xlu0 %v3764_v41, %s3307_s27 }
 0xb6f   :  { %v1450_v13 = vpop.xlane.xlu2 %1449 }
 0xb70   :  { %3003 = vrcp.f32 %v1450_v13  ;;  %v1462_v21 = vand.u32 2147483648, %v1450_v13  ;;  %v1460_v9 = vand.u32 2147483647, %v1450_v13  ;;  %vm1456_vm5 = vweird.f32 %v1450_v13 }
 0xb72   :  { %v1463_v41 = vor.u32 1.1754944e-38, %v1462_v21  ;;  %vm1461_vm7 = vcmp.eq.f32.partialorder %v1460_v9, 8.507059e+37 }
 0xb74   :  { %v1688_v14 = vpop.xlane.xlu1 %1687 }
 0xb75   :  { %3005 = vrcp.f32 %v1688_v14  ;;  %v1700_v51 = vand.u32 2147483648, %v1688_v14  ;;  %vm1694_vm15 = vweird.f32 %v1688_v14  ;;  %v1698_v52 = vand.u32 2147483647, %v1688_v14 }
 0xb76   :  { %v3004_v15 = vpop.eup %3003 }
 0xb77   :  { %v1452_v17 = vmul.f32 %v3004_v15, %v1450_v13  ;;  %v1527_v20 = vpop.xlane.xlu0 %1526  ;;  %vm1457_vm4 = vweird.f32 %v3004_v15  ;;  %v1701_v56 = vor.u32 1.1754944e-38, %v1700_v51 }
 0xb78   :  { %3007 = vrcp.f32 %v1527_v20  ;;  %vm1458_vm6 = vmor %vm1456_vm5, %vm1457_vm4  ;;  %v1539_v37 = vand.u32 2147483648, %v1527_v20  ;;  %v1537_v43 = vand.u32 2147483647, %v1527_v20  ;;  %vm1533_vm11 = vweird.f32 %v1527_v20 }
 0xb79   :  { %v1453_v8 = vsub.f32 1.0, %v1452_v17  ;;  %vm1699_vm4 = vcmp.eq.f32.partialorder %v1698_v52, 8.507059e+37 }
 0xb7a   :  { %v1540_v46 = vor.u32 1.1754944e-38, %v1539_v37  ;;  %vm1538_vm14 = vcmp.eq.f32.partialorder %v1537_v43, 8.507059e+37 }
 0xb7b   :  { %v3006_v23 = vpop.eup %3005  ;;  %v1454_v24 = vmul.f32 %v3004_v15, %v1453_v8 }
 0xb7c   :  { %v1690_v25 = vmul.f32 %v3006_v23, %v1688_v14  ;;  %vm1695_vm13 = vweird.f32 %v3006_v23 }
 0xb7d   :  { %v1455_v26 = vadd.f32 %v3004_v15, %v1454_v24  ;;  %vm1696_vm3 = vmor %vm1694_vm15, %vm1695_vm13 }
 0xb7e   :  { %v3008_v16 = vpop.eup %3007  ;;  %v1691_v27 = vsub.f32 1.0, %v1690_v25 }
 0xb7f   :  { %v1459_v47 = vsel %vm1458_vm6, %v3004_v15, %v1455_v26  ;;  %v1529_v28 = vmul.f32 %v3008_v16, %v1527_v20  ;;  %vm1534_vm10 = vweird.f32 %v3008_v16 }
 0xb80   :  { %v1464_v30 = vsel %vm1461_vm7, %v1463_v41, %v1459_v47  ;;  %v1692_v19 = vmul.f32 %v3006_v23, %v1691_v27  ;;  %vm1535_vm12 = vmor %vm1533_vm11, %vm1534_vm10 }
 0xb81   :  { %v1530_v31 = vsub.f32 1.0, %v1529_v28  ;;  %v1465_v33 = vmul.f32 %v3812_v45, %v1464_v30 }
 0xb82   :  { %v1693_v18 = vadd.f32 %v3006_v23, %v1692_v19 }
 0xb83   :  { %v1531_v42 = vmul.f32 %v3008_v16, %v1530_v31  ;;  %2691 = vmatmul.msk.f32.vlgmr.msrb.gmra.mxu2 %vm370_vm9, %v1465_v33 }
 0xb84   :  { %1725 = vmatpush.msrb.mxu2 %v1705_v12  ;;  %v1697_v54 = vsel %vm1696_vm3, %v3006_v23, %v1693_v18  ;;  %v1608_v55 = vpop.xlane.xlu2 %1607 }
 0xb85   :  { %v1532_v49 = vadd.f32 %v3008_v16, %v1531_v42  ;;  %v1859_v44 = vpop.xlane.xlu0 %1858  ;;  %v1702_v60 = vsel %vm1699_vm4, %v1701_v56, %v1697_v54  ;;  %v1620_v25 = vand.u32 2147483648, %v1608_v55 }
 0xb86   :  { %3009 = vrcp.f32 %v1859_v44  ;;  %v1871_v63 = vand.u32 2147483648, %v1859_v44  ;;  %v1869_v0 = vand.u32 2147483647, %v1859_v44  ;;  %vm1865_vm6 = vweird.f32 %v1859_v44 }
 0xb87   :  { %v1536_v48 = vsel %vm1535_vm12, %v3008_v16, %v1532_v49  ;;  %3011 = vrcp.f32 %v1608_v55  ;;  %vm1614_vm12 = vweird.f32 %v1608_v55  ;;  %v1621_v31 = vor.u32 1.1754944e-38, %v1620_v25 }
 0xb88   :  { %v1541_v45 = vsel %vm1538_vm14, %v1540_v46, %v1536_v48  ;;  %v1872_v2 = vor.u32 1.1754944e-38, %v1871_v63  ;;  %vm1870_vm10 = vcmp.eq.f32.partialorder %v1869_v0, 8.507059e+37 }
 0xb89   :  { %v1542_v53 = vmul.f32 %v3820_v50, %v1541_v45  ;;  %v1703_v50 = vmul.f32 %v3816_v40, %v1702_v60 }
 0xb8b   :  { %2694 = vmatmul.msk.f32.vlgmr.msra.gmra.mxu2 %vm370_vm9, %v1542_v53 }
 0xb8c   :  { %v3010_v29 = vpop.eup %3009  ;;  %v1877_v57 = vpop.permute.xlu1 %1876 }
 0xb8d   :  { %v1861_v58 = vmul.f32 %v3010_v29, %v1859_v44  ;;  %1897 = vmatpush.msra.mxu2 %v1877_v57  ;;  %vm1866_vm5 = vweird.f32 %v3010_v29  ;;  %v1782_v6 = vpop.xlane.xlu2 %1781  ;;  %v3012_v39 = vpop.eup %3011 }
 0xb8e   :  { %vm1867_vm7 = vmor %vm1865_vm6, %vm1866_vm5  ;;  %3013 = vrcp.f32 %v1782_v6  ;;  %v1610_v12 = vmul.f32 %v3012_v39, %v1608_v55  ;;  %vm1615_vm11 = vweird.f32 %v3012_v39  ;;  %v1794_v46 = vand.u32 2147483648, %v1782_v6 }
 0xb8f   :  { %v1862_v62 = vsub.f32 1.0, %v1861_v58  ;;  %vm1616_vm13 = vmor %vm1614_vm12, %vm1615_vm11  ;;  %v1792_v48 = vand.u32 2147483647, %v1782_v6 }
 0xb90   :  { %v1611_v14 = vsub.f32 1.0, %v1610_v12  ;;  %v1795_v54 = vor.u32 1.1754944e-38, %v1794_v46  ;;  %v2854_v12 = vld [vmem:[%s3969_s5 + $0x20] sm:$0xff] }
 0xb91   :  { %v1863_v32 = vmul.f32 %v3010_v29, %v1862_v62  ;;  %vm1793_vm11 = vcmp.eq.f32.partialorder %v1792_v48, 8.507059e+37 }
 0xb92   :  { %v1612_v17 = vmul.f32 %v3012_v39, %v1611_v14 }
 0xb93   :  { %v1864_v1 = vadd.f32 %v3010_v29, %v1863_v32  ;;  %2700 = vmatmul.msk.f32.vlgmr.msrb.gmra.mxu2 %vm370_vm9, %v1703_v50 }
 0xb94   :  { %v3863_v3 = vpop.xlane.xlu0 %1939  ;;  %v2037_v11 = vpop.permute.xlu1 %2036  ;;  %v1613_v23 = vadd.f32 %v3012_v39, %v1612_v17 }
 0xb95   :  { %v1868_v5 = vsel %vm1867_vm7, %v3010_v29, %v1864_v1  ;;  %2057 = vmatpush.msrb.mxu2 %v2037_v11  ;;  %v3014_v15 = vpop.eup %3013  ;;  %vm1788_vm7 = vweird.f32 %v1782_v6  ;;  %v1952_v56 = vand.u32 2147483648, %v3863_v3 }
 0xb96   :  { %v1873_v4 = vsel %vm1870_vm10, %v1872_v2, %v1868_v5  ;;  %v1784_v20 = vmul.f32 %v3014_v15, %v1782_v6  ;;  %v1617_v27 = vsel %vm1616_vm13, %v3012_v39, %v1613_v23  ;;  %vm1789_vm6 = vweird.f32 %v3014_v15  ;;  %v2856_v39 = vld [vmem:[%s3969_s5 + $0x30] sm:$0xff] }
 0xb97   :  { %v1874_v13 = vmul.f32 %v3826_v61, %v1873_v4  ;;  %v1618_v61 = vand.u32 2147483647, %v1608_v55  ;;  %vm1790_vm10 = vmor %vm1788_vm7, %vm1789_vm6  ;;  %v1957_v55 = vpop.permute.xlu2 %1956  ;;  %vm1946_vm13 = vweird.f32 %v3863_v3  ;;  %v1953_v60 = vor.u32 1.1754944e-38, %v1952_v56  ;;  %v2855_v4 = vld [vmem:[%s3969_s5 + $0x28] sm:$0xff]  ;;  %v2858_v56 = vld [vmem:[#allocation11 + $0x20] sm:$0xff] }
 0xb98   :  { %v1785_v24 = vsub.f32 1.0, %v1784_v20 }
 0xb99   :  { %vm1619_vm3 = vcmp.eq.f32.partialorder %v1618_v61, 8.507059e+37 }
 0xb9a   :  { %v1786_v28 = vmul.f32 %v3014_v15, %v1785_v24  ;;  %v1622_v19 = vsel %vm1619_vm3, %v1621_v31, %v1617_v27 }
 0xb9b   :  { %2706 = vmatmul.msk.f32.vlgmr.msra.gmra.mxu2 %vm370_vm9, %v1874_v13  ;;  %v1623_v45 = vmul.f32 %v3824_v59, %v1622_v19  ;;  %v1950_v59 = vand.u32 2147483647, %v3863_v3 }
 0xb9c   :  { %v2020_v40 = vpop.xlane.xlu0 %2019  ;;  %v1787_v43 = vadd.f32 %v3014_v15, %v1786_v28 }
 0xb9d   :  { %3015 = vrcp.f32 %v2020_v40  ;;  %v2032_v16 = vand.u32 2147483648, %v2020_v40  ;;  %v2030_v47 = vand.u32 2147483647, %v2020_v40  ;;  %vm2026_vm15 = vweird.f32 %v2020_v40 }
 0xb9e   :  { %3017 = vrcp.f32 %v3863_v3  ;;  %v1791_v52 = vsel %vm1790_vm10, %v3014_v15, %v1787_v43 }
 0xb9f   :  { %v2033_v37 = vor.u32 1.1754944e-38, %v2032_v16  ;;  %vm2031_vm5 = vcmp.eq.f32.partialorder %v2030_v47, 8.507059e+37  ;;  %v2933_v47 = vld [vmem:[#allocation10 + $0x1] ss:$0 sm:$0xff] }
 0xba3   :  { %v3016_v8 = vpop.eup %3015 }
 0xba4   :  { %v2022_v21 = vmul.f32 %v3016_v8, %v2020_v40  ;;  %v3018_v9 = vpop.eup %3017  ;;  %vm2027_vm14 = vweird.f32 %v3016_v8 }
 0xba5   :  { %v1942_v30 = vmul.f32 %v3018_v9, %v3863_v3  ;;  %vm2028_vm4 = vmor %vm2026_vm15, %vm2027_vm14  ;;  %vm1947_vm12 = vweird.f32 %v3018_v9  ;;  %vm1951_vm15 = vcmp.eq.f32.partialorder %v1950_v59, 8.507059e+37 }
 0xba6   :  { %v2023_v26 = vsub.f32 1.0, %v2022_v21  ;;  %vm1948_vm14 = vmor %vm1946_vm13, %vm1947_vm12  ;;  %vm2403_vm13 = vcmask 1040384  }
 0xba7   :  { %v1943_v49 = vsub.f32 1.0, %v1942_v30 }
 0xba8   :  { %v2024_v41 = vmul.f32 %v3016_v8, %v2023_v26 }
 0xba9   :  { %v1944_v53 = vmul.f32 %v3018_v9, %v1943_v49 }
 0xbaa   :  { %v2025_v33 = vadd.f32 %v3016_v8, %v2024_v41 }
 0xbab   :  { %v1945_v29 = vadd.f32 %v3018_v9, %v1944_v53  ;;  %v2860_v53 = vld [vmem:[#allocation11 + $0x30] sm:$0xff] }
 0xbac   :  { %v2029_v42 = vsel %vm2028_vm4, %v3016_v8, %v2025_v33 }
 0xbad   :  { %v2034_v44 = vsel %vm2031_vm5, %v2033_v37, %v2029_v42  ;;  %v1949_v58 = vsel %vm1948_vm14, %v3018_v9, %v1945_v29  ;;  %vm2406_vm14 = vcmask 517120  }
 0xbae   :  { %v2035_v18 = vmul.f32 %v3849_v38, %v2034_v44  ;;  %v1796_v38 = vsel %vm1793_vm11, %v1795_v54, %v1791_v52  ;;  %v2859_v54 = vld [vmem:[#allocation11 + $0x28] sm:$0xff] }
 0xbaf   :  { %v1625_v51 = vpop.permute.xlu0 %1624  ;;  %v1797_v57 = vmul.f32 %v3832_v22, %v1796_v38 }
 0xbb0   :  { %1645 = vmatpush.msrb.mxu1 %v1625_v51  ;;  %2712 = vmatmul.msk.f32.vlgmr.msrb.gmra.mxu2 %vm370_vm9, %v2035_v18 }
 0xbb1   :  { %2697 = vmatmul.msk.f32.vlgmr.msrb.gmra.mxu1 %vm370_vm9, %v1623_v45 }
 0xbb2   :  { %1816 = vmatpush.msra.mxu1 %v3837_v35  ;;  %v1954_v35 = vsel %vm1951_vm15, %v1953_v60, %v1949_v58 }
 0xbb3   :  { %v1955_v62 = vmul.f32 %v3843_v7, %v1954_v35  ;;  %v2857_v7 = vld [vmem:[%s3969_s5 + $0x38] sm:$0xff] }
 0xbb4   :  { %1977 = vmatpush.msrb.mxu1 %v1957_v55  ;;  %2123 = vmatpush.bf16.msrb.mxu0 %v2857_v7 }
 0xbb8   :  { %2124 = vmatpush.bf16.msrb.mxu0 %v2856_v39 }
 0xbb9   :  { %2703 = vmatmul.msk.f32.vlgmr.msra.gmra.mxu1 %vm370_vm9, %v1797_v57 }
 0xbbc   :  { %2125 = vmatpush.bf16.msrb.mxu0 %v2855_v4 }
 0xbc0   :  { %2126 = vmatpush.bf16.msrb.mxu0 %v2854_v12 }
 0xbc1   :  { %2709 = vmatmul.msk.f32.vlgmr.msrb.gmra.mxu1 %vm370_vm9, %v1955_v62 }
 0xc06   :  { %v1486_v63 = vpop.f32.mrf.mxu2 }
 0xc0e   :  { %v1567_v32 = vpop.f32.mrf.mxu2 }
 0xc16   :  { %v1727_v0 = vpop.f32.mrf.mxu2 }
 0xc1e   :  { %v1899_v50 = vpop.f32.mrf.mxu2 }
 0xc1f   :  { %v2913_v1 = vpack.i.bf16 %v1899_v50, %v1567_v32 }
 0xc21   :  { %2914 = vrot.lane.b32.xlu1 %v2913_v1, %s3297_s17  ;;  %s3312_s17 = smov [#allocation17]  }
 0xc2e   :  { %v1647_v2 = vpop.f32.mrf.mxu1 }
 0xc33   :  { %v2059_v22 = vpop.f32.mrf.mxu2 }
 0xc34   :  { %v2923_v3 = vpack.i.bf16 %v2059_v22, %v1727_v0  ;;  %v2738_v22 = vld [vmem:[%s3971_s7 + $0x2] sm:$0x3] }
 0xc35   :  { %v2184_v12 = vperm.slane %v2738_v22, 1 }
 0xc36   :  { %2924 = vrot.lane.b32.xlu2 %v2923_v3, %s3309_s20  ;;  %v1818_v5 = vpop.f32.mrf.mxu1 }
 0xc3e   :  { %v1979_v6 = vpop.f32.mrf.mxu1 }
 0xc3f   :  { %v2918_v11 = vpack.i.bf16 %v1979_v6, %v1647_v2 }
 0xc41   :  { %2919 = vrot.lane.b32.xlu0 %v2918_v11, %s3988_s2  ;;  %v2181_v11 = vperm.slane %v2738_v22, 0 }
 0xc90   :  { %v2925_v15 = vpop.permute.xlu2 %2924 }
 0xc91   :  { %v2927_v21 = vunpack.i.h.bf16 %v2925_v15  ;;  %v2926_v23 = vunpack.i.l.bf16 %v2925_v15 }
 0xc93   :  { %v2915_v13 = vpop.permute.xlu1 %2914 }
 0xc94   :  { %v2917_v40 = vunpack.i.h.bf16 %v2915_v13  ;;  %v2916_v14 = vunpack.i.l.bf16 %v2915_v13 }
 0xc96   :  { %v1742_v24 = vsel %vm342_vm8, %v1486_v63, %v2916_v14  ;;  %v2074_v9 = vsel %vm342_vm8, %v1818_v5, %v2917_v40 }
 0xcb3   :  { %v2920_v17 = vpop.permute.xlu0 %2919 }
 0xcb4   :  { %v2922_v20 = vunpack.i.h.bf16 %v2920_v17  ;;  %v2921_v8 = vunpack.i.l.bf16 %v2920_v17 }
 0xcb6   :  { %v2075_v25 = vsel %vm672_vm1, %v2074_v9, %v2922_v20  ;;  %v1743_v26 = vsel %vm672_vm1, %v1742_v24, %v2921_v8  ;;  %v2869_v8 = vld [vmem:[%s3974_s10 + $0x78] sm:$0xff]  ;;  %v2866_v24 = vld [vmem:[%s3974_s10 + $0x60] sm:$0xff] }
 0xcb7   :  { %v2076_v61 = vsel %vm674_vm2, %v2075_v25, %v2927_v21  ;;  %v1744_v16 = vsel %vm674_vm2, %v1743_v26, %v2926_v23  ;;  %2332 = vmatpush.bf16.msra.mxu3 %v2869_v8  ;;  %v2868_v21 = vld [vmem:[%s3974_s10 + $0x70] sm:$0xff]  ;;  %v2867_v23 = vld [vmem:[%s3974_s10 + $0x68] sm:$0xff]  ;;  %v2865_v9 = vld [vmem:[%s3974_s10 + $0x58] sm:$0xff] }
 0xcb8   :  { %v2088_v41 = vpack.c.bf16 %v2076_v61, %v1744_v16  ;;  %v2864_v25 = vld [vmem:[%s3974_s10 + $0x50] sm:$0xff]  ;;  %v2863_v26 = vld [vmem:[%s3974_s10 + $0x48] sm:$0xff]  ;;  %v2934_v61 = vld [vmem:[#allocation13 + $0x1] ss:$0 sm:$0xff] }
 0xcba   :  { %2737 = vmatmul.msk.bf16.vlgmr.msrb.gmra.mxu0 %vm194_vm0, %v2088_v41  ;;  %v2862_v41 = vld [vmem:[%s3974_s10 + $0x40] sm:$0xff] }
 0xcbb   :  { %2333 = vmatpush.bf16.msra.mxu3 %v2868_v21 }
 0xcbf   :  { %2334 = vmatpush.bf16.msra.mxu3 %v2867_v23 }
 0xcc3   :  { %2335 = vmatpush.bf16.msra.mxu3 %v2866_v24  ;;  %v2871_v24 = vld [vmem:[#allocation16 + $0x8] sm:$0xff] }
 0xcc7   :  { %2336 = vmatpush.bf16.msra.mxu3 %v2865_v9 }
 0xccb   :  { %2337 = vmatpush.bf16.msra.mxu3 %v2864_v25 }
 0xccf   :  { %2338 = vmatpush.bf16.msra.mxu3 %v2863_v26 }
 0xcd3   :  { %2339 = vmatpush.bf16.msra.mxu3 %v2862_v41 }
 0xd37   :  { %v2128_v27 = vpop.f32.mrf.mxu0 }
 0xd38   :  { %v2129_v28 = vadd.f32 %v2933_v47, %v2128_v27 }
 0xd3a   :  { %v2133_v30 = vadd.f32 %v2129_v28, %v3751_v34 }
 0xd3c   :  { %v2137_v31 = vsel %vm194_vm0, %v2133_v30, 0.0 }
 0xd3d   :  { %2138 = vadd.xlane.f32.xlu1 %v2137_v31 }
 0xd3f   :  { %v2130_v33 = vpop.f32.mrf.mxu0 }
 0xd40   :  { %v2131_v37 = vadd.f32 %v2933_v47, %v2130_v33 }
 0xd42   :  { %v2134_v19 = vadd.f32 %v2131_v37, %v3753_v36  ;;  %v2861_v36 = vld [vmem:[#allocation11 + $0x38] sm:$0xff] }
 0xd43   :  { %2233 = vmatpush.bf16.msra.mxu1 %v2861_v36 }
 0xd44   :  { %v2140_v42 = vsel %vm194_vm0, %v2134_v19, 0.0 }
 0xd45   :  { %2141 = vadd.xlane.f32.xlu0 %v2140_v42 }
 0xd47   :  { %2234 = vmatpush.bf16.msra.mxu1 %v2860_v53 }
 0xd4b   :  { %2235 = vmatpush.bf16.msra.mxu1 %v2859_v54 }
 0xd4f   :  { %2236 = vmatpush.bf16.msra.mxu1 %v2858_v56 }
 0xdb0   :  { %v2139_v43 = vpop.xlane.xlu1 %2138 }
 0xdb1   :  { %v2143_v49 = vmul.f32 %v2139_v43, %v3444_v10 }
 0xdb3   :  { %v2145_v44 = vsub.f32 %v2133_v30, %v2143_v49 }
 0xdb5   :  { %v2147_v46 = vmul.f32 %v2145_v44, %v2145_v44 }
 0xdb7   :  { %v2149_v18 = vsel %vm194_vm0, %v2147_v46, 0.0 }
 0xdb8   :  { %v2142_v48 = vpop.xlane.xlu0 %2141  ;;  %2150 = vadd.xlane.f32.xlu2 %v2149_v18 }
 0xdb9   :  { %v2144_v34 = vmul.f32 %v2142_v48, %v3444_v10 }
 0xdbb   :  { %v2146_v51 = vsub.f32 %v2134_v19, %v2144_v34 }
 0xdbd   :  { %v2148_v45 = vmul.f32 %v2146_v51, %v2146_v51 }
 0xdbf   :  { %v2152_v52 = vsel %vm194_vm0, %v2148_v45, 0.0 }
 0xdc0   :  { %2153 = vadd.xlane.f32.xlu1 %v2152_v52 }
 0xe2b   :  { %v2151_v55 = vpop.xlane.xlu2 %2150 }
 0xe2c   :  { %v2155_v38 = vmul.f32 %v2151_v55, %v3444_v10  ;;  %v2935_v55 = vld [vmem:[#allocation14 + $0x1] ss:$0 sm:$0xff] }
 0xe2e   :  { %v2157_v29 = vadd.f32 1e-05, %v2155_v38 }
 0xe30   :  { %3019 = vrsqrt.f32 %v2157_v29  ;;  %vm2165_vm9 = vweird.f32 %v2157_v29 }
 0xe33   :  { %v2154_v59 = vpop.xlane.xlu1 %2153 }
 0xe34   :  { %v2156_v57 = vmul.f32 %v2154_v59, %v3444_v10 }
 0xe36   :  { %v3020_v58 = vpop.eup %3019  ;;  %v2158_v60 = vadd.f32 1e-05, %v2156_v57 }
 0xe37   :  { %v2160_v35 = vmul.f32 %v3020_v58, %v2157_v29  ;;  %vm2166_vm8 = vweird.f32 %v3020_v58 }
 0xe38   :  { %3021 = vrsqrt.f32 %v2158_v60  ;;  %vm2167_vm1 = vmor %vm2165_vm9, %vm2166_vm8  ;;  %vm2175_vm3 = vweird.f32 %v2158_v60 }
 0xe39   :  { %v2161_v62 = vmul.f32 %v3020_v58, %v2160_v35 }
 0xe3b   :  { %v2162_v63 = vmul.f32 0.5, %v2161_v62 }
 0xe3d   :  { %v2163_v32 = vsub.f32 1.5, %v2162_v63 }
 0xe3e   :  { %v3022_v0 = vpop.eup %3021 }
 0xe3f   :  { %v2164_v50 = vmul.f32 %v3020_v58, %v2163_v32  ;;  %v2170_v1 = vmul.f32 %v3022_v0, %v2158_v60  ;;  %vm2176_vm2 = vweird.f32 %v3022_v0 }
 0xe40   :  { %vm2177_vm4 = vmor %vm2175_vm3, %vm2176_vm2 }
 0xe41   :  { %v2171_v2 = vmul.f32 %v3022_v0, %v2170_v1  ;;  %v2168_v3 = vsel %vm2167_vm1, %v3020_v58, %v2164_v50 }
 0xe42   :  { %v2179_v7 = vmul.f32 %v2168_v3, %v2145_v44 }
 0xe43   :  { %v2172_v5 = vmul.f32 0.5, %v2171_v2 }
 0xe44   :  { %v2182_v13 = vmul.f32 %v2181_v11, %v2179_v7 }
 0xe45   :  { %v2173_v6 = vsub.f32 1.5, %v2172_v5 }
 0xe46   :  { %v2185_v15 = vadd.f32 %v2184_v12, %v2182_v13 }
 0xe47   :  { %v2174_v39 = vmul.f32 %v3022_v0, %v2173_v6 }
 0xe49   :  { %v2178_v4 = vsel %vm2177_vm4, %v3022_v0, %v2174_v39 }
 0xe4a   :  { %v2180_v40 = vmul.f32 %v2178_v4, %v2146_v51 }
 0xe4c   :  { %v2183_v14 = vmul.f32 %v2181_v11, %v2180_v40 }
 0xe4e   :  { %v2186_v17 = vadd.f32 %v2184_v12, %v2183_v14 }
 0xe50   :  { %v2198_v20 = vpack.c.bf16 %v2186_v17, %v2185_v15 }
 0xe52   :  { %2755 = vmatmul.msk.bf16.vlgmr.msra.gmra.mxu1 %vm194_vm0, %v2198_v20  ;;  %v2872_v20 = vld [vmem:[#allocation16 + $0x10] sm:$0xff] }
 0xecf   :  { %v2238_v16 = vpop.f32.mrf.mxu1 }
 0xed0   :  { %v2239_v47 = vadd.f32 %v2934_v61, %v2238_v16  ;;  %v2804_v16 = vld [vmem:[%s3976_s12 + $0x2] sm:$0x3] }
 0xed2   :  { %v2243_v27 = vmul.f32 %v2239_v47, %v2239_v47 }
 0xed4   :  { %v2245_v28 = vmul.f32 %v2243_v27, %v2239_v47 }
 0xed6   :  { %v2247_v30 = vmul.f32 0.044715, %v2245_v28  ;;  %v2394_v28 = vperm.slane %v2804_v16, 0 }
 0xed7   :  { %v2240_v31 = vpop.f32.mrf.mxu1 }
 0xed8   :  { %v2249_v33 = vadd.f32 %v2247_v30, %v2239_v47  ;;  %v2241_v37 = vadd.f32 %v2934_v61, %v2240_v31  ;;  %v3311_v61 = vmov 2.0  }
 0xeda   :  { %v2251_v19 = vmul.f32 0.7978846, %v2249_v33  ;;  %v2244_v42 = vmul.f32 %v2241_v37, %v2241_v37 }
 0xedc   :  { %v2246_v43 = vmul.f32 %v2244_v42, %v2241_v37  ;;  %3023 = vtanh.f32 %v2251_v19  ;;  %v2397_v19 = vperm.slane %v2804_v16, 1 }
 0xede   :  { %v2248_v49 = vmul.f32 0.044715, %v2246_v43 }
 0xee0   :  { %v2250_v44 = vadd.f32 %v2248_v49, %v2241_v37 }
 0xee2   :  { %v2252_v46 = vmul.f32 0.7978846, %v2250_v44  ;;  %v3024_v18 = vpop.eup %3023 }
 0xee3   :  { %v2255_v48 = vadd.f32 1.0, %v3024_v18 }
 0xee4   :  { %3025 = vtanh.f32 %v2252_v46 }
 0xee5   :  { %v2257_v51 = vmul.f32 0.5, %v2255_v48 }
 0xee7   :  { %v2259_v36 = vmul.f32 %v2257_v51, %v2239_v47 }
 0xeea   :  { %v3026_v34 = vpop.eup %3025 }
 0xeeb   :  { %v2256_v45 = vadd.f32 1.0, %v3026_v34 }
 0xeed   :  { %v2258_v52 = vmul.f32 0.5, %v2256_v45 }
 0xeef   :  { %v2260_v53 = vmul.f32 %v2258_v52, %v2241_v37 }
 0xef1   :  { %v2280_v54 = vpack.c.bf16 %v2260_v53, %v2259_v36 }
 0xef3   :  { %2340 = vmatmul.bf16.vlgmr.msra.gmra.mxu3 %v2280_v54 }
 0xf76   :  { %v2341_v38 = vpop.f32.mrf.mxu3 }
 0xf77   :  { %v2342_v29 = vadd.f32 %v2935_v55, %v2341_v38 }
 0xf79   :  { %v2346_v56 = vadd.f32 %v2342_v29, %v2185_v15  ;;  %v2873_v15 = vld [vmem:[#allocation16 + $0x18] sm:$0xff] }
 0xf7a   :  { %2492 = vmatpush.bf16.msra.mxu2 %v2873_v15 }
 0xf7b   :  { %v2350_v59 = vsel %vm194_vm0, %v2346_v56, 0.0 }
 0xf7c   :  { %2351 = vadd.xlane.f32.xlu0 %v2350_v59 }
 0xf7e   :  { %v2343_v57 = vpop.f32.mrf.mxu3  ;;  %2493 = vmatpush.bf16.msra.mxu2 %v2872_v20  ;;  %v2936_v20 = vld [vmem:[%s3979_s15] ss:$0 sm:$0xff] }
 0xf7f   :  { %v2344_v58 = vadd.f32 %v2935_v55, %v2343_v57 }
 0xf81   :  { %v2347_v60 = vadd.f32 %v2344_v58, %v2186_v17 }
 0xf82   :  { %2494 = vmatpush.bf16.msra.mxu2 %v2871_v24 }
 0xf83   :  { %v2353_v35 = vsel %vm194_vm0, %v2347_v60, 0.0 }
 0xf84   :  { %2354 = vadd.xlane.f32.xlu2 %v2353_v35 }
 0xfef   :  { %v2352_v62 = vpop.xlane.xlu0 %2351 }
 0xff0   :  { %v2356_v63 = vmul.f32 %v2352_v62, %v3444_v10 }
 0xff2   :  { %v2358_v32 = vsub.f32 %v2346_v56, %v2356_v63 }
 0xff4   :  { %v2360_v0 = vmul.f32 %v2358_v32, %v2358_v32 }
 0xff6   :  { %v2362_v50 = vsel %vm194_vm0, %v2360_v0, 0.0 }
 0xff7   :  { %v2355_v1 = vpop.xlane.xlu2 %2354  ;;  %2363 = vadd.xlane.f32.xlu2 %v2362_v50 }
 0xff8   :  { %v2357_v2 = vmul.f32 %v2355_v1, %v3444_v10 }
 0xffa   :  { %v2359_v22 = vsub.f32 %v2347_v60, %v2357_v2 }
 0xffc   :  { %v2361_v3 = vmul.f32 %v2359_v22, %v2359_v22 }
 0xffe   :  { %v2365_v5 = vsel %vm194_vm0, %v2361_v3, 0.0 }
 0xfff   :  { %2366 = vadd.xlane.f32.xlu1 %v2365_v5 }
0x106a   :  { %v2364_v6 = vpop.xlane.xlu2 %2363 }
0x106b   :  { %v2368_v11 = vmul.f32 %v2364_v6, %v3444_v10 }
0x106d   :  { %v2370_v7 = vadd.f32 1e-05, %v2368_v11  ;;  %v2405_v11 = vld [vmem:[%s3977_s13] sm:$0x3]  ;;  %s2507_s13 = sshll.u32 %s3312_s17, 4  ;;  %s2508_s13 = int_to_ptr.vmem [resolvable:$true] %s2507_s13 }
0x106f   :  { %3027 = vrsqrt.f32 %v2370_v7  ;;  %vm2378_vm6 = vweird.f32 %v2370_v7 }
0x1072   :  { %v2367_v39 = vpop.xlane.xlu1 %2366 }
0x1073   :  { %v2369_v4 = vmul.f32 %v2367_v39, %v3444_v10  ;;  %v2870_v10 = vld [vmem:[#allocation16] sm:$0xff] }
0x1074   :  { %2495 = vmatpush.bf16.msra.mxu2 %v2870_v10 }
0x1075   :  { %v3028_v12 = vpop.eup %3027  ;;  %v2371_v13 = vadd.f32 1e-05, %v2369_v4  ;;  %v2444_v4 = vperm.slane %v2405_v11, 0 }
0x1076   :  { %v2373_v40 = vmul.f32 %v3028_v12, %v2370_v7  ;;  %vm2379_vm5 = vweird.f32 %v3028_v12 }
0x1077   :  { %3029 = vrsqrt.f32 %v2371_v13  ;;  %vm2380_vm7 = vmor %vm2378_vm6, %vm2379_vm5  ;;  %vm2388_vm11 = vweird.f32 %v2371_v13 }
0x1078   :  { %v2374_v14 = vmul.f32 %v3028_v12, %v2373_v40  ;;  %3031 = vrcp.f32 %v3311_v61  ;;  %v2446_v40 = vperm.slane %v2405_v11, 1 }
0x107a   :  { %v2375_v17 = vmul.f32 0.5, %v2374_v14 }
0x107c   :  { %v2376_v8 = vsub.f32 1.5, %v2375_v17 }
0x107d   :  { %v3030_v21 = vpop.eup %3029 }
0x107e   :  { %v2383_v23 = vmul.f32 %v3030_v21, %v2371_v13  ;;  %v2377_v9 = vmul.f32 %v3028_v12, %v2376_v8  ;;  %vm2389_vm10 = vweird.f32 %v3030_v21  ;;  %v3032_v33 = vpop.eup %3031 }
0x107f   :  { %vm2390_vm12 = vmor %vm2388_vm11, %vm2389_vm10  ;;  %v2415_v49 = vmul.f32 2.0, %v3032_v33  ;;  %vm2419_vm15 = vweird.f32 %v3032_v33 }
0x1080   :  { %v2384_v25 = vmul.f32 %v3030_v21, %v2383_v23  ;;  %v2381_v41 = vsel %vm2380_vm7, %v3028_v12, %v2377_v9 }
0x1081   :  { %v2392_v30 = vmul.f32 %v2381_v41, %v2358_v32  ;;  %v2416_v48 = vsub.f32 1.0, %v2415_v49 }
0x1082   :  { %v2385_v26 = vmul.f32 0.5, %v2384_v25 }
0x1083   :  { %v2395_v42 = vmul.f32 %v2394_v28, %v2392_v30  ;;  %v2417_v52 = vmul.f32 %v3032_v33, %v2416_v48 }
0x1084   :  { %v2386_v47 = vsub.f32 1.5, %v2385_v26 }
0x1085   :  { %v2398_v46 = vadd.f32 %v2397_v19, %v2395_v42  ;;  %v2418_v54 = vadd.f32 %v3032_v33, %v2417_v52 }
0x1086   :  { %v2387_v27 = vmul.f32 %v3030_v21, %v2386_v47 }
0x1087   :  { %v2420_v29 = vsel %vm2419_vm15, %v3032_v33, %v2418_v54 }
0x1088   :  { %v2391_v31 = vsel %vm2390_vm12, %v3030_v21, %v2387_v27 }
0x1089   :  { %v2393_v37 = vmul.f32 %v2391_v31, %v2359_v22 }
0x108b   :  { %v2396_v43 = vmul.f32 %v2394_v28, %v2393_v37 }
0x108d   :  { %v2399_v44 = vadd.f32 %v2397_v19, %v2396_v43 }
0x108f   :  { %v2401_v18 = vrot.slane %v2399_v44, 7 }
0x1091   :  { %v2404_v34 = vsel %vm2403_vm13, %v2398_v46, %v2401_v18 }
0x1092   :  { %v2407_v51 = vsel %vm2406_vm14, %v2404_v34, 0.0 }
0x1093   :  { %v2408_v45 = vrot.slane %v2407_v51, 4 }
0x1095   :  { %v2409_v36 = vadd.f32 %v2408_v45, %v2407_v51 }
0x1097   :  { %v2410_v53 = vrot.slane %v2409_v36, 2 }
0x1099   :  { %v2411_v55 = vadd.f32 %v2410_v53, %v2409_v36 }
0x109b   :  { %v2412_v38 = vrot.slane %v2411_v55, 1 }
0x109d   :  { %v2413_v56 = vadd.f32 %v2412_v38, %v2411_v55 }
0x109f   :  { %v2421_v59 = vmul.f32 %v2420_v29, %v2413_v56 }
0x10a1   :  { %v2422_v57 = vsub.f32 %v2404_v34, %v2421_v59 }
0x10a3   :  { %v2423_v58 = vmul.f32 %v2422_v57, %v2422_v57 }
0x10a5   :  { %v2424_v60 = vsel %vm2406_vm14, %v2423_v58, 0.0 }
0x10a6   :  { %v2425_v35 = vrot.slane %v2424_v60, 4 }
0x10a8   :  { %v2426_v62 = vadd.f32 %v2425_v35, %v2424_v60 }
0x10aa   :  { %v2427_v63 = vrot.slane %v2426_v62, 2 }
0x10ac   :  { %v2428_v32 = vadd.f32 %v2427_v63, %v2426_v62 }
0x10ae   :  { %v2429_v0 = vrot.slane %v2428_v32, 1 }
0x10b0   :  { %v2430_v50 = vadd.f32 %v2429_v0, %v2428_v32 }
0x10b2   :  { %v2431_v1 = vmul.f32 %v2430_v50, %v2420_v29 }
0x10b4   :  { %v2432_v2 = vadd.f32 1e-05, %v2431_v1 }
0x10b6   :  { %3033 = vrsqrt.f32 %v2432_v2  ;;  %vm2439_vm9 = vweird.f32 %v2432_v2 }
0x10bc   :  { %v3034_v22 = vpop.eup %3033 }
0x10bd   :  { %v2434_v3 = vmul.f32 %v3034_v22, %v2432_v2  ;;  %vm2440_vm8 = vweird.f32 %v3034_v22 }
0x10be   :  { %vm2441_vm1 = vmor %vm2439_vm9, %vm2440_vm8 }
0x10bf   :  { %v2435_v5 = vmul.f32 %v3034_v22, %v2434_v3 }
0x10c1   :  { %v2436_v6 = vmul.f32 0.5, %v2435_v5 }
0x10c3   :  { %v2437_v7 = vsub.f32 1.5, %v2436_v6 }
0x10c5   :  { %v2438_v39 = vmul.f32 %v3034_v22, %v2437_v7 }
0x10c7   :  { %v2442_v12 = vsel %vm2441_vm1, %v3034_v22, %v2438_v39 }
0x10c8   :  { %v2443_v13 = vmul.f32 %v2442_v12, %v2422_v57 }
0x10ca   :  { %v2445_v14 = vmul.f32 %v2444_v4, %v2443_v13 }
0x10cc   :  { %v2447_v15 = vadd.f32 %v2446_v40, %v2445_v14 }
0x10ce   :  { %v2457_v17 = vpack.c.bf16 %v2447_v15, %v2447_v15 }
0x10d0   :  { %2821 = vmatmul.msk.bf16.vlgmr.msra.gmra.mxu2 %vm194_vm0, %v2457_v17 }
0x1153   :  { %v2497_v8 = vpop.f32.mrf.mxu2 }
0x1154   :  { %v2498_v21 = vadd.f32 %v2936_v20, %v2497_v8 }
0x1156   :  { %2501 = vst [vmem:[#allocation17] sm:$0x3] %v2498_v21 }
0x1157   :  { %2512 = dma.vmem_to_hbm [thread:$0]  %s2508_s13, 32, %s2510_s28, [#allocation4]  }
0x115b   :  { %v2499_v23 = vpop.f32.mrf.mxu2 }
0x115c   :  { %3287 = dma.done.wait [#allocation4], 32  }
0x115d   :  { %3288 = vsyncadd [#allocation4], 4294967264 }
0x115e   :  { %2517 = vsyncpa [#allocation3], 1 }
0x115f   :  { %2518 = vsyncpa [#allocation6], 1 }
0x1160   :  { %2519 = vsyncpa [#allocation9], 1 }
0x1161   :  { %2520 = vsyncpa [#allocation12], 1 }
0x1162   :  { %2521 = vsyncpa [#allocation15], 1 }
0x1163   :  { %2522 = vsyncpa [#allocation4], 1 }

</bundles_post_ra>
